<compile_context>
chip_gen: v7x
topology: tpu7x:2x2x1
jax: 0.10.0
libtpu: 0.0.40
codegen_flags: <defaults>
</compile_context>

<pallas_src>
import jax
import jax.numpy as jnp
from jax.experimental import pallas as pl
from jax.experimental.pallas import tpu as pltpu


# ---------------------------------------------------------------------------
# Kernel 1: fused conv trunk (module1 + module2) for one sample per grid step
# ---------------------------------------------------------------------------
def _features_kernel(p1_ref, w1_ref, b1_ref, w2_ref, b2_ref, w5_ref, b5_ref,
                     p3_ref, w3_ref, b3_ref, w4_ref, b4_ref, w6_ref, b6_ref,
                     o_ref, pool_buf):
    f32 = jnp.float32

    def conv_patches(p_ref, w_ref, b_ref):
        # (L, K) bf16 @ (K, 128) bf16 -> f32; + folded-BN offset; ReLU.
        y = jnp.dot(p_ref[0], w_ref[...], preferred_element_type=f32)
        return jnp.maximum(y + b_ref[...], 0.0)

    def conv_s1(x, w_ref, b_ref, k, l_out):
        # stride-1 conv as K shifted matmuls accumulated in f32 (in-kernel
        # im2col: reads x once from VMEM, no patch materialization).
        xb = x.astype(jnp.bfloat16)
        acc = jnp.dot(xb[0:l_out, :], w_ref[0], preferred_element_type=f32)
        for j in range(1, k):
            acc = acc + jnp.dot(xb[j:j + l_out, :], w_ref[j],
                                preferred_element_type=f32)
        return jnp.maximum(acc + b_ref[...], 0.0)

    def maxpool(y, p, lp):
        # MaxPool1d(p, stride=p): park rows in VMEM scratch, reduce p
        # sublane-strided views (avoids relayout-heavy in-register reshapes).
        pool_buf[0:y.shape[0], :] = y
        r = pool_buf[pl.ds(0, lp, stride=p), :]
        for j in range(1, p):
            r = jnp.maximum(r, pool_buf[pl.ds(j, lp, stride=p), :])
        return r

    # ---- module1 = block1 -> block2 -> block5 -> MaxPool1d(4, 4) ----
    y = conv_patches(p1_ref, w1_ref, b1_ref)      # (749, 128)
    y = maxpool(y, 8, 93)                         # (93, 128)
    y = conv_s1(y, w2_ref, b2_ref, 6, 88)         # (88, 128)
    y = maxpool(y, 4, 22)                         # (22, 128)
    y = conv_s1(y, w5_ref, b5_ref, 2, 21)         # (21, 128)
    y1 = maxpool(y, 4, 5)                         # (5, 128)

    # ---- module2 = block3 -> block4 -> block6 -> MaxPool1d(2, 2) ----
    z = conv_patches(p3_ref, w3_ref, b3_ref)      # (245, 128)
    z = maxpool(z, 2, 122)                        # (122, 128)
    z = conv_s1(z, w4_ref, b4_ref, 6, 117)        # (117, 128)
    z = maxpool(z, 2, 58)                         # (58, 128)
    z = conv_s1(z, w6_ref, b6_ref, 4, 55)         # (55, 128)
    z2 = maxpool(z, 2, 27)                        # (27, 128)

    # torch.cat((out1, out2), dim=2), expressed channels-last: rows 0..4 from
    # module1, rows 5..31 from module2.
    o_ref[0, 0:5, :] = y1
    o_ref[0, 5:32, :] = z2


# ---------------------------------------------------------------------------
# Kernel 2: Linear(4096, 5) + Softmax, lane-dense (padded to 128 logits).
# Padded bias columns are -1e30 -> exp underflows to 0, so the softmax over
# 128 columns equals the softmax over the first 5.
# ---------------------------------------------------------------------------
def _fc_softmax_kernel(x_ref, w_ref, b_ref, o_ref):
    logits = jnp.dot(x_ref[...].astype(jnp.bfloat16), w_ref[...],
                     preferred_element_type=jnp.float32) + b_ref[...]
    m = jnp.max(logits, axis=1, keepdims=True)
    e = jnp.exp(logits - m)
    o_ref[...] = e / jnp.sum(e, axis=1, keepdims=True)


# ---------------------------------------------------------------------------
# Forward pass
# ---------------------------------------------------------------------------
def premsnn_forward(x_ncw, params):
    """x_ncw: (B, 1, 3000) — PyTorch NCW layout."""
    b = x_ncw.shape[0]
    x = x_ncw[:, 0, :]                                            # (B, 3000)

    # Single-channel strided-conv im2col built from free reshapes + static
    # slices + a concat (no TPU gather).  Bit-identical to x[:, idx] gather.
    #   conv1: K=8, s=4  -> patch i = x[4i : 4i+8]
    xr1 = x.reshape(b, 750, 4)
    p1 = jnp.concatenate([xr1[:, 0:749, :], xr1[:, 1:750, :]],
                         axis=-1).astype(jnp.bfloat16)            # (B, 749, 8)
    #   conv3: K=64, s=12 -> patch i = x[12i : 12i+64]
    xr3 = x.reshape(b, 250, 12)
    p3 = jnp.concatenate([xr3[:, m:m + 245, :] for m in range(6)],
                         axis=-1)[:, :, :64].astype(jnp.bfloat16)  # (B, 245, 64)

    feats = pl.pallas_call(
        _features_kernel,
        out_shape=jax.ShapeDtypeStruct((b, 32, 128), jnp.float32),
        grid=(b,),
        in_specs=[
            pl.BlockSpec((1, 749, 8), lambda i: (i, 0, 0)),        # p1
            pl.BlockSpec((8, 128), lambda i: (0, 0)),              # w1
            pl.BlockSpec((1, 128), lambda i: (0, 0)),              # b1
            pl.BlockSpec((6, 128, 128), lambda i: (0, 0, 0)),      # w2
            pl.BlockSpec((1, 128), lambda i: (0, 0)),              # b2
            pl.BlockSpec((2, 128, 128), lambda i: (0, 0, 0)),      # w5
            pl.BlockSpec((1, 128), lambda i: (0, 0)),              # b5
            pl.BlockSpec((1, 245, 64), lambda i: (i, 0, 0)),       # p3
            pl.BlockSpec((64, 128), lambda i: (0, 0)),             # w3
            pl.BlockSpec((1, 128), lambda i: (0, 0)),              # b3
            pl.BlockSpec((6, 128, 128), lambda i: (0, 0, 0)),      # w4
            pl.BlockSpec((1, 128), lambda i: (0, 0)),              # b4
            pl.BlockSpec((4, 128, 128), lambda i: (0, 0, 0)),      # w6
            pl.BlockSpec((1, 128), lambda i: (0, 0)),              # b6
        ],
        out_specs=pl.BlockSpec((1, 32, 128), lambda i: (i, 0, 0)),
        scratch_shapes=[pltpu.VMEM((752, 128), jnp.float32)],      # pool buffer
        compiler_params=pltpu.CompilerParams(
            dimension_semantics=("parallel",)),
    )(p1, params["conv1"]["w"], params["conv1"]["b"],
      params["conv2"]["w"], params["conv2"]["b"],
      params["conv5"]["w"], params["conv5"]["b"],
      p3, params["conv3"]["w"], params["conv3"]["b"],
      params["conv4"]["w"], params["conv4"]["b"],
      params["conv6"]["w"], params["conv6"]["b"])

    # Natural (l*128 + c) flatten; fc weight rows are pre-permuted to match the
    # torch (c*32 + l) order, so no transpose is needed here.
    flat = feats.reshape(b, 4096)

    probs128 = pl.pallas_call(
        _fc_softmax_kernel,
        out_shape=jax.ShapeDtypeStruct((b, 128), jnp.float32),
        grid=(1,),
        in_specs=[
            pl.BlockSpec((b, 4096), lambda i: (0, 0)),
            pl.BlockSpec((4096, 128), lambda i: (0, 0)),
            pl.BlockSpec((1, 128), lambda i: (0, 0)),
        ],
        out_specs=pl.BlockSpec((b, 128), lambda i: (0, 0)),
    )(flat, params["fc_w"], params["fc_b"])

    # Dropout(0.2): identity in inference mode.
    return probs128[:, :5]


# ---------------------------------------------------------------------------
# Deterministic synthetic parameters (eval-mode BN folded into bf16 weights)
# ---------------------------------------------------------------------------
def make_conv_bn_params(key, c_in, c_out, kernel):
    kw, kb, kg, kbeta, km, kv = jax.random.split(key, 6)
    w = 0.05 * jax.random.normal(kw, (c_out, c_in, kernel), jnp.float32)
    conv_b = 0.05 * jax.random.normal(kb, (c_out,), jnp.float32)
    gamma = 1.0 + 0.1 * jax.random.normal(kg, (c_out,), jnp.float32)
    beta = 0.1 * jax.random.normal(kbeta, (c_out,), jnp.float32)
    run_mean = 0.1 * jax.random.normal(km, (c_out,), jnp.float32)
    run_var = 1.0 + 0.1 * jax.random.uniform(kv, (c_out,), jnp.float32)
    eps = 1e-5
    scale = gamma / jnp.sqrt(run_var + eps)
    offset = (conv_b - run_mean) * scale + beta
    # (C_out, C_in, K) -> (K, C_in, C_out); fold the BN scale into the weights.
    w_kic = jnp.transpose(w, (2, 1, 0)) * scale[None, None, :]
    if c_in == 1:
        w_kernel = w_kic.reshape(kernel, c_out).astype(jnp.bfloat16)   # (K, C_out)
    else:
        w_kernel = w_kic.astype(jnp.bfloat16)                          # (K, C_in, C_out)
    return {"w": w_kernel, "b": offset.reshape(1, c_out)}


def make_fc_params(key_w, key_b):
    fc_w = 0.02 * jax.random.normal(key_w, (5, 4096), jnp.float32)  # torch (out,in)
    fc_b = 0.02 * jax.random.normal(key_b, (5,), jnp.float32)
    # Permute rows from torch's channel-major flatten (c*32 + l) to the natural
    # channels-last flatten (l*128 + c), then pad the output dim 5 -> 128.
    w_nat = jnp.transpose(fc_w.reshape(5, 128, 32), (2, 1, 0)).reshape(4096, 5)
    w_pad = jnp.zeros((4096, 128), jnp.float32).at[:, :5].set(w_nat)
    b_pad = jnp.full((1, 128), -1e30, jnp.float32).at[0, :5].set(fc_b)
    return w_pad.astype(jnp.bfloat16), b_pad


# ---------------------------------------------------------------------------
# Pure-JAX reference (same math & bf16 matmul precision, no Pallas)
# ---------------------------------------------------------------------------
def reference_forward(x_ncw, params):
    bsz = x_ncw.shape[0]
    x3 = jnp.transpose(x_ncw, (0, 2, 1))                  # (B, 3000, 1)

    def im2col(h, k, s):
        b_, l, c = h.shape
        l_out = (l - k) // s + 1
        idx = jnp.arange(l_out)[:, None] * s + jnp.arange(k)[None, :]
        return h[:, idx, :].reshape(b_, l_out, k * c), l_out

    def pool(h, p_):
        b_, l, c = h.shape
        lp = l // p_
        return jnp.max(h[:, :lp * p_, :].reshape(b_, lp, p_, c), axis=2)

    def blk(h, p, k, s, pool_sz):
        pat, _ = im2col(h, k, s)
        w = p["w"].reshape(-1, 128)
        y = jnp.dot(pat.astype(jnp.bfloat16), w, preferred_element_type=jnp.float32)
        y = jnp.maximum(y + p["b"][None], 0.0)
        return pool(y, pool_sz) if pool_sz is not None else y

    h1 = blk(x3, params["conv1"], 8, 4, 8)
    h1 = blk(h1, params["conv2"], 6, 1, 4)
    h1 = blk(h1, params["conv5"], 2, 1, None)
    h1 = pool(h1, 4)                                       # (B, 5, 128)
    h2 = blk(x3, params["conv3"], 64, 12, 2)
    h2 = blk(h2, params["conv4"], 6, 1, 2)
    h2 = blk(h2, params["conv6"], 4, 1, None)
    h2 = pool(h2, 2)                                       # (B, 27, 128)
    feat = jnp.concatenate([h1, h2], axis=1)               # (B, 32, 128)
    flat = feat.reshape(bsz, 4096)
    logits = jnp.dot(flat.astype(jnp.bfloat16), params["fc_w"],
                     preferred_element_type=jnp.float32) + params["fc_b"]
    return jax.nn.softmax(logits, axis=1)[:, :5]


# ---------------------------------------------------------------------------
if __name__ == "__main__":
    key = jax.random.PRNGKey(0)
    ks = jax.random.split(key, 9)

    params = {
        "conv1": make_conv_bn_params(ks[0], 1, 128, 8),
        "conv2": make_conv_bn_params(ks[1], 128, 128, 6),
        "conv5": make_conv_bn_params(ks[2], 128, 128, 2),
        "conv3": make_conv_bn_params(ks[3], 1, 128, 64),
        "conv4": make_conv_bn_params(ks[4], 128, 128, 6),
        "conv6": make_conv_bn_params(ks[5], 128, 128, 4),
    }
    params["fc_w"], params["fc_b"] = make_fc_params(ks[6], ks[7])

    # Small batch; temporal length must be 3000 so that fc2 sees 4096 features.
    x = jax.random.normal(ks[8], (2, 1, 3000), jnp.float32)

    out = jax.jit(premsnn_forward)(x, params)
    out = jax.block_until_ready(out)

    ref = reference_forward(x, params)
    assert out.shape == (2, 5)
    assert bool(jnp.all(jnp.isfinite(out)))
    assert bool(jnp.allclose(jnp.sum(out, axis=1), 1.0, atol=1e-4))
    assert bool(jnp.allclose(out, ref, atol=5e-3, rtol=5e-3))

    print("KERNEL_OK")
</pallas_src>

<mosaic_0001>
module attributes {stable_mosaic.version = 11 : i64} {
  func.func @_features_kernel(%arg0: i32, %arg1: memref<1x749x8xbf16, #tpu.memory_space<vmem>>, %arg2: memref<8x128xbf16, #tpu.memory_space<vmem>>, %arg3: memref<1x128xf32, #tpu.memory_space<vmem>>, %arg4: memref<6x128x128xbf16, #tpu.memory_space<vmem>>, %arg5: memref<1x128xf32, #tpu.memory_space<vmem>>, %arg6: memref<2x128x128xbf16, #tpu.memory_space<vmem>>, %arg7: memref<1x128xf32, #tpu.memory_space<vmem>>, %arg8: memref<1x245x64xbf16, #tpu.memory_space<vmem>>, %arg9: memref<64x128xbf16, #tpu.memory_space<vmem>>, %arg10: memref<1x128xf32, #tpu.memory_space<vmem>>, %arg11: memref<6x128x128xbf16, #tpu.memory_space<vmem>>, %arg12: memref<1x128xf32, #tpu.memory_space<vmem>>, %arg13: memref<4x128x128xbf16, #tpu.memory_space<vmem>>, %arg14: memref<1x128xf32, #tpu.memory_space<vmem>>, %arg15: memref<1x32x128xf32, #tpu.memory_space<vmem>>, %arg16: memref<752x128xf32, #tpu.memory_space<vmem>>) attributes {dimension_semantics = [#tpu.dimension_semantics<parallel>], iteration_bounds = array<i64: 2>, scalar_prefetch = 0 : i64, scratch_operands = 1 : i64, tpu.core_type = #tpu.core_type<tc>, window_params = [{transform_indices = @transform_0, window_bounds = array<i64: 1, 749, 8>}, {pipeline_mode = #tpu.pipeline_mode<synchronous>, transform_indices = @transform_1, window_bounds = array<i64: 8, 128>}, {pipeline_mode = #tpu.pipeline_mode<synchronous>, transform_indices = @transform_2, window_bounds = array<i64: 1, 128>}, {pipeline_mode = #tpu.pipeline_mode<synchronous>, transform_indices = @transform_3, window_bounds = array<i64: 6, 128, 128>}, {pipeline_mode = #tpu.pipeline_mode<synchronous>, transform_indices = @transform_4, window_bounds = array<i64: 1, 128>}, {pipeline_mode = #tpu.pipeline_mode<synchronous>, transform_indices = @transform_5, window_bounds = array<i64: 2, 128, 128>}, {pipeline_mode = #tpu.pipeline_mode<synchronous>, transform_indices = @transform_6, window_bounds = array<i64: 1, 128>}, {transform_indices = @transform_7, window_bounds = array<i64: 1, 245, 64>}, {pipeline_mode = #tpu.pipeline_mode<synchronous>, transform_indices = @transform_8, window_bounds = array<i64: 64, 128>}, {pipeline_mode = #tpu.pipeline_mode<synchronous>, transform_indices = @transform_9, window_bounds = array<i64: 1, 128>}, {pipeline_mode = #tpu.pipeline_mode<synchronous>, transform_indices = @transform_10, window_bounds = array<i64: 6, 128, 128>}, {pipeline_mode = #tpu.pipeline_mode<synchronous>, transform_indices = @transform_11, window_bounds = array<i64: 1, 128>}, {pipeline_mode = #tpu.pipeline_mode<synchronous>, transform_indices = @transform_12, window_bounds = array<i64: 4, 128, 128>}, {pipeline_mode = #tpu.pipeline_mode<synchronous>, transform_indices = @transform_13, window_bounds = array<i64: 1, 128>}, {transform_indices = @transform_14, window_bounds = array<i64: 1, 32, 128>}]} {
    %c0 = arith.constant 0 : index
    %c0_0 = arith.constant 0 : index
    %c0_1 = arith.constant 0 : index
    %0 = vector.load %arg1[%c0, %c0_0, %c0_1] : memref<1x749x8xbf16, #tpu.memory_space<vmem>>, vector<1x749x8xbf16>
    %1 = vector.shape_cast %0 : vector<1x749x8xbf16> to vector<749x8xbf16>
    %c0_2 = arith.constant 0 : index
    %c0_3 = arith.constant 0 : index
    %2 = vector.load %arg2[%c0_2, %c0_3] : memref<8x128xbf16, #tpu.memory_space<vmem>>, vector<8x128xbf16>
    %cst = arith.constant dense<0.000000e+00> : vector<749x128xf32>
    %3 = tpu.matmul %1, %2, %cst {dimension_numbers = #tpu.dot_dimension_numbers<[1], [0], [0], [1], [0, 0, 1, 1], [], []>} : vector<749x8xbf16>, vector<8x128xbf16>, vector<749x128xf32> -> vector<749x128xf32>
    %c0_4 = arith.constant 0 : index
    %c0_5 = arith.constant 0 : index
    %4 = vector.load %arg3[%c0_4, %c0_5] : memref<1x128xf32, #tpu.memory_space<vmem>>, vector<1x128xf32>
    %5 = vector.broadcast %4 : vector<1x128xf32> to vector<749x128xf32>
    %6 = arith.addf %3, %5 : vector<749x128xf32>
    %cst_6 = arith.constant 0.000000e+00 : f32
    %7 = vector.broadcast %cst_6 : f32 to vector<749x128xf32>
    %8 = arith.maximumf %6, %7 : vector<749x128xf32>
    %c0_7 = arith.constant 0 : index
    %c0_8 = arith.constant 0 : index
    %9 = vector.load %arg16[%c0_7, %c0_8] : memref<752x128xf32, #tpu.memory_space<vmem>>, vector<749x128xf32>
    tpu.vector_store %arg16[%c0_7, %c0_8], %8 {strides = array<i32>} : memref<752x128xf32, #tpu.memory_space<vmem>>, vector<749x128xf32>,
    %c0_9 = arith.constant 0 : index
    %c0_10 = arith.constant 0 : index
    %10 = tpu.strided_load %arg16[%c0_9, %c0_10] {strides = array<i32: 8, 1>} : memref<752x128xf32, #tpu.memory_space<vmem>>, vector<93x128xf32>
    %c1 = arith.constant 1 : index
    %c0_11 = arith.constant 0 : index
    %11 = tpu.strided_load %arg16[%c1, %c0_11] {strides = array<i32: 8, 1>} : memref<752x128xf32, #tpu.memory_space<vmem>>, vector<93x128xf32>
    %12 = arith.maximumf %10, %11 : vector<93x128xf32>
    %c2 = arith.constant 2 : index
    %c0_12 = arith.constant 0 : index
    %13 = tpu.strided_load %arg16[%c2, %c0_12] {strides = array<i32: 8, 1>} : memref<752x128xf32, #tpu.memory_space<vmem>>, vector<93x128xf32>
    %14 = arith.maximumf %12, %13 : vector<93x128xf32>
    %c3 = arith.constant 3 : index
    %c0_13 = arith.constant 0 : index
    %15 = tpu.strided_load %arg16[%c3, %c0_13] {strides = array<i32: 8, 1>} : memref<752x128xf32, #tpu.memory_space<vmem>>, vector<93x128xf32>
    %16 = arith.maximumf %14, %15 : vector<93x128xf32>
    %c4 = arith.constant 4 : index
    %c0_14 = arith.constant 0 : index
    %17 = tpu.strided_load %arg16[%c4, %c0_14] {strides = array<i32: 8, 1>} : memref<752x128xf32, #tpu.memory_space<vmem>>, vector<93x128xf32>
    %18 = arith.maximumf %16, %17 : vector<93x128xf32>
    %c5 = arith.constant 5 : index
    %c0_15 = arith.constant 0 : index
    %19 = tpu.strided_load %arg16[%c5, %c0_15] {strides = array<i32: 8, 1>} : memref<752x128xf32, #tpu.memory_space<vmem>>, vector<93x128xf32>
    %20 = arith.maximumf %18, %19 : vector<93x128xf32>
    %c6 = arith.constant 6 : index
    %c0_16 = arith.constant 0 : index
    %21 = tpu.strided_load %arg16[%c6, %c0_16] {strides = array<i32: 8, 1>} : memref<752x128xf32, #tpu.memory_space<vmem>>, vector<93x128xf32>
    %22 = arith.maximumf %20, %21 : vector<93x128xf32>
    %c7 = arith.constant 7 : index
    %c0_17 = arith.constant 0 : index
    %23 = tpu.strided_load %arg16[%c7, %c0_17] {strides = array<i32: 8, 1>} : memref<752x128xf32, #tpu.memory_space<vmem>>, vector<93x128xf32>
    %24 = arith.maximumf %22, %23 : vector<93x128xf32>
    %25 = arith.truncf %24 : vector<93x128xf32> to vector<93x128xbf16>
    %26 = vector.extract_strided_slice %25 {offsets = [0, 0], sizes = [88, 128], strides = [1, 1]} : vector<93x128xbf16> to vector<88x128xbf16>
    %c0_18 = arith.constant 0 : index
    %c0_19 = arith.constant 0 : index
    %c0_20 = arith.constant 0 : index
    %27 = vector.load %arg4[%c0_18, %c0_19, %c0_20] : memref<6x128x128xbf16, #tpu.memory_space<vmem>>, vector<1x128x128xbf16>
    %28 = vector.shape_cast %27 : vector<1x128x128xbf16> to vector<128x128xbf16>
    %cst_21 = arith.constant dense<0.000000e+00> : vector<88x128xf32>
    %29 = tpu.matmul %26, %28, %cst_21 {dimension_numbers = #tpu.dot_dimension_numbers<[1], [0], [0], [1], [0, 0, 1, 1], [], []>} : vector<88x128xbf16>, vector<128x128xbf16>, vector<88x128xf32> -> vector<88x128xf32>
    %30 = vector.extract_strided_slice %25 {offsets = [1, 0], sizes = [88, 128], strides = [1, 1]} : vector<93x128xbf16> to vector<88x128xbf16>
    %c1_22 = arith.constant 1 : index
    %c0_23 = arith.constant 0 : index
    %c0_24 = arith.constant 0 : index
    %31 = vector.load %arg4[%c1_22, %c0_23, %c0_24] : memref<6x128x128xbf16, #tpu.memory_space<vmem>>, vector<1x128x128xbf16>
    %32 = vector.shape_cast %31 : vector<1x128x128xbf16> to vector<128x128xbf16>
    %cst_25 = arith.constant dense<0.000000e+00> : vector<88x128xf32>
    %33 = tpu.matmul %30, %32, %cst_25 {dimension_numbers = #tpu.dot_dimension_numbers<[1], [0], [0], [1], [0, 0, 1, 1], [], []>} : vector<88x128xbf16>, vector<128x128xbf16>, vector<88x128xf32> -> vector<88x128xf32>
    %34 = arith.addf %29, %33 : vector<88x128xf32>
    %35 = vector.extract_strided_slice %25 {offsets = [2, 0], sizes = [88, 128], strides = [1, 1]} : vector<93x128xbf16> to vector<88x128xbf16>
    %c2_26 = arith.constant 2 : index
    %c0_27 = arith.constant 0 : index
    %c0_28 = arith.constant 0 : index
    %36 = vector.load %arg4[%c2_26, %c0_27, %c0_28] : memref<6x128x128xbf16, #tpu.memory_space<vmem>>, vector<1x128x128xbf16>
    %37 = vector.shape_cast %36 : vector<1x128x128xbf16> to vector<128x128xbf16>
    %cst_29 = arith.constant dense<0.000000e+00> : vector<88x128xf32>
    %38 = tpu.matmul %35, %37, %cst_29 {dimension_numbers = #tpu.dot_dimension_numbers<[1], [0], [0], [1], [0, 0, 1, 1], [], []>} : vector<88x128xbf16>, vector<128x128xbf16>, vector<88x128xf32> -> vector<88x128xf32>
    %39 = arith.addf %34, %38 : vector<88x128xf32>
    %40 = vector.extract_strided_slice %25 {offsets = [3, 0], sizes = [88, 128], strides = [1, 1]} : vector<93x128xbf16> to vector<88x128xbf16>
    %c3_30 = arith.constant 3 : index
    %c0_31 = arith.constant 0 : index
    %c0_32 = arith.constant 0 : index
    %41 = vector.load %arg4[%c3_30, %c0_31, %c0_32] : memref<6x128x128xbf16, #tpu.memory_space<vmem>>, vector<1x128x128xbf16>
    %42 = vector.shape_cast %41 : vector<1x128x128xbf16> to vector<128x128xbf16>
    %cst_33 = arith.constant dense<0.000000e+00> : vector<88x128xf32>
    %43 = tpu.matmul %40, %42, %cst_33 {dimension_numbers = #tpu.dot_dimension_numbers<[1], [0], [0], [1], [0, 0, 1, 1], [], []>} : vector<88x128xbf16>, vector<128x128xbf16>, vector<88x128xf32> -> vector<88x128xf32>
    %44 = arith.addf %39, %43 : vector<88x128xf32>
    %45 = vector.extract_strided_slice %25 {offsets = [4, 0], sizes = [88, 128], strides = [1, 1]} : vector<93x128xbf16> to vector<88x128xbf16>
    %c4_34 = arith.constant 4 : index
    %c0_35 = arith.constant 0 : index
    %c0_36 = arith.constant 0 : index
    %46 = vector.load %arg4[%c4_34, %c0_35, %c0_36] : memref<6x128x128xbf16, #tpu.memory_space<vmem>>, vector<1x128x128xbf16>
    %47 = vector.shape_cast %46 : vector<1x128x128xbf16> to vector<128x128xbf16>
    %cst_37 = arith.constant dense<0.000000e+00> : vector<88x128xf32>
    %48 = tpu.matmul %45, %47, %cst_37 {dimension_numbers = #tpu.dot_dimension_numbers<[1], [0], [0], [1], [0, 0, 1, 1], [], []>} : vector<88x128xbf16>, vector<128x128xbf16>, vector<88x128xf32> -> vector<88x128xf32>
    %49 = arith.addf %44, %48 : vector<88x128xf32>
    %50 = vector.extract_strided_slice %25 {offsets = [5, 0], sizes = [88, 128], strides = [1, 1]} : vector<93x128xbf16> to vector<88x128xbf16>
    %c5_38 = arith.constant 5 : index
    %c0_39 = arith.constant 0 : index
    %c0_40 = arith.constant 0 : index
    %51 = vector.load %arg4[%c5_38, %c0_39, %c0_40] : memref<6x128x128xbf16, #tpu.memory_space<vmem>>, vector<1x128x128xbf16>
    %52 = vector.shape_cast %51 : vector<1x128x128xbf16> to vector<128x128xbf16>
    %cst_41 = arith.constant dense<0.000000e+00> : vector<88x128xf32>
    %53 = tpu.matmul %50, %52, %cst_41 {dimension_numbers = #tpu.dot_dimension_numbers<[1], [0], [0], [1], [0, 0, 1, 1], [], []>} : vector<88x128xbf16>, vector<128x128xbf16>, vector<88x128xf32> -> vector<88x128xf32>
    %54 = arith.addf %49, %53 : vector<88x128xf32>
    %c0_42 = arith.constant 0 : index
    %c0_43 = arith.constant 0 : index
    %55 = vector.load %arg5[%c0_42, %c0_43] : memref<1x128xf32, #tpu.memory_space<vmem>>, vector<1x128xf32>
    %56 = vector.broadcast %55 : vector<1x128xf32> to vector<88x128xf32>
    %57 = arith.addf %54, %56 : vector<88x128xf32>
    %cst_44 = arith.constant 0.000000e+00 : f32
    %58 = vector.broadcast %cst_44 : f32 to vector<88x128xf32>
    %59 = arith.maximumf %57, %58 : vector<88x128xf32>
    %c0_45 = arith.constant 0 : index
    %c0_46 = arith.constant 0 : index
    %60 = vector.load %arg16[%c0_45, %c0_46] : memref<752x128xf32, #tpu.memory_space<vmem>>, vector<88x128xf32>
    tpu.vector_store %arg16[%c0_45, %c0_46], %59 {strides = array<i32>} : memref<752x128xf32, #tpu.memory_space<vmem>>, vector<88x128xf32>,
    %c0_47 = arith.constant 0 : index
    %c0_48 = arith.constant 0 : index
    %61 = tpu.strided_load %arg16[%c0_47, %c0_48] {strides = array<i32: 4, 1>} : memref<752x128xf32, #tpu.memory_space<vmem>>, vector<22x128xf32>
    %c1_49 = arith.constant 1 : index
    %c0_50 = arith.constant 0 : index
    %62 = tpu.strided_load %arg16[%c1_49, %c0_50] {strides = array<i32: 4, 1>} : memref<752x128xf32, #tpu.memory_space<vmem>>, vector<22x128xf32>
    %63 = arith.maximumf %61, %62 : vector<22x128xf32>
    %c2_51 = arith.constant 2 : index
    %c0_52 = arith.constant 0 : index
    %64 = tpu.strided_load %arg16[%c2_51, %c0_52] {strides = array<i32: 4, 1>} : memref<752x128xf32, #tpu.memory_space<vmem>>, vector<22x128xf32>
    %65 = arith.maximumf %63, %64 : vector<22x128xf32>
    %c3_53 = arith.constant 3 : index
    %c0_54 = arith.constant 0 : index
    %66 = tpu.strided_load %arg16[%c3_53, %c0_54] {strides = array<i32: 4, 1>} : memref<752x128xf32, #tpu.memory_space<vmem>>, vector<22x128xf32>
    %67 = arith.maximumf %65, %66 : vector<22x128xf32>
    %68 = arith.truncf %67 : vector<22x128xf32> to vector<22x128xbf16>
    %69 = vector.extract_strided_slice %68 {offsets = [0, 0], sizes = [21, 128], strides = [1, 1]} : vector<22x128xbf16> to vector<21x128xbf16>
    %c0_55 = arith.constant 0 : index
    %c0_56 = arith.constant 0 : index
    %c0_57 = arith.constant 0 : index
    %70 = vector.load %arg6[%c0_55, %c0_56, %c0_57] : memref<2x128x128xbf16, #tpu.memory_space<vmem>>, vector<1x128x128xbf16>
    %71 = vector.shape_cast %70 : vector<1x128x128xbf16> to vector<128x128xbf16>
    %cst_58 = arith.constant dense<0.000000e+00> : vector<21x128xf32>
    %72 = tpu.matmul %69, %71, %cst_58 {dimension_numbers = #tpu.dot_dimension_numbers<[1], [0], [0], [1], [0, 0, 1, 1], [], []>} : vector<21x128xbf16>, vector<128x128xbf16>, vector<21x128xf32> -> vector<21x128xf32>
    %73 = vector.extract_strided_slice %68 {offsets = [1, 0], sizes = [21, 128], strides = [1, 1]} : vector<22x128xbf16> to vector<21x128xbf16>
    %c1_59 = arith.constant 1 : index
    %c0_60 = arith.constant 0 : index
    %c0_61 = arith.constant 0 : index
    %74 = vector.load %arg6[%c1_59, %c0_60, %c0_61] : memref<2x128x128xbf16, #tpu.memory_space<vmem>>, vector<1x128x128xbf16>
    %75 = vector.shape_cast %74 : vector<1x128x128xbf16> to vector<128x128xbf16>
    %cst_62 = arith.constant dense<0.000000e+00> : vector<21x128xf32>
    %76 = tpu.matmul %73, %75, %cst_62 {dimension_numbers = #tpu.dot_dimension_numbers<[1], [0], [0], [1], [0, 0, 1, 1], [], []>} : vector<21x128xbf16>, vector<128x128xbf16>, vector<21x128xf32> -> vector<21x128xf32>
    %77 = arith.addf %72, %76 : vector<21x128xf32>
    %c0_63 = arith.constant 0 : index
    %c0_64 = arith.constant 0 : index
    %78 = vector.load %arg7[%c0_63, %c0_64] : memref<1x128xf32, #tpu.memory_space<vmem>>, vector<1x128xf32>
    %79 = vector.broadcast %78 : vector<1x128xf32> to vector<21x128xf32>
    %80 = arith.addf %77, %79 : vector<21x128xf32>
    %cst_65 = arith.constant 0.000000e+00 : f32
    %81 = vector.broadcast %cst_65 : f32 to vector<21x128xf32>
    %82 = arith.maximumf %80, %81 : vector<21x128xf32>
    %c0_66 = arith.constant 0 : index
    %c0_67 = arith.constant 0 : index
    %83 = vector.load %arg16[%c0_66, %c0_67] : memref<752x128xf32, #tpu.memory_space<vmem>>, vector<21x128xf32>
    tpu.vector_store %arg16[%c0_66, %c0_67], %82 {strides = array<i32>} : memref<752x128xf32, #tpu.memory_space<vmem>>, vector<21x128xf32>,
    %c0_68 = arith.constant 0 : index
    %c0_69 = arith.constant 0 : index
    %84 = tpu.strided_load %arg16[%c0_68, %c0_69] {strides = array<i32: 4, 1>} : memref<752x128xf32, #tpu.memory_space<vmem>>, vector<5x128xf32>
    %c1_70 = arith.constant 1 : index
    %c0_71 = arith.constant 0 : index
    %85 = tpu.strided_load %arg16[%c1_70, %c0_71] {strides = array<i32: 4, 1>} : memref<752x128xf32, #tpu.memory_space<vmem>>, vector<5x128xf32>
    %86 = arith.maximumf %84, %85 : vector<5x128xf32>
    %c2_72 = arith.constant 2 : index
    %c0_73 = arith.constant 0 : index
    %87 = tpu.strided_load %arg16[%c2_72, %c0_73] {strides = array<i32: 4, 1>} : memref<752x128xf32, #tpu.memory_space<vmem>>, vector<5x128xf32>
    %88 = arith.maximumf %86, %87 : vector<5x128xf32>
    %c3_74 = arith.constant 3 : index
    %c0_75 = arith.constant 0 : index
    %89 = tpu.strided_load %arg16[%c3_74, %c0_75] {strides = array<i32: 4, 1>} : memref<752x128xf32, #tpu.memory_space<vmem>>, vector<5x128xf32>
    %90 = arith.maximumf %88, %89 : vector<5x128xf32>
    %c0_76 = arith.constant 0 : index
    %c0_77 = arith.constant 0 : index
    %c0_78 = arith.constant 0 : index
    %91 = vector.load %arg8[%c0_76, %c0_77, %c0_78] : memref<1x245x64xbf16, #tpu.memory_space<vmem>>, vector<1x245x64xbf16>
    %92 = vector.shape_cast %91 : vector<1x245x64xbf16> to vector<245x64xbf16>
    %c0_79 = arith.constant 0 : index
    %c0_80 = arith.constant 0 : index
    %93 = vector.load %arg9[%c0_79, %c0_80] : memref<64x128xbf16, #tpu.memory_space<vmem>>, vector<64x128xbf16>
    %cst_81 = arith.constant dense<0.000000e+00> : vector<245x128xf32>
    %94 = tpu.matmul %92, %93, %cst_81 {dimension_numbers = #tpu.dot_dimension_numbers<[1], [0], [0], [1], [0, 0, 1, 1], [], []>} : vector<245x64xbf16>, vector<64x128xbf16>, vector<245x128xf32> -> vector<245x128xf32>
    %c0_82 = arith.constant 0 : index
    %c0_83 = arith.constant 0 : index
    %95 = vector.load %arg10[%c0_82, %c0_83] : memref<1x128xf32, #tpu.memory_space<vmem>>, vector<1x128xf32>
    %96 = vector.broadcast %95 : vector<1x128xf32> to vector<245x128xf32>
    %97 = arith.addf %94, %96 : vector<245x128xf32>
    %cst_84 = arith.constant 0.000000e+00 : f32
    %98 = vector.broadcast %cst_84 : f32 to vector<245x128xf32>
    %99 = arith.maximumf %97, %98 : vector<245x128xf32>
    %c0_85 = arith.constant 0 : index
    %c0_86 = arith.constant 0 : index
    %100 = vector.load %arg16[%c0_85, %c0_86] : memref<752x128xf32, #tpu.memory_space<vmem>>, vector<245x128xf32>
    tpu.vector_store %arg16[%c0_85, %c0_86], %99 {strides = array<i32>} : memref<752x128xf32, #tpu.memory_space<vmem>>, vector<245x128xf32>,
    %c0_87 = arith.constant 0 : index
    %c0_88 = arith.constant 0 : index
    %101 = tpu.strided_load %arg16[%c0_87, %c0_88] {strides = array<i32: 2, 1>} : memref<752x128xf32, #tpu.memory_space<vmem>>, vector<122x128xf32>
    %c1_89 = arith.constant 1 : index
    %c0_90 = arith.constant 0 : index
    %102 = tpu.strided_load %arg16[%c1_89, %c0_90] {strides = array<i32: 2, 1>} : memref<752x128xf32, #tpu.memory_space<vmem>>, vector<122x128xf32>
    %103 = arith.maximumf %101, %102 : vector<122x128xf32>
    %104 = arith.truncf %103 : vector<122x128xf32> to vector<122x128xbf16>
    %105 = vector.extract_strided_slice %104 {offsets = [0, 0], sizes = [117, 128], strides = [1, 1]} : vector<122x128xbf16> to vector<117x128xbf16>
    %c0_91 = arith.constant 0 : index
    %c0_92 = arith.constant 0 : index
    %c0_93 = arith.constant 0 : index
    %106 = vector.load %arg11[%c0_91, %c0_92, %c0_93] : memref<6x128x128xbf16, #tpu.memory_space<vmem>>, vector<1x128x128xbf16>
    %107 = vector.shape_cast %106 : vector<1x128x128xbf16> to vector<128x128xbf16>
    %cst_94 = arith.constant dense<0.000000e+00> : vector<117x128xf32>
    %108 = tpu.matmul %105, %107, %cst_94 {dimension_numbers = #tpu.dot_dimension_numbers<[1], [0], [0], [1], [0, 0, 1, 1], [], []>} : vector<117x128xbf16>, vector<128x128xbf16>, vector<117x128xf32> -> vector<117x128xf32>
    %109 = vector.extract_strided_slice %104 {offsets = [1, 0], sizes = [117, 128], strides = [1, 1]} : vector<122x128xbf16> to vector<117x128xbf16>
    %c1_95 = arith.constant 1 : index
    %c0_96 = arith.constant 0 : index
    %c0_97 = arith.constant 0 : index
    %110 = vector.load %arg11[%c1_95, %c0_96, %c0_97] : memref<6x128x128xbf16, #tpu.memory_space<vmem>>, vector<1x128x128xbf16>
    %111 = vector.shape_cast %110 : vector<1x128x128xbf16> to vector<128x128xbf16>
    %cst_98 = arith.constant dense<0.000000e+00> : vector<117x128xf32>
    %112 = tpu.matmul %109, %111, %cst_98 {dimension_numbers = #tpu.dot_dimension_numbers<[1], [0], [0], [1], [0, 0, 1, 1], [], []>} : vector<117x128xbf16>, vector<128x128xbf16>, vector<117x128xf32> -> vector<117x128xf32>
    %113 = arith.addf %108, %112 : vector<117x128xf32>
    %114 = vector.extract_strided_slice %104 {offsets = [2, 0], sizes = [117, 128], strides = [1, 1]} : vector<122x128xbf16> to vector<117x128xbf16>
    %c2_99 = arith.constant 2 : index
    %c0_100 = arith.constant 0 : index
    %c0_101 = arith.constant 0 : index
    %115 = vector.load %arg11[%c2_99, %c0_100, %c0_101] : memref<6x128x128xbf16, #tpu.memory_space<vmem>>, vector<1x128x128xbf16>
    %116 = vector.shape_cast %115 : vector<1x128x128xbf16> to vector<128x128xbf16>
    %cst_102 = arith.constant dense<0.000000e+00> : vector<117x128xf32>
    %117 = tpu.matmul %114, %116, %cst_102 {dimension_numbers = #tpu.dot_dimension_numbers<[1], [0], [0], [1], [0, 0, 1, 1], [], []>} : vector<117x128xbf16>, vector<128x128xbf16>, vector<117x128xf32> -> vector<117x128xf32>
    %118 = arith.addf %113, %117 : vector<117x128xf32>
    %119 = vector.extract_strided_slice %104 {offsets = [3, 0], sizes = [117, 128], strides = [1, 1]} : vector<122x128xbf16> to vector<117x128xbf16>
    %c3_103 = arith.constant 3 : index
    %c0_104 = arith.constant 0 : index
    %c0_105 = arith.constant 0 : index
    %120 = vector.load %arg11[%c3_103, %c0_104, %c0_105] : memref<6x128x128xbf16, #tpu.memory_space<vmem>>, vector<1x128x128xbf16>
    %121 = vector.shape_cast %120 : vector<1x128x128xbf16> to vector<128x128xbf16>
    %cst_106 = arith.constant dense<0.000000e+00> : vector<117x128xf32>
    %122 = tpu.matmul %119, %121, %cst_106 {dimension_numbers = #tpu.dot_dimension_numbers<[1], [0], [0], [1], [0, 0, 1, 1], [], []>} : vector<117x128xbf16>, vector<128x128xbf16>, vector<117x128xf32> -> vector<117x128xf32>
    %123 = arith.addf %118, %122 : vector<117x128xf32>
    %124 = vector.extract_strided_slice %104 {offsets = [4, 0], sizes = [117, 128], strides = [1, 1]} : vector<122x128xbf16> to vector<117x128xbf16>
    %c4_107 = arith.constant 4 : index
    %c0_108 = arith.constant 0 : index
    %c0_109 = arith.constant 0 : index
    %125 = vector.load %arg11[%c4_107, %c0_108, %c0_109] : memref<6x128x128xbf16, #tpu.memory_space<vmem>>, vector<1x128x128xbf16>
    %126 = vector.shape_cast %125 : vector<1x128x128xbf16> to vector<128x128xbf16>
    %cst_110 = arith.constant dense<0.000000e+00> : vector<117x128xf32>
    %127 = tpu.matmul %124, %126, %cst_110 {dimension_numbers = #tpu.dot_dimension_numbers<[1], [0], [0], [1], [0, 0, 1, 1], [], []>} : vector<117x128xbf16>, vector<128x128xbf16>, vector<117x128xf32> -> vector<117x128xf32>
    %128 = arith.addf %123, %127 : vector<117x128xf32>
    %129 = vector.extract_strided_slice %104 {offsets = [5, 0], sizes = [117, 128], strides = [1, 1]} : vector<122x128xbf16> to vector<117x128xbf16>
    %c5_111 = arith.constant 5 : index
    %c0_112 = arith.constant 0 : index
    %c0_113 = arith.constant 0 : index
    %130 = vector.load %arg11[%c5_111, %c0_112, %c0_113] : memref<6x128x128xbf16, #tpu.memory_space<vmem>>, vector<1x128x128xbf16>
    %131 = vector.shape_cast %130 : vector<1x128x128xbf16> to vector<128x128xbf16>
    %cst_114 = arith.constant dense<0.000000e+00> : vector<117x128xf32>
    %132 = tpu.matmul %129, %131, %cst_114 {dimension_numbers = #tpu.dot_dimension_numbers<[1], [0], [0], [1], [0, 0, 1, 1], [], []>} : vector<117x128xbf16>, vector<128x128xbf16>, vector<117x128xf32> -> vector<117x128xf32>
    %133 = arith.addf %128, %132 : vector<117x128xf32>
    %c0_115 = arith.constant 0 : index
    %c0_116 = arith.constant 0 : index
    %134 = vector.load %arg12[%c0_115, %c0_116] : memref<1x128xf32, #tpu.memory_space<vmem>>, vector<1x128xf32>
    %135 = vector.broadcast %134 : vector<1x128xf32> to vector<117x128xf32>
    %136 = arith.addf %133, %135 : vector<117x128xf32>
    %cst_117 = arith.constant 0.000000e+00 : f32
    %137 = vector.broadcast %cst_117 : f32 to vector<117x128xf32>
    %138 = arith.maximumf %136, %137 : vector<117x128xf32>
    %c0_118 = arith.constant 0 : index
    %c0_119 = arith.constant 0 : index
    %139 = vector.load %arg16[%c0_118, %c0_119] : memref<752x128xf32, #tpu.memory_space<vmem>>, vector<117x128xf32>
    tpu.vector_store %arg16[%c0_118, %c0_119], %138 {strides = array<i32>} : memref<752x128xf32, #tpu.memory_space<vmem>>, vector<117x128xf32>,
    %c0_120 = arith.constant 0 : index
    %c0_121 = arith.constant 0 : index
    %140 = tpu.strided_load %arg16[%c0_120, %c0_121] {strides = array<i32: 2, 1>} : memref<752x128xf32, #tpu.memory_space<vmem>>, vector<58x128xf32>
    %c1_122 = arith.constant 1 : index
    %c0_123 = arith.constant 0 : index
    %141 = tpu.strided_load %arg16[%c1_122, %c0_123] {strides = array<i32: 2, 1>} : memref<752x128xf32, #tpu.memory_space<vmem>>, vector<58x128xf32>
    %142 = arith.maximumf %140, %141 : vector<58x128xf32>
    %143 = arith.truncf %142 : vector<58x128xf32> to vector<58x128xbf16>
    %144 = vector.extract_strided_slice %143 {offsets = [0, 0], sizes = [55, 128], strides = [1, 1]} : vector<58x128xbf16> to vector<55x128xbf16>
    %c0_124 = arith.constant 0 : index
    %c0_125 = arith.constant 0 : index
    %c0_126 = arith.constant 0 : index
    %145 = vector.load %arg13[%c0_124, %c0_125, %c0_126] : memref<4x128x128xbf16, #tpu.memory_space<vmem>>, vector<1x128x128xbf16>
    %146 = vector.shape_cast %145 : vector<1x128x128xbf16> to vector<128x128xbf16>
    %cst_127 = arith.constant dense<0.000000e+00> : vector<55x128xf32>
    %147 = tpu.matmul %144, %146, %cst_127 {dimension_numbers = #tpu.dot_dimension_numbers<[1], [0], [0], [1], [0, 0, 1, 1], [], []>} : vector<55x128xbf16>, vector<128x128xbf16>, vector<55x128xf32> -> vector<55x128xf32>
    %148 = vector.extract_strided_slice %143 {offsets = [1, 0], sizes = [55, 128], strides = [1, 1]} : vector<58x128xbf16> to vector<55x128xbf16>
    %c1_128 = arith.constant 1 : index
    %c0_129 = arith.constant 0 : index
    %c0_130 = arith.constant 0 : index
    %149 = vector.load %arg13[%c1_128, %c0_129, %c0_130] : memref<4x128x128xbf16, #tpu.memory_space<vmem>>, vector<1x128x128xbf16>
    %150 = vector.shape_cast %149 : vector<1x128x128xbf16> to vector<128x128xbf16>
    %cst_131 = arith.constant dense<0.000000e+00> : vector<55x128xf32>
    %151 = tpu.matmul %148, %150, %cst_131 {dimension_numbers = #tpu.dot_dimension_numbers<[1], [0], [0], [1], [0, 0, 1, 1], [], []>} : vector<55x128xbf16>, vector<128x128xbf16>, vector<55x128xf32> -> vector<55x128xf32>
    %152 = arith.addf %147, %151 : vector<55x128xf32>
    %153 = vector.extract_strided_slice %143 {offsets = [2, 0], sizes = [55, 128], strides = [1, 1]} : vector<58x128xbf16> to vector<55x128xbf16>
    %c2_132 = arith.constant 2 : index
    %c0_133 = arith.constant 0 : index
    %c0_134 = arith.constant 0 : index
    %154 = vector.load %arg13[%c2_132, %c0_133, %c0_134] : memref<4x128x128xbf16, #tpu.memory_space<vmem>>, vector<1x128x128xbf16>
    %155 = vector.shape_cast %154 : vector<1x128x128xbf16> to vector<128x128xbf16>
    %cst_135 = arith.constant dense<0.000000e+00> : vector<55x128xf32>
    %156 = tpu.matmul %153, %155, %cst_135 {dimension_numbers = #tpu.dot_dimension_numbers<[1], [0], [0], [1], [0, 0, 1, 1], [], []>} : vector<55x128xbf16>, vector<128x128xbf16>, vector<55x128xf32> -> vector<55x128xf32>
    %157 = arith.addf %152, %156 : vector<55x128xf32>
    %158 = vector.extract_strided_slice %143 {offsets = [3, 0], sizes = [55, 128], strides = [1, 1]} : vector<58x128xbf16> to vector<55x128xbf16>
    %c3_136 = arith.constant 3 : index
    %c0_137 = arith.constant 0 : index
    %c0_138 = arith.constant 0 : index
    %159 = vector.load %arg13[%c3_136, %c0_137, %c0_138] : memref<4x128x128xbf16, #tpu.memory_space<vmem>>, vector<1x128x128xbf16>
    %160 = vector.shape_cast %159 : vector<1x128x128xbf16> to vector<128x128xbf16>
    %cst_139 = arith.constant dense<0.000000e+00> : vector<55x128xf32>
    %161 = tpu.matmul %158, %160, %cst_139 {dimension_numbers = #tpu.dot_dimension_numbers<[1], [0], [0], [1], [0, 0, 1, 1], [], []>} : vector<55x128xbf16>, vector<128x128xbf16>, vector<55x128xf32> -> vector<55x128xf32>
    %162 = arith.addf %157, %161 : vector<55x128xf32>
    %c0_140 = arith.constant 0 : index
    %c0_141 = arith.constant 0 : index
    %163 = vector.load %arg14[%c0_140, %c0_141] : memref<1x128xf32, #tpu.memory_space<vmem>>, vector<1x128xf32>
    %164 = vector.broadcast %163 : vector<1x128xf32> to vector<55x128xf32>
    %165 = arith.addf %162, %164 : vector<55x128xf32>
    %cst_142 = arith.constant 0.000000e+00 : f32
    %166 = vector.broadcast %cst_142 : f32 to vector<55x128xf32>
    %167 = arith.maximumf %165, %166 : vector<55x128xf32>
    %c0_143 = arith.constant 0 : index
    %c0_144 = arith.constant 0 : index
    %168 = vector.load %arg16[%c0_143, %c0_144] : memref<752x128xf32, #tpu.memory_space<vmem>>, vector<55x128xf32>
    tpu.vector_store %arg16[%c0_143, %c0_144], %167 {strides = array<i32>} : memref<752x128xf32, #tpu.memory_space<vmem>>, vector<55x128xf32>,
    %c0_145 = arith.constant 0 : index
    %c0_146 = arith.constant 0 : index
    %169 = tpu.strided_load %arg16[%c0_145, %c0_146] {strides = array<i32: 2, 1>} : memref<752x128xf32, #tpu.memory_space<vmem>>, vector<27x128xf32>
    %c1_147 = arith.constant 1 : index
    %c0_148 = arith.constant 0 : index
    %170 = tpu.strided_load %arg16[%c1_147, %c0_148] {strides = array<i32: 2, 1>} : memref<752x128xf32, #tpu.memory_space<vmem>>, vector<27x128xf32>
    %171 = arith.maximumf %169, %170 : vector<27x128xf32>
    %c0_149 = arith.constant 0 : index
    %c0_150 = arith.constant 0 : index
    %c0_151 = arith.constant 0 : index
    %172 = vector.load %arg15[%c0_149, %c0_150, %c0_151] : memref<1x32x128xf32, #tpu.memory_space<vmem>>, vector<1x5x128xf32>
    %173 = vector.shape_cast %172 : vector<1x5x128xf32> to vector<5x128xf32>
    %174 = vector.shape_cast %90 : vector<5x128xf32> to vector<1x5x128xf32>
    tpu.vector_store %arg15[%c0_149, %c0_150, %c0_151], %174 {strides = array<i32>} : memref<1x32x128xf32, #tpu.memory_space<vmem>>, vector<1x5x128xf32>,
    %c0_152 = arith.constant 0 : index
    %c5_153 = arith.constant 5 : index
    %c0_154 = arith.constant 0 : index
    %175 = vector.load %arg15[%c0_152, %c5_153, %c0_154] : memref<1x32x128xf32, #tpu.memory_space<vmem>>, vector<1x27x128xf32>
    %176 = vector.shape_cast %175 : vector<1x27x128xf32> to vector<27x128xf32>
    %177 = vector.shape_cast %171 : vector<27x128xf32> to vector<1x27x128xf32>
    tpu.vector_store %arg15[%c0_152, %c5_153, %c0_154], %177 {strides = array<i32>} : memref<1x32x128xf32, #tpu.memory_space<vmem>>, vector<1x27x128xf32>,
    return
  }
  func.func @transform_0(%arg0: i32) -> (i32, i32, i32) {
    %c0_i32 = arith.constant 0 : i32
    %c0_i32_0 = arith.constant 0 : i32
    %c0_i32_1 = arith.constant 0 : i32
    return %arg0, %c0_i32, %c0_i32_0 : i32, i32, i32
  }
  func.func @transform_1(%arg0: i32) -> (i32, i32) {
    %c0_i32 = arith.constant 0 : i32
    %c0_i32_0 = arith.constant 0 : i32
    %c0_i32_1 = arith.constant 0 : i32
    return %c0_i32, %c0_i32_0 : i32, i32
  }
  func.func @transform_2(%arg0: i32) -> (i32, i32) {
    %c0_i32 = arith.constant 0 : i32
    %c0_i32_0 = arith.constant 0 : i32
    %c0_i32_1 = arith.constant 0 : i32
    return %c0_i32, %c0_i32_0 : i32, i32
  }
  func.func @transform_3(%arg0: i32) -> (i32, i32, i32) {
    %c0_i32 = arith.constant 0 : i32
    %c0_i32_0 = arith.constant 0 : i32
    %c0_i32_1 = arith.constant 0 : i32
    %c0_i32_2 = arith.constant 0 : i32
    return %c0_i32, %c0_i32_0, %c0_i32_1 : i32, i32, i32
  }
  func.func @transform_4(%arg0: i32) -> (i32, i32) {
    %c0_i32 = arith.constant 0 : i32
    %c0_i32_0 = arith.constant 0 : i32
    %c0_i32_1 = arith.constant 0 : i32
    return %c0_i32, %c0_i32_0 : i32, i32
  }
  func.func @transform_5(%arg0: i32) -> (i32, i32, i32) {
    %c0_i32 = arith.constant 0 : i32
    %c0_i32_0 = arith.constant 0 : i32
    %c0_i32_1 = arith.constant 0 : i32
    %c0_i32_2 = arith.constant 0 : i32
    return %c0_i32, %c0_i32_0, %c0_i32_1 : i32, i32, i32
  }
  func.func @transform_6(%arg0: i32) -> (i32, i32) {
    %c0_i32 = arith.constant 0 : i32
    %c0_i32_0 = arith.constant 0 : i32
    %c0_i32_1 = arith.constant 0 : i32
    return %c0_i32, %c0_i32_0 : i32, i32
  }
  func.func @transform_7(%arg0: i32) -> (i32, i32, i32) {
    %c0_i32 = arith.constant 0 : i32
    %c0_i32_0 = arith.constant 0 : i32
    %c0_i32_1 = arith.constant 0 : i32
    return %arg0, %c0_i32, %c0_i32_0 : i32, i32, i32
  }
  func.func @transform_8(%arg0: i32) -> (i32, i32) {
    %c0_i32 = arith.constant 0 : i32
    %c0_i32_0 = arith.constant 0 : i32
    %c0_i32_1 = arith.constant 0 : i32
    return %c0_i32, %c0_i32_0 : i32, i32
  }
  func.func @transform_9(%arg0: i32) -> (i32, i32) {
    %c0_i32 = arith.constant 0 : i32
    %c0_i32_0 = arith.constant 0 : i32
    %c0_i32_1 = arith.constant 0 : i32
    return %c0_i32, %c0_i32_0 : i32, i32
  }
  func.func @transform_10(%arg0: i32) -> (i32, i32, i32) {
    %c0_i32 = arith.constant 0 : i32
    %c0_i32_0 = arith.constant 0 : i32
    %c0_i32_1 = arith.constant 0 : i32
    %c0_i32_2 = arith.constant 0 : i32
    return %c0_i32, %c0_i32_0, %c0_i32_1 : i32, i32, i32
  }
  func.func @transform_11(%arg0: i32) -> (i32, i32) {
    %c0_i32 = arith.constant 0 : i32
    %c0_i32_0 = arith.constant 0 : i32
    %c0_i32_1 = arith.constant 0 : i32
    return %c0_i32, %c0_i32_0 : i32, i32
  }
  func.func @transform_12(%arg0: i32) -> (i32, i32, i32) {
    %c0_i32 = arith.constant 0 : i32
    %c0_i32_0 = arith.constant 0 : i32
    %c0_i32_1 = arith.constant 0 : i32
    %c0_i32_2 = arith.constant 0 : i32
    return %c0_i32, %c0_i32_0, %c0_i32_1 : i32, i32, i32
  }
  func.func @transform_13(%arg0: i32) -> (i32, i32) {
    %c0_i32 = arith.constant 0 : i32
    %c0_i32_0 = arith.constant 0 : i32
    %c0_i32_1 = arith.constant 0 : i32
    return %c0_i32, %c0_i32_0 : i32, i32
  }
  func.func @transform_14(%arg0: i32) -> (i32, i32, i32) {
    %c0_i32 = arith.constant 0 : i32
    %c0_i32_0 = arith.constant 0 : i32
    %c0_i32_1 = arith.constant 0 : i32
    return %arg0, %c0_i32, %c0_i32_0 : i32, i32, i32
  }
}

module attributes {stable_mosaic.version = 11 : i64} {
  func.func @_fc_softmax_kernel(%arg0: i32, %arg1: memref<2x4096xf32, #tpu.memory_space<vmem>>, %arg2: memref<4096x128xbf16, #tpu.memory_space<vmem>>, %arg3: memref<1x128xf32, #tpu.memory_space<vmem>>, %arg4: memref<2x128xf32, #tpu.memory_space<vmem>>) attributes {dimension_semantics = [#tpu.dimension_semantics<arbitrary>], iteration_bounds = array<i64: 1>, scalar_prefetch = 0 : i64, scratch_operands = 0 : i64, tpu.core_type = #tpu.core_type<tc>, window_params = [{pipeline_mode = #tpu.pipeline_mode<synchronous>, transform_indices = @transform_0, window_bounds = array<i64: 2, 4096>}, {pipeline_mode = #tpu.pipeline_mode<synchronous>, transform_indices = @transform_1, window_bounds = array<i64: 4096, 128>}, {pipeline_mode = #tpu.pipeline_mode<synchronous>, transform_indices = @transform_2, window_bounds = array<i64: 1, 128>}, {pipeline_mode = #tpu.pipeline_mode<synchronous>, transform_indices = @transform_3, window_bounds = array<i64: 2, 128>}]} {
    %c0 = arith.constant 0 : index
    %c0_0 = arith.constant 0 : index
    %0 = vector.load %arg1[%c0, %c0_0] : memref<2x4096xf32, #tpu.memory_space<vmem>>, vector<2x4096xf32>
    %1 = arith.truncf %0 : vector<2x4096xf32> to vector<2x4096xbf16>
    %c0_1 = arith.constant 0 : index
    %c0_2 = arith.constant 0 : index
    %2 = vector.load %arg2[%c0_1, %c0_2] : memref<4096x128xbf16, #tpu.memory_space<vmem>>, vector<4096x128xbf16>
    %cst = arith.constant dense<0.000000e+00> : vector<2x128xf32>
    %3 = tpu.matmul %1, %2, %cst {dimension_numbers = #tpu.dot_dimension_numbers<[1], [0], [0], [1], [0, 0, 1, 1], [], []>} : vector<2x4096xbf16>, vector<4096x128xbf16>, vector<2x128xf32> -> vector<2x128xf32>
    %c0_3 = arith.constant 0 : index
    %c0_4 = arith.constant 0 : index
    %4 = vector.load %arg3[%c0_3, %c0_4] : memref<1x128xf32, #tpu.memory_space<vmem>>, vector<1x128xf32>
    %5 = vector.broadcast %4 : vector<1x128xf32> to vector<2x128xf32>
    %6 = arith.addf %3, %5 : vector<2x128xf32>
    %cst_5 = arith.constant dense<0xFF800000> : vector<2xf32>
    %7 = vector.multi_reduction <maximumf>, %6, %cst_5 [1] : vector<2x128xf32> to vector<2xf32>
    %8 = vector.shape_cast %7 : vector<2xf32> to vector<2x1xf32>
    %9 = vector.broadcast %8 : vector<2x1xf32> to vector<2x128xf32>
    %10 = arith.subf %6, %9 : vector<2x128xf32>
    %11 = math.exp %10 : vector<2x128xf32>
    %cst_6 = arith.constant dense<0.000000e+00> : vector<2xf32>
    %12 = vector.multi_reduction <add>, %11, %cst_6 [1] : vector<2x128xf32> to vector<2xf32>
    %13 = vector.shape_cast %12 : vector<2xf32> to vector<2x1xf32>
    %14 = vector.broadcast %13 : vector<2x1xf32> to vector<2x128xf32>
    %15 = arith.divf %11, %14 : vector<2x128xf32>
    %c0_7 = arith.constant 0 : index
    %c0_8 = arith.constant 0 : index
    %16 = vector.load %arg4[%c0_7, %c0_8] : memref<2x128xf32, #tpu.memory_space<vmem>>, vector<2x128xf32>
    tpu.vector_store %arg4[%c0_7, %c0_8], %15 {strides = array<i32>} : memref<2x128xf32, #tpu.memory_space<vmem>>, vector<2x128xf32>,
    return
  }
  func.func @transform_0(%arg0: i32) -> (i32, i32) {
    %c0_i32 = arith.constant 0 : i32
    %c0_i32_0 = arith.constant 0 : i32
    %c0_i32_1 = arith.constant 0 : i32
    return %c0_i32, %c0_i32_0 : i32, i32
  }
  func.func @transform_1(%arg0: i32) -> (i32, i32) {
    %c0_i32 = arith.constant 0 : i32
    %c0_i32_0 = arith.constant 0 : i32
    %c0_i32_1 = arith.constant 0 : i32
    return %c0_i32, %c0_i32_0 : i32, i32
  }
  func.func @transform_2(%arg0: i32) -> (i32, i32) {
    %c0_i32 = arith.constant 0 : i32
    %c0_i32_0 = arith.constant 0 : i32
    %c0_i32_1 = arith.constant 0 : i32
    return %c0_i32, %c0_i32_0 : i32, i32
  }
  func.func @transform_3(%arg0: i32) -> (i32, i32) {
    %c0_i32 = arith.constant 0 : i32
    %c0_i32_0 = arith.constant 0 : i32
    %c0_i32_1 = arith.constant 0 : i32
    return %c0_i32, %c0_i32_0 : i32, i32
  }
}

</mosaic_0001>

<bundles_post_ra>
// kernel: premsnn_forward.3
= control target key start
LH: loop header
LB: loop body
LE: loop exit
PB: predicated region body
PF: predicated region fallthrough
CT: control target
= control target key end

     0   :  { %v36_v28 = vlaneseq  ;;  %v3857_v36 = vmov 1983009808   ;;  %s4704_s0 = inlined_call_operand.vmem [shape: f32[2,4096], index: 0, kind: input, shape index: {}]   ;;  %s4705_s1 = inlined_call_operand.vmem [shape: bf16[4096,128], index: 1, kind: input, shape index: {}]   ;;  %s4706_s2 = inlined_call_operand.vmem [shape: f32[1,128], index: 2, kind: input, shape index: {}]   ;;  %s4707_s3 = inlined_call_operand.hbm [shape: f32[2,128], index: 3, kind: output, shape index: {}]  }
   0x1   :  { %v3565_v0 = vld [vmem:[%s4705_s1 + $0x40] sm:$0xff]   ;;  %v3569_v4 = vld [vmem:[%s4705_s1 + $0x48] sm:$0xff]   ;;  %v3573_v8 = vld [vmem:[%s4705_s1 + $0x50] sm:$0xff]   ;;  %v34_v37 = vunpack.c.l.s4 %v3857_v36 }
   0x2   :  { %v3566_v1 = vld [vmem:[%s4705_s1 + $0xc0] sm:$0xff]   ;;  %3211 = vmatprep.subr.bf16.mxu0 %v3565_v0  ;;  %v3570_v5 = vld [vmem:[%s4705_s1 + $0xc8] sm:$0xff]   ;;  %v3574_v9 = vld [vmem:[%s4705_s1 + $0xd0] sm:$0xff]   ;;  %v37_v33 = vshrl.u32 %v36_v28, 7 }
   0x3   :  { %v3567_v2 = vld [vmem:[%s4705_s1] sm:$0xff]   ;;  %3233 = vmatprep.subr.bf16.mxu1 %v3566_v1  ;;  %v3571_v6 = vld [vmem:[%s4705_s1 + $0x8] sm:$0xff]   ;;  %v3575_v10 = vld [vmem:[%s4705_s1 + $0x10] sm:$0xff]   ;;  %v35_v39 = vunpack.c.0.s8 %v34_v37 }
   0x4   :  { %v3568_v3 = vld [vmem:[%s4705_s1 + $0x80] sm:$0xff]   ;;  %3212 = vmatpush3.bf16.msra.mxu0 %v3567_v2  ;;  %v3572_v7 = vld [vmem:[%s4705_s1 + $0x88] sm:$0xff]   ;;  %v3576_v11 = vld [vmem:[%s4705_s1 + $0x90] sm:$0xff]  }
   0x5   :  { %3234 = vmatpush3.bf16.msra.mxu1 %v3568_v3  ;;  %3213 = vmatprep.subr.bf16.mxu0 %v3569_v4  ;;  %v3577_v12 = vld [vmem:[%s4705_s1 + $0x58] sm:$0xff]   ;;  %v3581_v16 = vld [vmem:[%s4705_s1 + $0x60] sm:$0xff]   ;;  %v3585_v20 = vld [vmem:[%s4705_s1 + $0x68] sm:$0xff]   ;;  %v3984_v41 = vsub.s32 %v35_v39, %v37_v33 }
   0x6   :  { %3235 = vmatprep.subr.bf16.mxu1 %v3570_v5  ;;  %v3578_v13 = vld [vmem:[%s4705_s1 + $0xd8] sm:$0xff]   ;;  %v3582_v17 = vld [vmem:[%s4705_s1 + $0xe0] sm:$0xff]   ;;  %v3586_v21 = vld [vmem:[%s4705_s1 + $0xe8] sm:$0xff]  }
   0x7   :  { %v3579_v14 = vld [vmem:[%s4705_s1 + $0x18] sm:$0xff]   ;;  %v3583_v18 = vld [vmem:[%s4705_s1 + $0x20] sm:$0xff]   ;;  %v3587_v22 = vld [vmem:[%s4705_s1 + $0x28] sm:$0xff]  }
   0x8   :  { %3214 = vmatpush3.bf16.msra.mxu0 %v3571_v6  ;;  %v3580_v15 = vld [vmem:[%s4705_s1 + $0x98] sm:$0xff]   ;;  %v3584_v19 = vld [vmem:[%s4705_s1 + $0xa0] sm:$0xff]   ;;  %v3588_v23 = vld [vmem:[%s4705_s1 + $0xa8] sm:$0xff]  }
   0x9   :  { %3236 = vmatpush3.bf16.msra.mxu1 %v3572_v7  ;;  %3215 = vmatprep.subr.bf16.mxu0 %v3573_v8  ;;  %v3589_v24 = vld [vmem:[%s4705_s1 + $0x70] sm:$0xff]   ;;  %v3593_v29 = vld [vmem:[%s4705_s1 + $0x78] sm:$0xff]   ;;  %v16_v34 = vld [vmem:[%s4704_s0] sm:$0xff] }
   0xa   :  { %3237 = vmatprep.subr.bf16.mxu1 %v3574_v9  ;;  %v3590_v25 = vld [vmem:[%s4705_s1 + $0xf0] sm:$0xff]   ;;  %v3594_v30 = vld [vmem:[%s4705_s1 + $0xf8] sm:$0xff]   ;;  %v3598_v35 = vld [vmem:[%s4705_s1 + $0x140] sm:$0xff]   ;;  %v32_v40 = vcombine.high %v16_v34, %v16_v34  ;;  %v39_v42 = vrot.slane %v16_v34, %v3984_v41 }
   0xb   :  { %v3591_v26 = vld [vmem:[%s4705_s1 + $0x30] sm:$0xff]   ;;  %v3595_v31 = vld [vmem:[%s4705_s1 + $0x38] sm:$0xff]   ;;  %v3599_v38 = vld [vmem:[%s4705_s1 + $0x1c0] sm:$0xff]  }
   0xc   :  { %3216 = vmatpush3.bf16.msra.mxu0 %v3575_v10  ;;  %v3592_v27 = vld [vmem:[%s4705_s1 + $0xb0] sm:$0xff]   ;;  %v3596_v32 = vld [vmem:[%s4705_s1 + $0xb8] sm:$0xff]   ;;  %v46_v43 = vrot.slane %v32_v40, %v3984_v41  ;;  %v47_v44 = vcombine.high %v39_v42, %v39_v42  ;;  %v3600_v46 = vld [vmem:[%s4705_s1 + $0x100] sm:$0xff]   ;;  %v200_v47 = vpack.c.bf16 %v39_v42, %v39_v42 }
   0xd   :  { %3238 = vmatpush3.bf16.msra.mxu1 %v3576_v11  ;;  %3217 = vmatprep.subr.bf16.mxu0 %v3577_v12  ;;  %v3601_v49 = vld [vmem:[%s4705_s1 + $0x180] sm:$0xff]   ;;  %v3602_v52 = vld [vmem:[%s4705_s1 + $0x148] sm:$0xff]   ;;  %v3606_v56 = vld [vmem:[%s4705_s1 + $0x150] sm:$0xff]  }
   0xe   :  { %3239 = vmatprep.subr.bf16.mxu1 %v3578_v13  ;;  %v48_v45 = vcombine.high %v46_v43, %v46_v43  ;;  %v202_v48 = vpack.c.bf16 %v46_v43, %v46_v43  ;;  %v201_v50 = vpack.c.bf16 %v47_v44, %v47_v44  ;;  %v3603_v53 = vld [vmem:[%s4705_s1 + $0x1c8] sm:$0xff]   ;;  %v3607_v57 = vld [vmem:[%s4705_s1 + $0x1d0] sm:$0xff]   ;;  %v3610_v60 = vld [vmem:[%s4705_s1 + $0x158] sm:$0xff]  }
   0xf   :  { %v3604_v54 = vld [vmem:[%s4705_s1 + $0x108] sm:$0xff]   ;;  %v3608_v58 = vld [vmem:[%s4705_s1 + $0x110] sm:$0xff]   ;;  %v3611_v61 = vld [vmem:[%s4705_s1 + $0x1d8] sm:$0xff]  }
  0x10   :  { %3218 = vmatpush3.bf16.msra.mxu0 %v3579_v14  ;;  %v203_v51 = vpack.c.bf16 %v48_v45, %v48_v45  ;;  %2319 = vmatprep.mubr.bf16.mxu0 %v201_v50  ;;  %v3605_v55 = vld [vmem:[%s4705_s1 + $0x188] sm:$0xff]   ;;  %v3609_v59 = vld [vmem:[%s4705_s1 + $0x190] sm:$0xff]   ;;  %v3612_v62 = vld [vmem:[%s4705_s1 + $0x118] sm:$0xff]  }
  0x11   :  { %3240 = vmatpush3.bf16.msra.mxu1 %v3580_v15  ;;  %3219 = vmatprep.subr.bf16.mxu0 %v3581_v16  ;;  %v3613_v63 = vld [vmem:[%s4705_s1 + $0x198] sm:$0xff]   ;;  %v3614_v0 = vld [vmem:[%s4705_s1 + $0x160] sm:$0xff]   ;;  %v3618_v4 = vld [vmem:[%s4705_s1 + $0x168] sm:$0xff]  }
  0x12   :  { %3241 = vmatprep.subr.bf16.mxu1 %v3582_v17  ;;  %2359 = vmatprep.mubr.bf16.mxu1 %v203_v51  ;;  %v3615_v1 = vld [vmem:[%s4705_s1 + $0x1e0] sm:$0xff]   ;;  %v3619_v5 = vld [vmem:[%s4705_s1 + $0x1e8] sm:$0xff]   ;;  %v3622_v8 = vld [vmem:[%s4705_s1 + $0x170] sm:$0xff]  }
  0x13   :  { %v3616_v2 = vld [vmem:[%s4705_s1 + $0x120] sm:$0xff]   ;;  %v3620_v6 = vld [vmem:[%s4705_s1 + $0x128] sm:$0xff]   ;;  %v3623_v9 = vld [vmem:[%s4705_s1 + $0x1f0] sm:$0xff]  }
  0x14   :  { %3220 = vmatpush3.bf16.msra.mxu0 %v3583_v18  ;;  %v3617_v3 = vld [vmem:[%s4705_s1 + $0x1a0] sm:$0xff]   ;;  %v3621_v7 = vld [vmem:[%s4705_s1 + $0x1a8] sm:$0xff]   ;;  %v3624_v11 = vld [vmem:[%s4705_s1 + $0x130] sm:$0xff]  }
  0x15   :  { %3242 = vmatpush3.bf16.msra.mxu1 %v3584_v19  ;;  %3221 = vmatprep.subr.bf16.mxu0 %v3585_v20  ;;  %v17_v10 = vld [vmem:[%s4704_s0 + $0x8] sm:$0xff]  ;;  %v3625_v14 = vld [vmem:[%s4705_s1 + $0x1b0] sm:$0xff]   ;;  %v3626_v15 = vld [vmem:[%s4705_s1 + $0x178] sm:$0xff]  }
  0x16   :  { %3243 = vmatprep.subr.bf16.mxu1 %v3586_v21  ;;  %v56_v12 = vrot.slane %v17_v10, %v3984_v41  ;;  %v49_v13 = vcombine.high %v17_v10, %v17_v10  ;;  %v3627_v18 = vld [vmem:[%s4705_s1 + $0x1f8] sm:$0xff]   ;;  %v3638_v33 = vld [vmem:[%s4705_s1 + $0x288] sm:$0xff]   ;;  %v3639_v34 = vld [vmem:[%s4705_s1 + $0x250] sm:$0xff]  }
  0x17   :  { %v3628_v19 = vld [vmem:[%s4705_s1 + $0x138] sm:$0xff]   ;;  %v3641_v36 = vld [vmem:[%s4705_s1 + $0x210] sm:$0xff]   ;;  %v3647_v43 = vld [vmem:[%s4705_s1 + $0x260] sm:$0xff]  }
  0x18   :  { %3222 = vmatpush3.bf16.msra.mxu0 %v3587_v22  ;;  %v64_v16 = vcombine.high %v56_v12, %v56_v12  ;;  %v63_v17 = vrot.slane %v49_v13, %v3984_v41  ;;  %v3629_v22 = vld [vmem:[%s4705_s1 + $0x1b8] sm:$0xff]   ;;  %v3642_v37 = vld [vmem:[%s4705_s1 + $0x290] sm:$0xff]   ;;  %v3648_v44 = vld [vmem:[%s4705_s1 + $0x2e0] sm:$0xff]  }
  0x19   :  { %3244 = vmatpush3.bf16.msra.mxu1 %v3588_v23  ;;  %3223 = vmatprep.subr.bf16.mxu0 %v3589_v24  ;;  %v3631_v24 = vld [vmem:[%s4705_s1 + $0x240] sm:$0xff]   ;;  %v3644_v39 = vld [vmem:[%s4705_s1 + $0x2d8] sm:$0xff]   ;;  %v3654_v50 = vld [vmem:[%s4705_s1 + $0x2a8] sm:$0xff]  }
  0x1a   :  { %3245 = vmatprep.subr.bf16.mxu1 %v3590_v25  ;;  %v205_v20 = vpack.c.bf16 %v64_v16, %v64_v16  ;;  %v65_v21 = vcombine.high %v63_v17, %v63_v17  ;;  %v3632_v25 = vld [vmem:[%s4705_s1 + $0x2c0] sm:$0xff]   ;;  %v206_v28 = vpack.c.bf16 %v63_v17, %v63_v17  ;;  %v3645_v40 = vld [vmem:[%s4705_s1 + $0x218] sm:$0xff]   ;;  %v3655_v51 = vld [vmem:[%s4705_s1 + $0x270] sm:$0xff]  }
  0x1b   :  { %v3646_v42 = vld [vmem:[%s4705_s1 + $0x298] sm:$0xff]   ;;  %v3649_v45 = vld [vmem:[%s4705_s1 + $0x220] sm:$0xff]   ;;  %v3669_v10 = vld [vmem:[%s4705_s1 + $0x3c8] sm:$0xff]  }
  0x1c   :  { %3224 = vmatpush3.bf16.msra.mxu0 %v3591_v26  ;;  %v207_v23 = vpack.c.bf16 %v65_v21, %v65_v21  ;;  %v3633_v26 = vld [vmem:[%s4705_s1 + $0x200] sm:$0xff]   ;;  %v3672_v13 = vld [vmem:[%s4705_s1 + $0x350] sm:$0xff]   ;;  %v3676_v17 = vld [vmem:[%s4705_s1 + $0x358] sm:$0xff]  }
  0x1d   :  { %3246 = vmatpush3.bf16.msra.mxu1 %v3592_v27  ;;  %3225 = vmatprep.subr.bf16.mxu0 %v3593_v29  ;;  %v204_v27 = vpack.c.bf16 %v56_v12, %v56_v12  ;;  %v3634_v29 = vld [vmem:[%s4705_s1 + $0x280] sm:$0xff]   ;;  %v3671_v12 = vld [vmem:[%s4705_s1 + $0x388] sm:$0xff]   ;;  %v3675_v16 = vld [vmem:[%s4705_s1 + $0x390] sm:$0xff]  }
  0x1e   :  { %3247 = vmatprep.subr.bf16.mxu1 %v3594_v30  ;;  %v3635_v30 = vld [vmem:[%s4705_s1 + $0x248] sm:$0xff]   ;;  %v3680_v21 = vld [vmem:[%s4705_s1 + $0x360] sm:$0xff]  }
  0x20   :  { %3226 = vmatpush3.bf16.msra.mxu0 %v3595_v31  ;;  %v3636_v31 = vld [vmem:[%s4705_s1 + $0x2c8] sm:$0xff]  }
  0x21   :  { %3248 = vmatpush3.bf16.msra.mxu1 %v3596_v32  ;;  %3255 = vmatprep.subr.bf16.mxu0 %v3598_v35  ;;  %v3637_v32 = vld [vmem:[%s4705_s1 + $0x208] sm:$0xff]   ;;  %v3640_v35 = vld [vmem:[%s4705_s1 + $0x2d0] sm:$0xff]  }
  0x22   :  { %3277 = vmatprep.subr.bf16.mxu1 %v3599_v38  ;;  %v3643_v38 = vld [vmem:[%s4705_s1 + $0x258] sm:$0xff]  }
  0x23   :  { %2320 = vmatmul.mubr.bf16.vlgmr.msra.gmra.mrb[0].mxu0 %v200_v47  ;;  %v3651_v47 = vld [vmem:[%s4705_s1 + $0x268] sm:$0xff]  }
  0x24   :  { %2360 = vmatmul.mubr.bf16.vlgmr.msra.gmra.mrb[0].mxu1 %v202_v48  ;;  %3256 = vmatpush3.bf16.msra.mxu0 %v3600_v46  ;;  %v3650_v46 = vld [vmem:[%s4705_s1 + $0x2a0] sm:$0xff]   ;;  %v3652_v48 = vld [vmem:[%s4705_s1 + $0x2e8] sm:$0xff]  }
  0x25   :  { %3278 = vmatpush3.bf16.msra.mxu1 %v3601_v49  ;;  %3257 = vmatprep.subr.bf16.mxu0 %v3602_v52  ;;  %v3653_v49 = vld [vmem:[%s4705_s1 + $0x228] sm:$0xff]   ;;  %v3656_v52 = vld [vmem:[%s4705_s1 + $0x2f0] sm:$0xff]  }
  0x26   :  { %3279 = vmatprep.subr.bf16.mxu1 %v3603_v53  ;;  %2399 = vmatprep.mubr.bf16.mxu0 %v205_v20  ;;  %v18_v53 = vld [vmem:[%s4704_s0 + $0x10] sm:$0xff]  ;;  %v3679_v20 = vld [vmem:[%s4705_s1 + $0x398] sm:$0xff]  }
  0x27   :  { %2439 = vmatprep.mubr.bf16.mxu1 %v207_v23  ;;  %v3682_v23 = vld [vmem:[%s4705_s1 + $0x320] sm:$0xff]  }
  0x28   :  { %3258 = vmatpush3.bf16.msra.mxu0 %v3604_v54  ;;  %v3657_v54 = vld [vmem:[%s4705_s1 + $0x230] sm:$0xff]  }
  0x29   :  { %3280 = vmatpush3.bf16.msra.mxu1 %v3605_v55  ;;  %3259 = vmatprep.subr.bf16.mxu0 %v3606_v56  ;;  %v73_v55 = vrot.slane %v18_v53, %v3984_v41  ;;  %v66_v56 = vcombine.high %v18_v53, %v18_v53  ;;  %v3702_v53 = vld [vmem:[%s4705_s1 + $0x4c8] sm:$0xff]  }
  0x2a   :  { %3281 = vmatprep.subr.bf16.mxu1 %v3607_v57  ;;  %v3658_v57 = vld [vmem:[%s4705_s1 + $0x2b0] sm:$0xff]  }
  0x2c   :  { %3260 = vmatpush3.bf16.msra.mxu0 %v3608_v58  ;;  %v3659_v58 = vld [vmem:[%s4705_s1 + $0x278] sm:$0xff]  }
  0x2d   :  { %3282 = vmatpush3.bf16.msra.mxu1 %v3609_v59  ;;  %3261 = vmatprep.subr.bf16.mxu0 %v3610_v60  ;;  %v81_v59 = vcombine.high %v73_v55, %v73_v55  ;;  %v80_v60 = vrot.slane %v66_v56, %v3984_v41  ;;  %v3705_v56 = vld [vmem:[%s4705_s1 + $0x450] sm:$0xff]  }
  0x2e   :  { %3283 = vmatprep.subr.bf16.mxu1 %v3611_v61  ;;  %v3660_v61 = vld [vmem:[%s4705_s1 + $0x2f8] sm:$0xff]  }
  0x30   :  { %3262 = vmatpush3.bf16.msra.mxu0 %v3612_v62  ;;  %v3661_v62 = vld [vmem:[%s4705_s1 + $0x238] sm:$0xff]  }
  0x31   :  { %3284 = vmatpush3.bf16.msra.mxu1 %v3613_v63  ;;  %3263 = vmatprep.subr.bf16.mxu0 %v3614_v0  ;;  %v209_v63 = vpack.c.bf16 %v81_v59, %v81_v59  ;;  %v82_v0 = vcombine.high %v80_v60, %v80_v60  ;;  %v3708_v59 = vld [vmem:[%s4705_s1 + $0x490] sm:$0xff]  }
  0x32   :  { %3285 = vmatprep.subr.bf16.mxu1 %v3615_v1  ;;  %v3662_v1 = vld [vmem:[%s4705_s1 + $0x2b8] sm:$0xff]  }
  0x34   :  { %3264 = vmatpush3.bf16.msra.mxu0 %v3616_v2  ;;  %v211_v2 = vpack.c.bf16 %v82_v0, %v82_v0  ;;  %v3713_v0 = vld [vmem:[%s4705_s1 + $0x460] sm:$0xff]  }
  0x35   :  { %3286 = vmatpush3.bf16.msra.mxu1 %v3617_v3  ;;  %3265 = vmatprep.subr.bf16.mxu0 %v3618_v4  ;;  %v3664_v3 = vld [vmem:[%s4705_s1 + $0x340] sm:$0xff]  }
  0x36   :  { %3287 = vmatprep.subr.bf16.mxu1 %v3619_v5  ;;  %v3665_v4 = vld [vmem:[%s4705_s1 + $0x3c0] sm:$0xff]  }
  0x37   :  { %v3666_v5 = vld [vmem:[%s4705_s1 + $0x300] sm:$0xff]  }
  0x38   :  { %3266 = vmatpush3.bf16.msra.mxu0 %v3620_v6  ;;  %v208_v6 = vpack.c.bf16 %v73_v55, %v73_v55  ;;  %v3704_v55 = vld [vmem:[%s4705_s1 + $0x488] sm:$0xff]  }
  0x39   :  { %3288 = vmatpush3.bf16.msra.mxu1 %v3621_v7  ;;  %3267 = vmatprep.subr.bf16.mxu0 %v3622_v8  ;;  %v210_v7 = vpack.c.bf16 %v80_v60, %v80_v60  ;;  %v3667_v8 = vld [vmem:[%s4705_s1 + $0x380] sm:$0xff]   ;;  %v3709_v60 = vld [vmem:[%s4705_s1 + $0x458] sm:$0xff]  }
  0x3a   :  { %3289 = vmatprep.subr.bf16.mxu1 %v3623_v9  ;;  %v3668_v9 = vld [vmem:[%s4705_s1 + $0x348] sm:$0xff]  }
  0x3c   :  { %3268 = vmatpush3.bf16.msra.mxu0 %v3624_v11  ;;  %v3670_v11 = vld [vmem:[%s4705_s1 + $0x308] sm:$0xff]  }
  0x3d   :  { %3290 = vmatpush3.bf16.msra.mxu1 %v3625_v14  ;;  %3269 = vmatprep.subr.bf16.mxu0 %v3626_v15  ;;  %v3673_v14 = vld [vmem:[%s4705_s1 + $0x3d0] sm:$0xff]  }
  0x3e   :  { %3291 = vmatprep.subr.bf16.mxu1 %v3627_v18  ;;  %v3674_v15 = vld [vmem:[%s4705_s1 + $0x310] sm:$0xff]   ;;  %v3677_v18 = vld [vmem:[%s4705_s1 + $0x3d8] sm:$0xff]  }
  0x40   :  { %3270 = vmatpush3.bf16.msra.mxu0 %v3628_v19  ;;  %v3678_v19 = vld [vmem:[%s4705_s1 + $0x318] sm:$0xff]  }
  0x41   :  { %3292 = vmatpush3.bf16.msra.mxu1 %v3629_v22  ;;  %3299 = vmatprep.subr.bf16.mxu0 %v3631_v24  ;;  %v3681_v22 = vld [vmem:[%s4705_s1 + $0x3e0] sm:$0xff]  }
  0x42   :  { %3321 = vmatprep.subr.bf16.mxu1 %v3632_v25  ;;  %v3683_v24 = vld [vmem:[%s4705_s1 + $0x3a0] sm:$0xff]   ;;  %v3684_v25 = vld [vmem:[%s4705_s1 + $0x368] sm:$0xff]  }
  0x43   :  { %2400 = vmatmul.mubr.bf16.vlgmr.msra.gmra.mrb[4].mxu0 %v204_v27  ;;  %v3686_v27 = vld [vmem:[%s4705_s1 + $0x328] sm:$0xff]  }
  0x44   :  { %2440 = vmatmul.mubr.bf16.vlgmr.msra.gmra.mrb[4].mxu1 %v206_v28  ;;  %3300 = vmatpush3.bf16.msra.mxu0 %v3633_v26  ;;  %v3685_v26 = vld [vmem:[%s4705_s1 + $0x3e8] sm:$0xff]  }
  0x45   :  { %3322 = vmatpush3.bf16.msra.mxu1 %v3634_v29  ;;  %3301 = vmatprep.subr.bf16.mxu0 %v3635_v30  ;;  %v3687_v28 = vld [vmem:[%s4705_s1 + $0x3a8] sm:$0xff]   ;;  %v3688_v29 = vld [vmem:[%s4705_s1 + $0x370] sm:$0xff]  }
  0x46   :  { %3323 = vmatprep.subr.bf16.mxu1 %v3636_v31  ;;  %2479 = vmatprep.mubr.bf16.mxu0 %v209_v63  ;;  %v3689_v30 = vld [vmem:[%s4705_s1 + $0x3f0] sm:$0xff]   ;;  %v3712_v63 = vld [vmem:[%s4705_s1 + $0x498] sm:$0xff]  }
  0x47   :  { %2519 = vmatprep.mubr.bf16.mxu1 %v211_v2  ;;  %v3690_v31 = vld [vmem:[%s4705_s1 + $0x330] sm:$0xff]   ;;  %v3715_v2 = vld [vmem:[%s4705_s1 + $0x420] sm:$0xff]  }
  0x48   :  { %3302 = vmatpush3.bf16.msra.mxu0 %v3637_v32  ;;  %v19_v32 = vld [vmem:[%s4704_s0 + $0x18] sm:$0xff] }
  0x49   :  { %3324 = vmatpush3.bf16.msra.mxu1 %v3638_v33  ;;  %3303 = vmatprep.subr.bf16.mxu0 %v3639_v34  ;;  %v3691_v33 = vld [vmem:[%s4705_s1 + $0x3b0] sm:$0xff]   ;;  %v90_v34 = vrot.slane %v19_v32, %v3984_v41 }
  0x4a   :  { %3325 = vmatprep.subr.bf16.mxu1 %v3640_v35  ;;  %v83_v35 = vcombine.high %v19_v32, %v19_v32  ;;  %v3736_v32 = vld [vmem:[%s4705_s1 + $0x508] sm:$0xff]  }
  0x4c   :  { %3304 = vmatpush3.bf16.msra.mxu0 %v3641_v36  ;;  %v3692_v36 = vld [vmem:[%s4705_s1 + $0x378] sm:$0xff]  }
  0x4d   :  { %3326 = vmatpush3.bf16.msra.mxu1 %v3642_v37  ;;  %3305 = vmatprep.subr.bf16.mxu0 %v3643_v38  ;;  %v3693_v37 = vld [vmem:[%s4705_s1 + $0x3f8] sm:$0xff]   ;;  %v98_v38 = vcombine.high %v90_v34, %v90_v34 }
  0x4e   :  { %3327 = vmatprep.subr.bf16.mxu1 %v3644_v39  ;;  %v97_v39 = vrot.slane %v83_v35, %v3984_v41  ;;  %v3739_v35 = vld [vmem:[%s4705_s1 + $0x5d0] sm:$0xff]  }
  0x50   :  { %3306 = vmatpush3.bf16.msra.mxu0 %v3645_v40  ;;  %v3694_v40 = vld [vmem:[%s4705_s1 + $0x338] sm:$0xff]  }
  0x51   :  { %3328 = vmatpush3.bf16.msra.mxu1 %v3646_v42  ;;  %3307 = vmatprep.subr.bf16.mxu0 %v3647_v43  ;;  %v3695_v42 = vld [vmem:[%s4705_s1 + $0x3b8] sm:$0xff]   ;;  %v213_v43 = vpack.c.bf16 %v98_v38, %v98_v38 }
  0x52   :  { %3329 = vmatprep.subr.bf16.mxu1 %v3648_v44  ;;  %v99_v44 = vcombine.high %v97_v39, %v97_v39  ;;  %v3742_v38 = vld [vmem:[%s4705_s1 + $0x558] sm:$0xff]  }
  0x54   :  { %3308 = vmatpush3.bf16.msra.mxu0 %v3649_v45  ;;  %v3697_v45 = vld [vmem:[%s4705_s1 + $0x440] sm:$0xff]  }
  0x55   :  { %3330 = vmatpush3.bf16.msra.mxu1 %v3650_v46  ;;  %3309 = vmatprep.subr.bf16.mxu0 %v3651_v47  ;;  %v215_v46 = vpack.c.bf16 %v99_v44, %v99_v44  ;;  %v3698_v47 = vld [vmem:[%s4705_s1 + $0x4c0] sm:$0xff]  }
  0x56   :  { %3331 = vmatprep.subr.bf16.mxu1 %v3652_v48  ;;  %v3699_v48 = vld [vmem:[%s4705_s1 + $0x400] sm:$0xff]  }
  0x57   :  { %v3747_v44 = vld [vmem:[%s4705_s1 + $0x5e0] sm:$0xff]  }
  0x58   :  { %3310 = vmatpush3.bf16.msra.mxu0 %v3653_v49  ;;  %v212_v49 = vpack.c.bf16 %v90_v34, %v90_v34  ;;  %v3738_v34 = vld [vmem:[%s4705_s1 + $0x550] sm:$0xff]  }
  0x59   :  { %3332 = vmatpush3.bf16.msra.mxu1 %v3654_v50  ;;  %3311 = vmatprep.subr.bf16.mxu0 %v3655_v51  ;;  %v214_v50 = vpack.c.bf16 %v97_v39, %v97_v39  ;;  %v3700_v51 = vld [vmem:[%s4705_s1 + $0x480] sm:$0xff]   ;;  %v3743_v39 = vld [vmem:[%s4705_s1 + $0x5d8] sm:$0xff]  }
  0x5a   :  { %3333 = vmatprep.subr.bf16.mxu1 %v3656_v52  ;;  %v3701_v52 = vld [vmem:[%s4705_s1 + $0x448] sm:$0xff]  }
  0x5c   :  { %3312 = vmatpush3.bf16.msra.mxu0 %v3657_v54  ;;  %v3703_v54 = vld [vmem:[%s4705_s1 + $0x408] sm:$0xff]  }
  0x5d   :  { %3334 = vmatpush3.bf16.msra.mxu1 %v3658_v57  ;;  %3313 = vmatprep.subr.bf16.mxu0 %v3659_v58  ;;  %v3706_v57 = vld [vmem:[%s4705_s1 + $0x4d0] sm:$0xff]  }
  0x5e   :  { %3335 = vmatprep.subr.bf16.mxu1 %v3660_v61  ;;  %v3707_v58 = vld [vmem:[%s4705_s1 + $0x410] sm:$0xff]   ;;  %v3710_v61 = vld [vmem:[%s4705_s1 + $0x4d8] sm:$0xff]  }
  0x60   :  { %3314 = vmatpush3.bf16.msra.mxu0 %v3661_v62  ;;  %v3711_v62 = vld [vmem:[%s4705_s1 + $0x418] sm:$0xff]  }
  0x61   :  { %3336 = vmatpush3.bf16.msra.mxu1 %v3662_v1  ;;  %3343 = vmatprep.subr.bf16.mxu0 %v3664_v3  ;;  %v3714_v1 = vld [vmem:[%s4705_s1 + $0x4e0] sm:$0xff]  }
  0x62   :  { %3365 = vmatprep.subr.bf16.mxu1 %v3665_v4  ;;  %v3716_v3 = vld [vmem:[%s4705_s1 + $0x4a0] sm:$0xff]   ;;  %v3717_v4 = vld [vmem:[%s4705_s1 + $0x468] sm:$0xff]  }
  0x63   :  { %2480 = vmatmul.mubr.bf16.vlgmr.msra.gmra.mrb[8].mxu0 %v208_v6  ;;  %v3719_v6 = vld [vmem:[%s4705_s1 + $0x428] sm:$0xff]  }
  0x64   :  { %2520 = vmatmul.mubr.bf16.vlgmr.msra.gmra.mrb[8].mxu1 %v210_v7  ;;  %3344 = vmatpush3.bf16.msra.mxu0 %v3666_v5  ;;  %v3718_v5 = vld [vmem:[%s4705_s1 + $0x4e8] sm:$0xff]  }
  0x65   :  { %3366 = vmatpush3.bf16.msra.mxu1 %v3667_v8  ;;  %3345 = vmatprep.subr.bf16.mxu0 %v3668_v9  ;;  %v3720_v7 = vld [vmem:[%s4705_s1 + $0x4a8] sm:$0xff]   ;;  %v3721_v8 = vld [vmem:[%s4705_s1 + $0x470] sm:$0xff]  }
  0x66   :  { %3367 = vmatprep.subr.bf16.mxu1 %v3669_v10  ;;  %2559 = vmatprep.mubr.bf16.mxu0 %v213_v43  ;;  %v3722_v9 = vld [vmem:[%s4705_s1 + $0x4f0] sm:$0xff]   ;;  %v3746_v43 = vld [vmem:[%s4705_s1 + $0x560] sm:$0xff]  }
  0x67   :  { %2599 = vmatprep.mubr.bf16.mxu1 %v215_v46  ;;  %v3723_v10 = vld [vmem:[%s4705_s1 + $0x430] sm:$0xff]   ;;  %v3749_v46 = vld [vmem:[%s4705_s1 + $0x5a0] sm:$0xff]  }
  0x68   :  { %3346 = vmatpush3.bf16.msra.mxu0 %v3670_v11  ;;  %v20_v11 = vld [vmem:[%s4704_s0 + $0x20] sm:$0xff] }
  0x69   :  { %3368 = vmatpush3.bf16.msra.mxu1 %v3671_v12  ;;  %3347 = vmatprep.subr.bf16.mxu0 %v3672_v13  ;;  %v3724_v12 = vld [vmem:[%s4705_s1 + $0x4b0] sm:$0xff]   ;;  %v107_v13 = vrot.slane %v20_v11, %v3984_v41 }
  0x6a   :  { %3369 = vmatprep.subr.bf16.mxu1 %v3673_v14  ;;  %v100_v14 = vcombine.high %v20_v11, %v20_v11  ;;  %v3769_v11 = vld [vmem:[%s4705_s1 + $0x608] sm:$0xff]  }
  0x6c   :  { %3348 = vmatpush3.bf16.msra.mxu0 %v3674_v15  ;;  %v3725_v15 = vld [vmem:[%s4705_s1 + $0x478] sm:$0xff]  }
  0x6d   :  { %3370 = vmatpush3.bf16.msra.mxu1 %v3675_v16  ;;  %3349 = vmatprep.subr.bf16.mxu0 %v3676_v17  ;;  %v3726_v16 = vld [vmem:[%s4705_s1 + $0x4f8] sm:$0xff]   ;;  %v115_v17 = vcombine.high %v107_v13, %v107_v13 }
  0x6e   :  { %3371 = vmatprep.subr.bf16.mxu1 %v3677_v18  ;;  %v114_v18 = vrot.slane %v100_v14, %v3984_v41  ;;  %v3772_v14 = vld [vmem:[%s4705_s1 + $0x6d0] sm:$0xff]  }
  0x70   :  { %3350 = vmatpush3.bf16.msra.mxu0 %v3678_v19  ;;  %v3727_v19 = vld [vmem:[%s4705_s1 + $0x438] sm:$0xff]  }
  0x71   :  { %3372 = vmatpush3.bf16.msra.mxu1 %v3679_v20  ;;  %3351 = vmatprep.subr.bf16.mxu0 %v3680_v21  ;;  %v3728_v20 = vld [vmem:[%s4705_s1 + $0x4b8] sm:$0xff]   ;;  %v217_v21 = vpack.c.bf16 %v115_v17, %v115_v17 }
  0x72   :  { %3373 = vmatprep.subr.bf16.mxu1 %v3681_v22  ;;  %v116_v22 = vcombine.high %v114_v18, %v114_v18  ;;  %v3775_v17 = vld [vmem:[%s4705_s1 + $0x658] sm:$0xff]  }
  0x74   :  { %3352 = vmatpush3.bf16.msra.mxu0 %v3682_v23  ;;  %v3730_v23 = vld [vmem:[%s4705_s1 + $0x540] sm:$0xff]  }
  0x75   :  { %3374 = vmatpush3.bf16.msra.mxu1 %v3683_v24  ;;  %3353 = vmatprep.subr.bf16.mxu0 %v3684_v25  ;;  %v219_v24 = vpack.c.bf16 %v116_v22, %v116_v22  ;;  %v3731_v25 = vld [vmem:[%s4705_s1 + $0x5c0] sm:$0xff]  }
  0x76   :  { %3375 = vmatprep.subr.bf16.mxu1 %v3685_v26  ;;  %v3732_v26 = vld [vmem:[%s4705_s1 + $0x500] sm:$0xff]  }
  0x77   :  { %v3780_v22 = vld [vmem:[%s4705_s1 + $0x6e0] sm:$0xff]  }
  0x78   :  { %3354 = vmatpush3.bf16.msra.mxu0 %v3686_v27  ;;  %v216_v27 = vpack.c.bf16 %v107_v13, %v107_v13  ;;  %v3771_v13 = vld [vmem:[%s4705_s1 + $0x650] sm:$0xff]  }
  0x79   :  { %3376 = vmatpush3.bf16.msra.mxu1 %v3687_v28  ;;  %3355 = vmatprep.subr.bf16.mxu0 %v3688_v29  ;;  %v218_v28 = vpack.c.bf16 %v114_v18, %v114_v18  ;;  %v3733_v29 = vld [vmem:[%s4705_s1 + $0x580] sm:$0xff]   ;;  %v3776_v18 = vld [vmem:[%s4705_s1 + $0x6d8] sm:$0xff]  }
  0x7a   :  { %3377 = vmatprep.subr.bf16.mxu1 %v3689_v30  ;;  %v3734_v30 = vld [vmem:[%s4705_s1 + $0x548] sm:$0xff]  }
  0x7c   :  { %3356 = vmatpush3.bf16.msra.mxu0 %v3690_v31  ;;  %v3735_v31 = vld [vmem:[%s4705_s1 + $0x5c8] sm:$0xff]  }
  0x7d   :  { %3378 = vmatpush3.bf16.msra.mxu1 %v3691_v33  ;;  %3357 = vmatprep.subr.bf16.mxu0 %v3692_v36  ;;  %v3737_v33 = vld [vmem:[%s4705_s1 + $0x588] sm:$0xff]   ;;  %v3740_v36 = vld [vmem:[%s4705_s1 + $0x510] sm:$0xff]  }
  0x7e   :  { %3379 = vmatprep.subr.bf16.mxu1 %v3693_v37  ;;  %v3741_v37 = vld [vmem:[%s4705_s1 + $0x590] sm:$0xff]  }
  0x80   :  { %3358 = vmatpush3.bf16.msra.mxu0 %v3694_v40  ;;  %v3744_v40 = vld [vmem:[%s4705_s1 + $0x518] sm:$0xff]  }
  0x81   :  { %3380 = vmatpush3.bf16.msra.mxu1 %v3695_v42  ;;  %3387 = vmatprep.subr.bf16.mxu0 %v3697_v45  ;;  %v3745_v42 = vld [vmem:[%s4705_s1 + $0x598] sm:$0xff]   ;;  %v3748_v45 = vld [vmem:[%s4705_s1 + $0x520] sm:$0xff]  }
  0x82   :  { %3409 = vmatprep.subr.bf16.mxu1 %v3698_v47  ;;  %v3750_v47 = vld [vmem:[%s4705_s1 + $0x568] sm:$0xff]  }
  0x83   :  { %2560 = vmatmul.mubr.bf16.vlgmr.msra.gmra.mrb[12].mxu0 %v212_v49  ;;  %v3752_v49 = vld [vmem:[%s4705_s1 + $0x528] sm:$0xff]  }
  0x84   :  { %2600 = vmatmul.mubr.bf16.vlgmr.msra.gmra.mrb[12].mxu1 %v214_v50  ;;  %3388 = vmatpush3.bf16.msra.mxu0 %v3699_v48  ;;  %v3751_v48 = vld [vmem:[%s4705_s1 + $0x5e8] sm:$0xff]  }
  0x85   :  { %3410 = vmatpush3.bf16.msra.mxu1 %v3700_v51  ;;  %3389 = vmatprep.subr.bf16.mxu0 %v3701_v52  ;;  %v3753_v50 = vld [vmem:[%s4705_s1 + $0x5a8] sm:$0xff]   ;;  %v3754_v51 = vld [vmem:[%s4705_s1 + $0x570] sm:$0xff]  }
  0x86   :  { %3411 = vmatprep.subr.bf16.mxu1 %v3702_v53  ;;  %2639 = vmatprep.mubr.bf16.mxu0 %v217_v21  ;;  %v3755_v52 = vld [vmem:[%s4705_s1 + $0x5f0] sm:$0xff]   ;;  %v3779_v21 = vld [vmem:[%s4705_s1 + $0x660] sm:$0xff]  }
  0x87   :  { %2679 = vmatprep.mubr.bf16.mxu1 %v219_v24  ;;  %v3756_v53 = vld [vmem:[%s4705_s1 + $0x530] sm:$0xff]   ;;  %v3782_v24 = vld [vmem:[%s4705_s1 + $0x6a0] sm:$0xff]  }
  0x88   :  { %3390 = vmatpush3.bf16.msra.mxu0 %v3703_v54  ;;  %v21_v54 = vld [vmem:[%s4704_s0 + $0x28] sm:$0xff] }
  0x89   :  { %3412 = vmatpush3.bf16.msra.mxu1 %v3704_v55  ;;  %3391 = vmatprep.subr.bf16.mxu0 %v3705_v56  ;;  %v3757_v55 = vld [vmem:[%s4705_s1 + $0x5b0] sm:$0xff]   ;;  %v124_v56 = vrot.slane %v21_v54, %v3984_v41 }
  0x8a   :  { %3413 = vmatprep.subr.bf16.mxu1 %v3706_v57  ;;  %v117_v57 = vcombine.high %v21_v54, %v21_v54  ;;  %v3802_v54 = vld [vmem:[%s4705_s1 + $0x708] sm:$0xff]  }
  0x8c   :  { %3392 = vmatpush3.bf16.msra.mxu0 %v3707_v58  ;;  %v3758_v58 = vld [vmem:[%s4705_s1 + $0x578] sm:$0xff]  }
  0x8d   :  { %3414 = vmatpush3.bf16.msra.mxu1 %v3708_v59  ;;  %3393 = vmatprep.subr.bf16.mxu0 %v3709_v60  ;;  %v3759_v59 = vld [vmem:[%s4705_s1 + $0x5f8] sm:$0xff]   ;;  %v132_v60 = vcombine.high %v124_v56, %v124_v56 }
  0x8e   :  { %3415 = vmatprep.subr.bf16.mxu1 %v3710_v61  ;;  %v131_v61 = vrot.slane %v117_v57, %v3984_v41  ;;  %v3805_v57 = vld [vmem:[%s4705_s1 + $0x7d0] sm:$0xff]  }
  0x90   :  { %3394 = vmatpush3.bf16.msra.mxu0 %v3711_v62  ;;  %v3760_v62 = vld [vmem:[%s4705_s1 + $0x538] sm:$0xff]  }
  0x91   :  { %3416 = vmatpush3.bf16.msra.mxu1 %v3712_v63  ;;  %3395 = vmatprep.subr.bf16.mxu0 %v3713_v0  ;;  %v3761_v63 = vld [vmem:[%s4705_s1 + $0x5b8] sm:$0xff]   ;;  %v221_v0 = vpack.c.bf16 %v132_v60, %v132_v60 }
  0x92   :  { %3417 = vmatprep.subr.bf16.mxu1 %v3714_v1  ;;  %v133_v1 = vcombine.high %v131_v61, %v131_v61  ;;  %v3808_v60 = vld [vmem:[%s4705_s1 + $0x758] sm:$0xff]  }
  0x94   :  { %3396 = vmatpush3.bf16.msra.mxu0 %v3715_v2  ;;  %v3763_v2 = vld [vmem:[%s4705_s1 + $0x640] sm:$0xff]  }
  0x95   :  { %3418 = vmatpush3.bf16.msra.mxu1 %v3716_v3  ;;  %3397 = vmatprep.subr.bf16.mxu0 %v3717_v4  ;;  %v223_v3 = vpack.c.bf16 %v133_v1, %v133_v1  ;;  %v3764_v4 = vld [vmem:[%s4705_s1 + $0x6c0] sm:$0xff]  }
  0x96   :  { %3419 = vmatprep.subr.bf16.mxu1 %v3718_v5  ;;  %v3765_v5 = vld [vmem:[%s4705_s1 + $0x600] sm:$0xff]  }
  0x97   :  { %v3813_v1 = vld [vmem:[%s4705_s1 + $0x7e0] sm:$0xff]  }
  0x98   :  { %3398 = vmatpush3.bf16.msra.mxu0 %v3719_v6  ;;  %v220_v6 = vpack.c.bf16 %v124_v56, %v124_v56  ;;  %v3804_v56 = vld [vmem:[%s4705_s1 + $0x750] sm:$0xff]  }
  0x99   :  { %3420 = vmatpush3.bf16.msra.mxu1 %v3720_v7  ;;  %3399 = vmatprep.subr.bf16.mxu0 %v3721_v8  ;;  %v222_v7 = vpack.c.bf16 %v131_v61, %v131_v61  ;;  %v3766_v8 = vld [vmem:[%s4705_s1 + $0x680] sm:$0xff]   ;;  %v3809_v61 = vld [vmem:[%s4705_s1 + $0x7d8] sm:$0xff]  }
  0x9a   :  { %3421 = vmatprep.subr.bf16.mxu1 %v3722_v9  ;;  %v3767_v9 = vld [vmem:[%s4705_s1 + $0x648] sm:$0xff]  }
  0x9c   :  { %3400 = vmatpush3.bf16.msra.mxu0 %v3723_v10  ;;  %v3768_v10 = vld [vmem:[%s4705_s1 + $0x6c8] sm:$0xff]  }
  0x9d   :  { %3422 = vmatpush3.bf16.msra.mxu1 %v3724_v12  ;;  %3401 = vmatprep.subr.bf16.mxu0 %v3725_v15  ;;  %v3770_v12 = vld [vmem:[%s4705_s1 + $0x688] sm:$0xff]   ;;  %v3773_v15 = vld [vmem:[%s4705_s1 + $0x610] sm:$0xff]  }
  0x9e   :  { %3423 = vmatprep.subr.bf16.mxu1 %v3726_v16  ;;  %v3774_v16 = vld [vmem:[%s4705_s1 + $0x690] sm:$0xff]  }
  0xa0   :  { %3402 = vmatpush3.bf16.msra.mxu0 %v3727_v19  ;;  %v3777_v19 = vld [vmem:[%s4705_s1 + $0x618] sm:$0xff]  }
  0xa1   :  { %3424 = vmatpush3.bf16.msra.mxu1 %v3728_v20  ;;  %3431 = vmatprep.subr.bf16.mxu0 %v3730_v23  ;;  %v3778_v20 = vld [vmem:[%s4705_s1 + $0x698] sm:$0xff]   ;;  %v3781_v23 = vld [vmem:[%s4705_s1 + $0x620] sm:$0xff]  }
  0xa2   :  { %3453 = vmatprep.subr.bf16.mxu1 %v3731_v25  ;;  %v3783_v25 = vld [vmem:[%s4705_s1 + $0x668] sm:$0xff]  }
  0xa3   :  { %2640 = vmatmul.mubr.bf16.vlgmr.msra.gmra.mrb[16].mxu0 %v216_v27  ;;  %v3785_v27 = vld [vmem:[%s4705_s1 + $0x628] sm:$0xff]  }
  0xa4   :  { %2680 = vmatmul.mubr.bf16.vlgmr.msra.gmra.mrb[16].mxu1 %v218_v28  ;;  %3432 = vmatpush3.bf16.msra.mxu0 %v3732_v26  ;;  %v3784_v26 = vld [vmem:[%s4705_s1 + $0x6e8] sm:$0xff]  }
  0xa5   :  { %3454 = vmatpush3.bf16.msra.mxu1 %v3733_v29  ;;  %3433 = vmatprep.subr.bf16.mxu0 %v3734_v30  ;;  %v3786_v28 = vld [vmem:[%s4705_s1 + $0x6a8] sm:$0xff]   ;;  %v3787_v29 = vld [vmem:[%s4705_s1 + $0x670] sm:$0xff]  }
  0xa6   :  { %3455 = vmatprep.subr.bf16.mxu1 %v3735_v31  ;;  %2719 = vmatprep.mubr.bf16.mxu0 %v221_v0  ;;  %v3788_v30 = vld [vmem:[%s4705_s1 + $0x6f0] sm:$0xff]   ;;  %v3812_v0 = vld [vmem:[%s4705_s1 + $0x760] sm:$0xff]  }
  0xa7   :  { %2759 = vmatprep.mubr.bf16.mxu1 %v223_v3  ;;  %v3789_v31 = vld [vmem:[%s4705_s1 + $0x630] sm:$0xff]   ;;  %v3815_v3 = vld [vmem:[%s4705_s1 + $0x7a0] sm:$0xff]  }
  0xa8   :  { %3434 = vmatpush3.bf16.msra.mxu0 %v3736_v32  ;;  %v3790_v32 = vld [vmem:[%s4705_s1 + $0x6b0] sm:$0xff]  }
  0xa9   :  { %3456 = vmatpush3.bf16.msra.mxu1 %v3737_v33  ;;  %3435 = vmatprep.subr.bf16.mxu0 %v3738_v34  ;;  %v22_v33 = vld [vmem:[%s4704_s0 + $0x30] sm:$0xff]  ;;  %v3791_v34 = vld [vmem:[%s4705_s1 + $0x678] sm:$0xff]  }
  0xaa   :  { %3457 = vmatprep.subr.bf16.mxu1 %v3739_v35  ;;  %v141_v35 = vrot.slane %v22_v33, %v3984_v41 }
  0xac   :  { %3436 = vmatpush3.bf16.msra.mxu0 %v3740_v36  ;;  %v134_v36 = vcombine.high %v22_v33, %v22_v33 }
  0xad   :  { %3458 = vmatpush3.bf16.msra.mxu1 %v3741_v37  ;;  %3437 = vmatprep.subr.bf16.mxu0 %v3742_v38  ;;  %v3792_v37 = vld [vmem:[%s4705_s1 + $0x6f8] sm:$0xff]  }
  0xae   :  { %3459 = vmatprep.subr.bf16.mxu1 %v3743_v39  ;;  %v3793_v38 = vld [vmem:[%s4705_s1 + $0x638] sm:$0xff]   ;;  %v149_v39 = vcombine.high %v141_v35, %v141_v35 }
  0xb0   :  { %3438 = vmatpush3.bf16.msra.mxu0 %v3744_v40  ;;  %v148_v40 = vrot.slane %v134_v36, %v3984_v41 }
  0xb1   :  { %3460 = vmatpush3.bf16.msra.mxu1 %v3745_v42  ;;  %3439 = vmatprep.subr.bf16.mxu0 %v3746_v43  ;;  %v3794_v42 = vld [vmem:[%s4705_s1 + $0x6b8] sm:$0xff]   ;;  %v225_v43 = vpack.c.bf16 %v149_v39, %v149_v39 }
  0xb2   :  { %3461 = vmatprep.subr.bf16.mxu1 %v3747_v44  ;;  %v150_v44 = vcombine.high %v148_v40, %v148_v40 }
  0xb4   :  { %3440 = vmatpush3.bf16.msra.mxu0 %v3748_v45  ;;  %v3796_v45 = vld [vmem:[%s4705_s1 + $0x740] sm:$0xff]  }
  0xb5   :  { %3462 = vmatpush3.bf16.msra.mxu1 %v3749_v46  ;;  %3441 = vmatprep.subr.bf16.mxu0 %v3750_v47  ;;  %v3797_v46 = vld [vmem:[%s4705_s1 + $0x7c0] sm:$0xff]   ;;  %v227_v47 = vpack.c.bf16 %v150_v44, %v150_v44 }
  0xb6   :  { %3463 = vmatprep.subr.bf16.mxu1 %v3751_v48  ;;  %v3798_v48 = vld [vmem:[%s4705_s1 + $0x700] sm:$0xff]  }
  0xb8   :  { %3442 = vmatpush3.bf16.msra.mxu0 %v3752_v49  ;;  %v224_v49 = vpack.c.bf16 %v141_v35, %v141_v35 }
  0xb9   :  { %3464 = vmatpush3.bf16.msra.mxu1 %v3753_v50  ;;  %3443 = vmatprep.subr.bf16.mxu0 %v3754_v51  ;;  %v226_v50 = vpack.c.bf16 %v148_v40, %v148_v40  ;;  %v3799_v51 = vld [vmem:[%s4705_s1 + $0x780] sm:$0xff]  }
  0xba   :  { %3465 = vmatprep.subr.bf16.mxu1 %v3755_v52  ;;  %v3800_v52 = vld [vmem:[%s4705_s1 + $0x748] sm:$0xff]  }
  0xbc   :  { %3444 = vmatpush3.bf16.msra.mxu0 %v3756_v53  ;;  %v3801_v53 = vld [vmem:[%s4705_s1 + $0x7c8] sm:$0xff]  }
  0xbd   :  { %3466 = vmatpush3.bf16.msra.mxu1 %v3757_v55  ;;  %3445 = vmatprep.subr.bf16.mxu0 %v3758_v58  ;;  %v3803_v55 = vld [vmem:[%s4705_s1 + $0x788] sm:$0xff]   ;;  %v3806_v58 = vld [vmem:[%s4705_s1 + $0x710] sm:$0xff]  }
  0xbe   :  { %3467 = vmatprep.subr.bf16.mxu1 %v3759_v59  ;;  %v3807_v59 = vld [vmem:[%s4705_s1 + $0x790] sm:$0xff]  }
  0xc0   :  { %3446 = vmatpush3.bf16.msra.mxu0 %v3760_v62  ;;  %v3810_v62 = vld [vmem:[%s4705_s1 + $0x718] sm:$0xff]  }
  0xc1   :  { %3468 = vmatpush3.bf16.msra.mxu1 %v3761_v63  ;;  %3475 = vmatprep.subr.bf16.mxu0 %v3763_v2  ;;  %v3811_v63 = vld [vmem:[%s4705_s1 + $0x798] sm:$0xff]   ;;  %v3814_v2 = vld [vmem:[%s4705_s1 + $0x720] sm:$0xff]  }
  0xc2   :  { %3497 = vmatprep.subr.bf16.mxu1 %v3764_v4  ;;  %v3816_v4 = vld [vmem:[%s4705_s1 + $0x768] sm:$0xff]  }
  0xc3   :  { %2720 = vmatmul.mubr.bf16.vlgmr.msra.gmra.mrb[20].mxu0 %v220_v6  ;;  %v3818_v6 = vld [vmem:[%s4705_s1 + $0x728] sm:$0xff]  }
  0xc4   :  { %2760 = vmatmul.mubr.bf16.vlgmr.msra.gmra.mrb[20].mxu1 %v222_v7  ;;  %3476 = vmatpush3.bf16.msra.mxu0 %v3765_v5  ;;  %v3817_v5 = vld [vmem:[%s4705_s1 + $0x7e8] sm:$0xff]  }
  0xc5   :  { %3498 = vmatpush3.bf16.msra.mxu1 %v3766_v8  ;;  %3477 = vmatprep.subr.bf16.mxu0 %v3767_v9  ;;  %v3819_v7 = vld [vmem:[%s4705_s1 + $0x7a8] sm:$0xff]   ;;  %v3820_v8 = vld [vmem:[%s4705_s1 + $0x770] sm:$0xff]   ;;  %v2954_v9 = vld [vmem:[%s4706_s2] ss:$0 sm:$0xff] }
  0xc6   :  { %3499 = vmatprep.subr.bf16.mxu1 %v3768_v10  ;;  %2799 = vmatprep.mubr.bf16.mxu0 %v225_v43  ;;  %v3821_v10 = vld [vmem:[%s4705_s1 + $0x7f0] sm:$0xff]  }
  0xc7   :  { %2839 = vmatprep.mubr.bf16.mxu1 %v227_v47 }
  0xc8   :  { %3478 = vmatpush3.bf16.msra.mxu0 %v3769_v11 }
  0xc9   :  { %3500 = vmatpush3.bf16.msra.mxu1 %v3770_v12  ;;  %3479 = vmatprep.subr.bf16.mxu0 %v3771_v13  ;;  %v3822_v13 = vld [vmem:[%s4705_s1 + $0x730] sm:$0xff]  }
  0xca   :  { %3501 = vmatprep.subr.bf16.mxu1 %v3772_v14 }
  0xcc   :  { %3480 = vmatpush3.bf16.msra.mxu0 %v3773_v15 }
  0xcd   :  { %3502 = vmatpush3.bf16.msra.mxu1 %v3774_v16  ;;  %3481 = vmatprep.subr.bf16.mxu0 %v3775_v17 }
  0xce   :  { %3503 = vmatprep.subr.bf16.mxu1 %v3776_v18 }
  0xd0   :  { %3482 = vmatpush3.bf16.msra.mxu0 %v3777_v19 }
  0xd1   :  { %3504 = vmatpush3.bf16.msra.mxu1 %v3778_v20  ;;  %3483 = vmatprep.subr.bf16.mxu0 %v3779_v21  ;;  %v3823_v20 = vld [vmem:[%s4705_s1 + $0x7b0] sm:$0xff]   ;;  %v23_v21 = vld [vmem:[%s4704_s0 + $0x38] sm:$0xff] }
  0xd2   :  { %3505 = vmatprep.subr.bf16.mxu1 %v3780_v22 }
  0xd4   :  { %3484 = vmatpush3.bf16.msra.mxu0 %v3781_v23 }
  0xd5   :  { %3506 = vmatpush3.bf16.msra.mxu1 %v3782_v24  ;;  %3485 = vmatprep.subr.bf16.mxu0 %v3783_v25 }
  0xd6   :  { %3507 = vmatprep.subr.bf16.mxu1 %v3784_v26 }
  0xd8   :  { %3486 = vmatpush3.bf16.msra.mxu0 %v3785_v27 }
  0xd9   :  { %3508 = vmatpush3.bf16.msra.mxu1 %v3786_v28  ;;  %3487 = vmatprep.subr.bf16.mxu0 %v3787_v29 }
  0xda   :  { %3509 = vmatprep.subr.bf16.mxu1 %v3788_v30 }
  0xdc   :  { %3488 = vmatpush3.bf16.msra.mxu0 %v3789_v31 }
  0xdd   :  { %3510 = vmatpush3.bf16.msra.mxu1 %v3790_v32  ;;  %3489 = vmatprep.subr.bf16.mxu0 %v3791_v34 }
  0xde   :  { %3511 = vmatprep.subr.bf16.mxu1 %v3792_v37 }
  0xe0   :  { %3490 = vmatpush3.bf16.msra.mxu0 %v3793_v38 }
  0xe1   :  { %3512 = vmatpush3.bf16.msra.mxu1 %v3794_v42  ;;  %3519 = vmatprep.subr.bf16.mxu0 %v3796_v45 }
  0xe2   :  { %3541 = vmatprep.subr.bf16.mxu1 %v3797_v46 }
  0xe3   :  { %2800 = vmatmul.mubr.bf16.vlgmr.msra.gmra.mrb[24].mxu0 %v224_v49 }
  0xe4   :  { %2840 = vmatmul.mubr.bf16.vlgmr.msra.gmra.mrb[24].mxu1 %v226_v50  ;;  %3520 = vmatpush3.bf16.msra.mxu0 %v3798_v48 }
  0xe5   :  { %3542 = vmatpush3.bf16.msra.mxu1 %v3799_v51  ;;  %3521 = vmatprep.subr.bf16.mxu0 %v3800_v52 }
  0xe6   :  { %3543 = vmatprep.subr.bf16.mxu1 %v3801_v53 }
  0xe8   :  { %3522 = vmatpush3.bf16.msra.mxu0 %v3802_v54 }
  0xe9   :  { %3544 = vmatpush3.bf16.msra.mxu1 %v3803_v55  ;;  %3523 = vmatprep.subr.bf16.mxu0 %v3804_v56 }
  0xea   :  { %3545 = vmatprep.subr.bf16.mxu1 %v3805_v57 }
  0xec   :  { %3524 = vmatpush3.bf16.msra.mxu0 %v3806_v58 }
  0xed   :  { %3546 = vmatpush3.bf16.msra.mxu1 %v3807_v59  ;;  %3525 = vmatprep.subr.bf16.mxu0 %v3808_v60 }
  0xee   :  { %3547 = vmatprep.subr.bf16.mxu1 %v3809_v61 }
  0xf0   :  { %3526 = vmatpush3.bf16.msra.mxu0 %v3810_v62 }
  0xf1   :  { %3548 = vmatpush3.bf16.msra.mxu1 %v3811_v63  ;;  %3527 = vmatprep.subr.bf16.mxu0 %v3812_v0 }
  0xf2   :  { %3549 = vmatprep.subr.bf16.mxu1 %v3813_v1 }
  0xf4   :  { %3528 = vmatpush3.bf16.msra.mxu0 %v3814_v2 }
  0xf5   :  { %3550 = vmatpush3.bf16.msra.mxu1 %v3815_v3  ;;  %3529 = vmatprep.subr.bf16.mxu0 %v3816_v4 }
  0xf6   :  { %3551 = vmatprep.subr.bf16.mxu1 %v3817_v5  ;;  %v3227_v11 = vpop.f32.mrb[0].mxu0 }
  0xf7   :  { %v3249_v12 = vpop.f32.mrb[0].mxu1  ;;  %v3228_v14 = vpop.f32.mrb[1].mxu0 }
  0xf8   :  { %v3250_v15 = vpop.f32.mrb[1].mxu1  ;;  %v3229_v16 = vadd.f32 %v3228_v14, %v3227_v11  ;;  %v3230_v18 = vpop.f32.mrb[2].mxu0  ;;  %3530 = vmatpush3.bf16.msra.mxu0 %v3818_v6 }
  0xf9   :  { %v3251_v17 = vadd.f32 %v3250_v15, %v3249_v12  ;;  %v3252_v19 = vpop.f32.mrb[2].mxu1  ;;  %3552 = vmatpush3.bf16.msra.mxu1 %v3819_v7 }
  0xfa   :  { %8 = vsyncpa [#allocation3], 0  ;;  %v3231_v22 = vpop.f32.mrb[3].mxu0  ;;  %v3253_v23 = vpop.f32.mrb[3].mxu1  ;;  %3531 = vmatprep.subr.bf16.mxu0 %v3820_v8  ;;  %3553 = vmatprep.subr.bf16.mxu1 %v3821_v10  ;;  %v3824_v24 = vld [vmem:[%s4705_s1 + $0x778] sm:$0xff]   ;;  %v158_v26 = vrot.slane %v23_v21, %v3984_v41  ;;  %v151_v27 = vcombine.high %v23_v21, %v23_v21  ;;  %v2322_v28 = vadd.f32 %v3229_v16, %v2954_v9  ;;  %vm2927_vm0 = vcmask 1041408  }
  0xfb   :  { %v3825_v25 = vld [vmem:[%s4705_s1 + $0x7f8] sm:$0xff]  }
  0xfc   :  { %v166_v29 = vcombine.high %v158_v26, %v158_v26  ;;  %v165_v30 = vrot.slane %v151_v27, %v3984_v41  ;;  %v2362_v31 = vadd.f32 %v3251_v17, %v2322_v28  ;;  %3532 = vmatpush3.bf16.msra.mxu0 %v3822_v13  ;;  %v3826_v32 = vld [vmem:[%s4705_s1 + $0x738] sm:$0xff]   ;;  %v228_v37 = vpack.c.bf16 %v158_v26, %v158_v26 }
  0xfd   :  { %3554 = vmatpush3.bf16.msra.mxu1 %v3823_v20  ;;  %v3827_v33 = vld [vmem:[%s4705_s1 + $0x7b8] sm:$0xff]   ;;  %3533 = vmatprep.subr.bf16.mxu0 %v3824_v24  ;;  %s3858_s1 = smov [#allocation2]  }
  0xfe   :  { %3555 = vmatprep.subr.bf16.mxu1 %v3825_v25  ;;  %v229_v34 = vpack.c.bf16 %v166_v29, %v166_v29  ;;  %v167_v35 = vcombine.high %v165_v30, %v165_v30  ;;  %v230_v38 = vpack.c.bf16 %v165_v30, %v165_v30  ;;  %s2946_s27 = sshll.u32 %s3858_s1, 4  ;;  %s2947_s27 = int_to_ptr.vmem [resolvable:$true] %s2946_s27 }
  0xff   :  { %s3833_s28 = scalar_lea.vmem %s2947_s27, 32  ;;  %p3838_p1 = scmp.lt.s32.totalorder %s2947_s27, %s2947_s27 }
 0x100   :  { %2879 = vmatprep.mubr.bf16.mxu0 %v229_v34  ;;  %v231_v36 = vpack.c.bf16 %v167_v35, %v167_v35  ;;  %3534 = vmatpush3.bf16.msra.mxu0 %v3826_v32  ;;  %p3834_p0 = scmp.ne.s32.totalorder %s2947_s27, %s3833_s28  ;;  %p3839_p2 = scmp.lt.s32.totalorder %s3833_s28, %s3833_s28 }
 0x101   :  { %3556 = vmatpush3.bf16.msra.mxu1 %v3827_v33 }
 0x102   :  { %2919 = vmatprep.mubr.bf16.mxu1 %v231_v36  ;;  %p3840_p3 = por %p3839_p2, %p3838_p1 }
 0x103   :  { %2880 = vmatmul.mubr.bf16.vlgmr.msra.gmra.mrb[28].mxu0 %v228_v37 }
 0x104   :  { %2920 = vmatmul.mubr.bf16.vlgmr.msra.gmra.mrb[28].mxu1 %v230_v38  ;;  %p3841_p4 = pnand %p3840_p3, %p3834_p0 }
 0x116   :  { %v3271_v41 = vpop.f32.mrb[4].mxu0 }
 0x117   :  { %v3293_v39 = vpop.f32.mrb[4].mxu1  ;;  %v3272_v40 = vpop.f32.mrb[5].mxu0 }
 0x118   :  { %v3294_v42 = vpop.f32.mrb[5].mxu1  ;;  %v3273_v43 = vadd.f32 %v3272_v40, %v3271_v41  ;;  %v3274_v45 = vpop.f32.mrb[6].mxu0 }
 0x119   :  { %v3295_v44 = vadd.f32 %v3294_v42, %v3293_v39  ;;  %v3296_v46 = vpop.f32.mrb[6].mxu1  ;;  %v3275_v47 = vpop.f32.mrb[7].mxu0 }
 0x11a   :  { %v3297_v48 = vpop.f32.mrb[7].mxu1  ;;  %v2402_v49 = vadd.f32 %v3273_v43, %v2362_v31 }
 0x11c   :  { %v2442_v50 = vadd.f32 %v3295_v44, %v2402_v49 }
 0x136   :  { %v3315_v51 = vpop.f32.mrb[8].mxu0 }
 0x137   :  { %v3337_v52 = vpop.f32.mrb[8].mxu1  ;;  %v3316_v53 = vpop.f32.mrb[9].mxu0 }
 0x138   :  { %v3338_v54 = vpop.f32.mrb[9].mxu1  ;;  %v3317_v55 = vadd.f32 %v3316_v53, %v3315_v51  ;;  %v3318_v57 = vpop.f32.mrb[10].mxu0 }
 0x139   :  { %v3339_v56 = vadd.f32 %v3338_v54, %v3337_v52  ;;  %v3340_v58 = vpop.f32.mrb[10].mxu1  ;;  %v3319_v59 = vpop.f32.mrb[11].mxu0 }
 0x13a   :  { %v3341_v60 = vpop.f32.mrb[11].mxu1  ;;  %v2482_v61 = vadd.f32 %v3317_v55, %v2442_v50 }
 0x13c   :  { %v2522_v62 = vadd.f32 %v3339_v56, %v2482_v61 }
 0x156   :  { %v3359_v63 = vpop.f32.mrb[12].mxu0 }
 0x157   :  { %v3381_v0 = vpop.f32.mrb[12].mxu1  ;;  %v3360_v1 = vpop.f32.mrb[13].mxu0 }
 0x158   :  { %v3382_v2 = vpop.f32.mrb[13].mxu1  ;;  %v3361_v3 = vadd.f32 %v3360_v1, %v3359_v63  ;;  %v3362_v5 = vpop.f32.mrb[14].mxu0 }
 0x159   :  { %v3383_v4 = vadd.f32 %v3382_v2, %v3381_v0  ;;  %v3384_v6 = vpop.f32.mrb[14].mxu1  ;;  %v3363_v7 = vpop.f32.mrb[15].mxu0 }
 0x15a   :  { %v3385_v8 = vpop.f32.mrb[15].mxu1  ;;  %v2562_v9 = vadd.f32 %v3361_v3, %v2522_v62 }
 0x15c   :  { %v2602_v10 = vadd.f32 %v3383_v4, %v2562_v9 }
 0x176   :  { %v3403_v11 = vpop.f32.mrb[16].mxu0 }
 0x177   :  { %v3425_v12 = vpop.f32.mrb[16].mxu1  ;;  %v3404_v13 = vpop.f32.mrb[17].mxu0 }
 0x178   :  { %v3426_v14 = vpop.f32.mrb[17].mxu1  ;;  %v3405_v15 = vadd.f32 %v3404_v13, %v3403_v11  ;;  %v3406_v17 = vpop.f32.mrb[18].mxu0 }
 0x179   :  { %v3427_v16 = vadd.f32 %v3426_v14, %v3425_v12  ;;  %v3428_v18 = vpop.f32.mrb[18].mxu1  ;;  %v3407_v19 = vpop.f32.mrb[19].mxu0 }
 0x17a   :  { %v3429_v20 = vpop.f32.mrb[19].mxu1  ;;  %v2642_v21 = vadd.f32 %v3405_v15, %v2602_v10 }
 0x17c   :  { %v2682_v22 = vadd.f32 %v3427_v16, %v2642_v21 }
 0x196   :  { %v3447_v23 = vpop.f32.mrb[20].mxu0 }
 0x197   :  { %v3469_v24 = vpop.f32.mrb[20].mxu1  ;;  %v3448_v25 = vpop.f32.mrb[21].mxu0 }
 0x198   :  { %v3470_v26 = vpop.f32.mrb[21].mxu1  ;;  %v3449_v27 = vadd.f32 %v3448_v25, %v3447_v23  ;;  %v3450_v29 = vpop.f32.mrb[22].mxu0 }
 0x199   :  { %v3471_v28 = vadd.f32 %v3470_v26, %v3469_v24  ;;  %v3472_v30 = vpop.f32.mrb[22].mxu1  ;;  %v3451_v31 = vpop.f32.mrb[23].mxu0 }
 0x19a   :  { %v3473_v32 = vpop.f32.mrb[23].mxu1  ;;  %v2722_v33 = vadd.f32 %v3449_v27, %v2682_v22 }
 0x19c   :  { %v2762_v34 = vadd.f32 %v3471_v28, %v2722_v33 }
 0x1b6   :  { %v3491_v35 = vpop.f32.mrb[24].mxu0 }
 0x1b7   :  { %v3513_v36 = vpop.f32.mrb[24].mxu1  ;;  %v3492_v37 = vpop.f32.mrb[25].mxu0 }
 0x1b8   :  { %v3514_v38 = vpop.f32.mrb[25].mxu1  ;;  %v3493_v41 = vadd.f32 %v3492_v37, %v3491_v35  ;;  %v3494_v40 = vpop.f32.mrb[26].mxu0 }
 0x1b9   :  { %v3515_v39 = vadd.f32 %v3514_v38, %v3513_v36  ;;  %v3516_v42 = vpop.f32.mrb[26].mxu1  ;;  %v3495_v43 = vpop.f32.mrb[27].mxu0 }
 0x1ba   :  { %v3517_v44 = vpop.f32.mrb[27].mxu1  ;;  %v2802_v45 = vadd.f32 %v3493_v41, %v2762_v34 }
 0x1bc   :  { %v2842_v46 = vadd.f32 %v3515_v39, %v2802_v45 }
 0x1d6   :  { %v3535_v47 = vpop.f32.mrb[28].mxu0 }
 0x1d7   :  { %v3557_v48 = vpop.f32.mrb[28].mxu1  ;;  %v3536_v49 = vpop.f32.mrb[29].mxu0 }
 0x1d8   :  { %v3558_v50 = vpop.f32.mrb[29].mxu1  ;;  %v3537_v51 = vadd.f32 %v3536_v49, %v3535_v47  ;;  %v3538_v53 = vpop.f32.mrb[30].mxu0 }
 0x1d9   :  { %v3559_v52 = vadd.f32 %v3558_v50, %v3557_v48  ;;  %v3560_v54 = vpop.f32.mrb[30].mxu1  ;;  %v3539_v55 = vpop.f32.mrb[31].mxu0 }
 0x1da   :  { %v3561_v56 = vpop.f32.mrb[31].mxu1  ;;  %v2882_v57 = vadd.f32 %v3537_v51, %v2842_v46 }
 0x1dc   :  { %v2922_v58 = vadd.f32 %v3559_v52, %v2882_v57 }
 0x1de   :  { %v2928_v59 = vsel %vm2927_vm0, %v2922_v58, -inf }
 0x1df   :  { %2929 = vmax.xlane.f32.xlu0 %v2928_v59 }
 0x26c   :  { %v2930_v60 = vpop.xlane.xlu0 %2929 }
 0x26d   :  { %v2931_v61 = vsub.f32 %v2922_v58, %v2930_v60 }
 0x26f   :  { %v2932_v62 = vmul.f32 1.442695, %v2931_v61 }
 0x271   :  { %3829 = vpow2.f32 %v2932_v62 }
 0x27b   :  { %v3830_v63 = vpop.eup %3829 }
 0x27c   :  { %v2934_v0 = vsel %vm2927_vm0, %v3830_v63, 0.0 }
 0x27d   :  { %2935 = vadd.xlane.f32.xlu0 %v2934_v0 }
 0x30a   :  { %v2936_v1 = vpop.xlane.xlu0 %2935 }
 0x30b   :  { %3831 = vrcp.f32 %v2936_v1 }
 0x315   :  { %v3832_v2 = vpop.eup %3831 }
 0x316   :  { %v2938_v3 = vmul.f32 %v3832_v2, %v3830_v63 }
 0x318   :  { %2939 = vst [vmem:[#allocation2] sm:$0x3] %v2938_v3 }
 0x319   :  { %3844 = shalt.err (!%p3841_p4)
}
 0x31a   :  { %s3845_s4 = scalar_lea.hbm %s4707_s3, 32 }
 0x31b   :  { %p3846_p5 = scmp.ne.s32.totalorder %s4707_s3, %s3845_s4  ;;  %p3849_p6 = scmp.lt.u32.totalorder %s3845_s4, %s4707_s3 }
 0x31d   :  { %p3851_p7 = pnand %p3849_p6, %p3846_p5 }
 0x31f   :  { %3854 = shalt.err (!%p3851_p7)
}
 0x320   :  { %2949 = dma.vmem_to_hbm [thread:$0]  %s2947_s27, 32, %s4707_s3, [#allocation3]  }
 0x321   :  { %3855 = dma.done.wait [#allocation3], 32  }
 0x322   :  { %3856 = vsyncadd [#allocation3], 4294967264 }
 0x323   :  { %2953 = vsyncpa [#allocation3], 1 }

// kernel: premsnn_forward.2
= control target key start
LH: loop header
LB: loop body
LE: loop exit
PB: predicated region body
PF: predicated region fallthrough
CT: control target
= control target key end

     0   :  { %s7937_s29 = smov 0   ;;  %s9371_s0 = inlined_call_operand.vmem [shape: bf16[2,749,8], index: 0, kind: input, shape index: {}]   ;;  %s9372_s1 = inlined_call_operand.vmem [shape: bf16[8,128], index: 1, kind: input, shape index: {}]   ;;  %s9373_s2 = inlined_call_operand.vmem [shape: f32[1,128], index: 2, kind: input, shape index: {}]   ;;  %s9374_s3 = inlined_call_operand.vmem [shape: bf16[6,128,128], index: 3, kind: input, shape index: {}]   ;;  %s9375_s4 = inlined_call_operand.vmem [shape: f32[1,128], index: 4, kind: input, shape index: {}]   ;;  %s9376_s5 = inlined_call_operand.vmem [shape: bf16[2,128,128], index: 5, kind: input, shape index: {}]   ;;  %s9377_s6 = inlined_call_operand.vmem [shape: f32[1,128], index: 6, kind: input, shape index: {}]   ;;  %s9378_s7 = inlined_call_operand.vmem [shape: bf16[2,245,64], index: 7, kind: input, shape index: {}]   ;;  %s9379_s8 = inlined_call_operand.vmem [shape: bf16[64,128], index: 8, kind: input, shape index: {}]   ;;  %s9380_s9 = inlined_call_operand.vmem [shape: f32[1,128], index: 9, kind: input, shape index: {}]   ;;  %s9381_s10 = inlined_call_operand.vmem [shape: bf16[6,128,128], index: 10, kind: input, shape index: {}]   ;;  %s9382_s11 = inlined_call_operand.vmem [shape: f32[1,128], index: 11, kind: input, shape index: {}]   ;;  %s9383_s12 = inlined_call_operand.vmem [shape: bf16[4,128,128], index: 12, kind: input, shape index: {}]   ;;  %s9384_s13 = inlined_call_operand.vmem [shape: f32[1,128], index: 13, kind: input, shape index: {}]   ;;  %s9385_s14 = inlined_call_operand.vmem [shape: f32[2,32,128], index: 14, kind: output, shape index: {}]  }
   0x1 LB: > { %s5958_s30 = sadd.s32 4294967295, %s7858_s29   ;;  %p5962_p0 = scmp.ge.s32.totalorder %s7858_s29, 1  ;;  %s7858_s29 = sphi %s7937_s29, %s24_s29  }
   0x2   : > { %p422_p1 = scmp.lt.s32.totalorder %s7858_s29, 3 }
   0x4   : > { %p423_p2 = pnand %p5962_p0, %p422_p1 }
   0x5   : > { %v583_v0 = vld [vmem:[%s9372_s1] sm:$0xf] (!%p423_p2)  ;;  %vm968_vm0 = vcmask (!%p423_p2), 1043456   ;;  %p473_p3 = scmp.lt.s32.totalorder (!%p423_p2), %s5958_s30, 1  ;;  %v7860_v1 = vmov (!%p423_p2), 0.0   ;;  %vm7861_vm1 = vmmov (!%p423_p2), 0  }
   0x6   : > { %426 = sbr.rel (%p423_p2) target bundleno = 2011 (0x7db), region = 76  ;;  %6790 = vmatprep.subr.bf16.mxu0 (!%p423_p2), %v7860_v1  ;;  %v970_v2 = vsel (!%p423_p2), %vm968_vm0, %v583_v0, 0  ;;  %6792 = vmatprep.mubr.msk.bf16.mxu0 (!%p423_p2), %vm7861_vm1, %v7860_v1  ;;  %vm826_vm2 = vcmask (!%p423_p2), 64512   ;;  %v7682_v29 = vld [vmem:[%s9374_s3 + $0x40] sm:$0xff] (!%p423_p2)   ;;  %v7685_v33 = vld [vmem:[%s9374_s3 + $0x8] sm:$0xff] (!%p423_p2)   ;;  %v7686_v43 = vld [vmem:[%s9374_s3 + $0x10] sm:$0xff] (!%p423_p2)  }
   0x7   : > { %6791 = vmatpush3.bf16.msra.mxu0 (!%p423_p2), %v970_v2  ;;  %v7683_v31 = vld [vmem:[%s9374_s3] sm:$0xff] (!%p423_p2)   ;;  %v7688_v44 = vld [vmem:[%s9374_s3 + $0x18] sm:$0xff] (!%p423_p2)   ;;  %v7691_v55 = vld [vmem:[%s9374_s3 + $0x28] sm:$0xff] (!%p423_p2)   ;;  %vm2075_vm3 = vsmask.f32 (!%p423_p2), 7424  ;;  %vm2408_vm4 = vcmask (!%p423_p2), 1046528  }
   0x8   : > { %6980 = vmatprep.subr.bf16.mxu0 (!%p423_p2), %v7682_v29  ;;  %v8074_v32 = vld [vmem:[%s9373_s2] ss:$0 sm:$0xff] (!%p423_p2)  ;;  %7008 = vmatprep.subr.bf16.mxu1 (!%p423_p2), %v7683_v31  ;;  %v7692_v2 = vld [vmem:[%s9374_s3 + $0x30] sm:$0xff] (!%p423_p2)   ;;  %vm2768_vm5 = vcmask (!%p423_p2), 1045504   ;;  %vm2582_vm6 = vsmask.f32 (!%p423_p2), 6400 }
   0x9   : > { %7009 = vmatpush3.bf16.msra.mxu1 (!%p423_p2), %v7683_v31  ;;  %v7689_v54 = vld [vmem:[%s9374_s3 + $0x20] sm:$0xff] (!%p423_p2)   ;;  %vm2942_vm7 = vsmask.f32 (!%p423_p2), 5376  ;;  %vm3591_vm8 = vcmask (!%p423_p2), 523264  }
   0xa   : > { %7010 = vmatprep.subr.bf16.mxu1 (!%p423_p2), %v7685_v33 }
   0xd   : > { %s9387_s30 = smov (!%p473_p3, %s5958_s30), 1  ;;  %7011 = vmatpush3.bf16.msra.mxu1 %v7685_v33 }
   0xe   : > { %s7628_s17 = smul.u32 376, %s9387_s30  ;;  %7012 = vmatprep.subr.bf16.mxu1 %v7686_v43  ;;  %s6473_s24 = sshll.u32 %s9387_s30, 5 }
   0xf   : > { %s8835_s27 = scalar_lea.vmem %s9385_s14, %s6473_s24 }
  0x10   : > { %s7957_s20 = scalar_lea.vmem %s9371_s0, %s7628_s17 }
  0x11   : > { %v7640_v3 = vld [vmem:[%s7957_s20] sm:$0xff]   ;;  %v7641_v4 = vld [vmem:[%s7957_s20 + $0x8] sm:$0xff]   ;;  %v7642_v5 = vld [vmem:[%s7957_s20 + $0x10] sm:$0xff]   ;;  %7013 = vmatpush3.bf16.msra.mxu1 %v7686_v43 }
  0x12   : > { %6793 = vmatmul.mubr.msk.bf16.vlgmr.msra.gmra.mrb[0].mxu0 %vm826_vm2, %v7640_v3  ;;  %v7643_v6 = vld [vmem:[%s7957_s20 + $0x18] sm:$0xff]   ;;  %v7644_v7 = vld [vmem:[%s7957_s20 + $0x20] sm:$0xff]   ;;  %v7645_v8 = vld [vmem:[%s7957_s20 + $0x28] sm:$0xff]   ;;  %7014 = vmatprep.subr.bf16.mxu1 %v7688_v44 }
  0x13   : > { %6796 = vmatprep.mubr.msk.bf16.mxu0 %vm7861_vm1, %v7860_v1  ;;  %v7646_v9 = vld [vmem:[%s7957_s20 + $0x30] sm:$0xff]   ;;  %v7647_v10 = vld [vmem:[%s7957_s20 + $0x38] sm:$0xff]   ;;  %v7648_v11 = vld [vmem:[%s7957_s20 + $0x40] sm:$0xff]   ;;  %6981 = vmatpush3.bf16.msra.mxu0 %v7682_v29 }
  0x14   : > { %v7649_v12 = vld [vmem:[%s7957_s20 + $0x48] sm:$0xff]   ;;  %v7650_v13 = vld [vmem:[%s7957_s20 + $0x50] sm:$0xff]   ;;  %v7651_v14 = vld [vmem:[%s7957_s20 + $0x58] sm:$0xff]  }
  0x15   : > { %v7652_v15 = vld [vmem:[%s7957_s20 + $0x60] sm:$0xff]   ;;  %v7653_v16 = vld [vmem:[%s7957_s20 + $0x68] sm:$0xff]   ;;  %v7654_v17 = vld [vmem:[%s7957_s20 + $0x70] sm:$0xff]   ;;  %7015 = vmatpush3.bf16.msra.mxu1 %v7688_v44 }
  0x16   : > { %v7655_v18 = vld [vmem:[%s7957_s20 + $0x78] sm:$0xff]   ;;  %v7656_v19 = vld [vmem:[%s7957_s20 + $0x80] sm:$0xff]   ;;  %v7657_v20 = vld [vmem:[%s7957_s20 + $0x88] sm:$0xff]   ;;  %7016 = vmatprep.subr.bf16.mxu1 %v7689_v54 }
  0x17   : > { %v7658_v21 = vld [vmem:[%s7957_s20 + $0x90] sm:$0xff]   ;;  %v7659_v22 = vld [vmem:[%s7957_s20 + $0x98] sm:$0xff]   ;;  %v7660_v23 = vld [vmem:[%s7957_s20 + $0xa0] sm:$0xff]  }
  0x18   : > { %v7661_v24 = vld [vmem:[%s7957_s20 + $0xa8] sm:$0xff]   ;;  %v7662_v25 = vld [vmem:[%s7957_s20 + $0xb0] sm:$0xff]   ;;  %v7663_v26 = vld [vmem:[%s7957_s20 + $0xb8] sm:$0xff]  }
  0x19   : > { %v7664_v27 = vld [vmem:[%s7957_s20 + $0xc0] sm:$0xff]   ;;  %v7665_v28 = vld [vmem:[%s7957_s20 + $0xc8] sm:$0xff]   ;;  %v7666_v30 = vld [vmem:[%s7957_s20 + $0xd0] sm:$0xff]   ;;  %7017 = vmatpush3.bf16.msra.mxu1 %v7689_v54 }
  0x1a   : > { %6797 = vmatmul.mubr.msk.bf16.gmra.mrb[4].mxu0 %vm826_vm2, %v7641_v4  ;;  %v7667_v37 = vld [vmem:[%s7957_s20 + $0xd8] sm:$0xff]   ;;  %v7668_v48 = vld [vmem:[%s7957_s20 + $0xe0] sm:$0xff]   ;;  %v7669_v59 = vld [vmem:[%s7957_s20 + $0xe8] sm:$0xff]   ;;  %7018 = vmatprep.subr.bf16.mxu1 %v7691_v55 }
  0x1b   : > { %6800 = vmatprep.mubr.msk.bf16.mxu0 %vm7861_vm1, %v7860_v1  ;;  %v7670_v3 = vld [vmem:[%s7957_s20 + $0xf0] sm:$0xff]  }
  0x1c   : > { %v7674_v44 = vld [vmem:[%s7957_s20 + $0x110] sm:$0xff]  }
  0x1d   : > { %7019 = vmatpush3.bf16.msra.mxu1 %v7691_v55 }
  0x1e   : > { %7020 = vmatprep.subr.bf16.mxu1 %v7692_v2 }
  0x21   : > { %7021 = vmatpush3.bf16.msra.mxu1 %v7692_v2 }
  0x22   : > { %6801 = vmatmul.mubr.msk.bf16.gmra.mrb[8].mxu0 %vm826_vm2, %v7642_v5  ;;  %v7694_v5 = vld [vmem:[%s9374_s3 + $0x38] sm:$0xff]  }
  0x23   : > { %6804 = vmatprep.mubr.msk.bf16.mxu0 %vm7861_vm1, %v7860_v1  ;;  %7022 = vmatprep.subr.bf16.mxu1 %v7694_v5 }
  0x25   : > { %7023 = vmatpush3.bf16.msra.mxu1 %v7694_v5 }
  0x2a   : > { %6805 = vmatmul.mubr.msk.bf16.gmra.mrb[12].mxu0 %vm826_vm2, %v7643_v6 }
  0x2b   : > { %6808 = vmatprep.mubr.msk.bf16.mxu0 %vm7861_vm1, %v7860_v1 }
  0x32   : > { %6809 = vmatmul.mubr.msk.bf16.gmra.mrb[16].mxu0 %vm826_vm2, %v7644_v7 }
  0x33   : > { %6812 = vmatprep.mubr.msk.bf16.mxu0 %vm7861_vm1, %v7860_v1 }
  0x3a   : > { %6813 = vmatmul.mubr.msk.bf16.gmra.mrb[20].mxu0 %vm826_vm2, %v7645_v8 }
  0x3b   : > { %6816 = vmatprep.mubr.msk.bf16.mxu0 %vm7861_vm1, %v7860_v1 }
  0x42   : > { %6817 = vmatmul.mubr.msk.bf16.gmra.mrb[24].mxu0 %vm826_vm2, %v7646_v9 }
  0x43   : > { %6820 = vmatprep.mubr.msk.bf16.mxu0 %vm7861_vm1, %v7860_v1 }
  0x4a   : > { %6821 = vmatmul.mubr.msk.bf16.gmra.mrb[28].mxu0 %vm826_vm2, %v7647_v10 }
  0x4b   : > { %6824 = vmatprep.mubr.msk.bf16.mxu0 %vm7861_vm1, %v7860_v1 }
  0x52   : > { %6825 = vmatmul.mubr.msk.bf16.gmra.mrb[32].mxu0 %vm826_vm2, %v7648_v11 }
  0x53   : > { %6828 = vmatprep.mubr.msk.bf16.mxu0 %vm7861_vm1, %v7860_v1 }
  0x5a   : > { %6829 = vmatmul.mubr.msk.bf16.gmra.mrb[36].mxu0 %vm826_vm2, %v7649_v12 }
  0x5b   : > { %6832 = vmatprep.mubr.msk.bf16.mxu0 %vm7861_vm1, %v7860_v1 }
  0x62   : > { %6833 = vmatmul.mubr.msk.bf16.gmra.mrb[40].mxu0 %vm826_vm2, %v7650_v13 }
  0x63   : > { %6836 = vmatprep.mubr.msk.bf16.mxu0 %vm7861_vm1, %v7860_v1 }
  0x6a   : > { %6837 = vmatmul.mubr.msk.bf16.gmra.mrb[44].mxu0 %vm826_vm2, %v7651_v14 }
  0x6b   : > { %6840 = vmatprep.mubr.msk.bf16.mxu0 %vm7861_vm1, %v7860_v1 }
  0x72   : > { %6841 = vmatmul.mubr.msk.bf16.gmra.mrb[48].mxu0 %vm826_vm2, %v7652_v15 }
  0x73   : > { %6844 = vmatprep.mubr.msk.bf16.mxu0 %vm7861_vm1, %v7860_v1 }
  0x7a   : > { %6845 = vmatmul.mubr.msk.bf16.gmra.mrb[52].mxu0 %vm826_vm2, %v7653_v16  ;;  %v7671_v16 = vld [vmem:[%s7957_s20 + $0xf8] sm:$0xff]  }
  0x7b   : > { %6848 = vmatprep.mubr.msk.bf16.mxu0 %vm7861_vm1, %v7860_v1 }
  0x82   : > { %6849 = vmatmul.mubr.msk.bf16.gmra.mrb[56].mxu0 %vm826_vm2, %v7654_v17 }
  0x83   : > { %6852 = vmatprep.mubr.msk.bf16.mxu0 %vm7861_vm1, %v7860_v1 }
  0x8a   : > { %6853 = vmatmul.mubr.msk.bf16.gmra.mrb[60].mxu0 %vm826_vm2, %v7655_v18 }
  0x8b   : > { %6856 = vmatprep.mubr.msk.bf16.mxu0 %vm7861_vm1, %v7860_v1 }
  0x92   : > { %6857 = vmatmul.mubr.msk.bf16.gmra.mrb[64].mxu0 %vm826_vm2, %v7656_v19 }
  0x93   : > { %6860 = vmatprep.mubr.msk.bf16.mxu0 %vm7861_vm1, %v7860_v1 }
  0x9a   : > { %6861 = vmatmul.mubr.msk.bf16.gmra.mrb[68].mxu0 %vm826_vm2, %v7657_v20 }
  0x9b   : > { %6864 = vmatprep.mubr.msk.bf16.mxu0 %vm7861_vm1, %v7860_v1 }
  0xa2   : > { %6865 = vmatmul.mubr.msk.bf16.gmra.mrb[72].mxu0 %vm826_vm2, %v7658_v21 }
  0xa3   : > { %6868 = vmatprep.mubr.msk.bf16.mxu0 %vm7861_vm1, %v7860_v1 }
  0xaa   : > { %6869 = vmatmul.mubr.msk.bf16.gmra.mrb[76].mxu0 %vm826_vm2, %v7659_v22  ;;  %v7696_v22 = vld [vmem:[%s9374_s3 + $0x48] sm:$0xff]  }
  0xab   : > { %6872 = vmatprep.mubr.msk.bf16.mxu0 %vm7861_vm1, %v7860_v1  ;;  %6982 = vmatprep.subr.bf16.mxu0 %v7696_v22 }
  0xac   : > { %6983 = vmatpush3.bf16.msra.mxu0 %v7696_v22 }
  0xb2   : > { %6873 = vmatmul.mubr.msk.bf16.gmra.mrb[80].mxu0 %vm826_vm2, %v7660_v23  ;;  %v7672_v23 = vld [vmem:[%s7957_s20 + $0x100] sm:$0xff]  }
  0xb3   : > { %6876 = vmatprep.mubr.msk.bf16.mxu0 %vm7861_vm1, %v7860_v1 }
  0xba   : > { %6877 = vmatmul.mubr.msk.bf16.gmra.mrb[84].mxu0 %vm826_vm2, %v7661_v24 }
  0xbb   : > { %6880 = vmatprep.mubr.msk.bf16.mxu0 %vm7861_vm1, %v7860_v1 }
  0xc2   : > { %6881 = vmatmul.mubr.msk.bf16.gmra.mrb[88].mxu0 %vm826_vm2, %v7662_v25 }
  0xc3   : > { %6884 = vmatprep.mubr.msk.bf16.mxu0 %vm7861_vm1, %v7860_v1 }
  0xca   : > { %6885 = vmatmul.mubr.msk.bf16.gmra.mrb[92].mxu0 %vm826_vm2, %v7663_v26 }
  0xcb   : > { %6888 = vmatprep.mubr.msk.bf16.mxu0 %vm7861_vm1, %v7860_v1 }
  0xd2   : > { %6889 = vmatmul.mubr.msk.bf16.gmra.mrb[96].mxu0 %vm826_vm2, %v7664_v27 }
  0xd3   : > { %6892 = vmatprep.mubr.msk.bf16.mxu0 %vm7861_vm1, %v7860_v1 }
  0xda   : > { %6893 = vmatmul.mubr.msk.bf16.gmra.mrb[100].mxu0 %vm826_vm2, %v7665_v28 }
  0xdb   : > { %6896 = vmatprep.mubr.msk.bf16.mxu0 %vm7861_vm1, %v7860_v1 }
  0xe2   : > { %6897 = vmatmul.mubr.msk.bf16.gmra.mrb[104].mxu0 %vm826_vm2, %v7666_v30 }
  0xe3   : > { %6900 = vmatprep.mubr.msk.bf16.mxu0 %vm7861_vm1, %v7860_v1 }
  0xe5   : > { %v1006_v34 = vpop.f32.mrb[0].mxu0 }
  0xe6   : > { %v1007_v35 = vadd.f32 %v8074_v32, %v1006_v34  ;;  %v6794_v36 = vpop.f32.mrb[1].mxu0 }
  0xe7   : > { %v1009_v38 = vpop.f32.mrb[2].mxu0  ;;  %v7673_v36 = vld [vmem:[%s7957_s20 + $0x108] sm:$0xff]  }
  0xe8   : > { %v1381_v39 = vmax.f32 %v1007_v35, 0.0  ;;  %v1010_v40 = vadd.f32 %v8074_v32, %v1009_v38  ;;  %v6795_v41 = vpop.f32.mrb[3].mxu0 }
  0xea   : > { %1475 = vst [vmem:[#allocation2] sm:$0xff] %v1381_v39  ;;  %v1382_v42 = vmax.f32 %v1010_v40, 0.0  ;;  %6901 = vmatmul.mubr.msk.bf16.gmra.mrb[108].mxu0 %vm826_vm2, %v7667_v37 }
  0xeb   : > { %6904 = vmatprep.mubr.msk.bf16.mxu0 %vm7861_vm1, %v7860_v1 }
  0xec   : > { %1476 = vst [vmem:[#allocation2 + $0x8] sm:$0xff] %v1382_v42 }
  0xed   : > { %v1014_v45 = vpop.f32.mrb[4].mxu0 }
  0xee   : > { %v1015_v46 = vadd.f32 %v8074_v32, %v1014_v45  ;;  %v6798_v47 = vpop.f32.mrb[5].mxu0 }
  0xef   : > { %v1017_v49 = vpop.f32.mrb[6].mxu0 }
  0xf0   : > { %v1383_v50 = vmax.f32 %v1015_v46, 0.0  ;;  %v1018_v51 = vadd.f32 %v8074_v32, %v1017_v49  ;;  %v6799_v52 = vpop.f32.mrb[7].mxu0 }
  0xf2   : > { %1477 = vst [vmem:[#allocation2 + $0x10] sm:$0xff] %v1383_v50  ;;  %v1384_v53 = vmax.f32 %v1018_v51, 0.0  ;;  %6905 = vmatmul.mubr.msk.bf16.gmra.mrb[112].mxu0 %vm826_vm2, %v7668_v48 }
  0xf3   : > { %6908 = vmatprep.mubr.msk.bf16.mxu0 %vm7861_vm1, %v7860_v1 }
  0xf4   : > { %1478 = vst [vmem:[#allocation2 + $0x18] sm:$0xff] %v1384_v53 }
  0xf5   : > { %v1022_v56 = vpop.f32.mrb[8].mxu0 }
  0xf6   : > { %v1023_v57 = vadd.f32 %v8074_v32, %v1022_v56  ;;  %v6802_v58 = vpop.f32.mrb[9].mxu0 }
  0xf7   : > { %v1025_v60 = vpop.f32.mrb[10].mxu0 }
  0xf8   : > { %v1385_v61 = vmax.f32 %v1023_v57, 0.0  ;;  %v1026_v62 = vadd.f32 %v8074_v32, %v1025_v60  ;;  %v6803_v63 = vpop.f32.mrb[11].mxu0 }
  0xfa   : > { %1479 = vst [vmem:[#allocation2 + $0x20] sm:$0xff] %v1385_v61  ;;  %v1386_v0 = vmax.f32 %v1026_v62, 0.0  ;;  %6909 = vmatmul.mubr.msk.bf16.gmra.mrb[116].mxu0 %vm826_vm2, %v7669_v59  ;;  %v7675_v61 = vld [vmem:[%s7957_s20 + $0x118] sm:$0xff]  }
  0xfb   : > { %6912 = vmatprep.mubr.msk.bf16.mxu0 %vm7861_vm1, %v7860_v1  ;;  %v1569_v48 = vld [vmem:[#allocation2] ss:$8 sm:$0xf]  ;;  %v1617_v49 = vld [vmem:[#allocation2 + $0x1] ss:$8 sm:$0xf] }
  0xfc   : > { %1480 = vst [vmem:[#allocation2 + $0x28] sm:$0xff] %v1386_v0  ;;  %v1677_v63 = vld [vmem:[#allocation2 + $0x2] ss:$8 sm:$0xf] }
  0xfd   : > { %v1030_v4 = vpop.f32.mrb[12].mxu0 }
  0xfe   : > { %v1031_v6 = vadd.f32 %v8074_v32, %v1030_v4  ;;  %v6806_v7 = vpop.f32.mrb[13].mxu0 }
  0xff   : > { %v1033_v8 = vpop.f32.mrb[14].mxu0 }
 0x100   : > { %v1387_v9 = vmax.f32 %v1031_v6, 0.0  ;;  %v1034_v10 = vadd.f32 %v8074_v32, %v1033_v8  ;;  %v6807_v11 = vpop.f32.mrb[15].mxu0 }
 0x102   : > { %6913 = vmatmul.mubr.msk.bf16.gmra.mrb[120].mxu0 %vm826_vm2, %v7670_v3  ;;  %1481 = vst [vmem:[#allocation2 + $0x30] sm:$0xff] %v1387_v9  ;;  %v1388_v12 = vmax.f32 %v1034_v10, 0.0  ;;  %v1737_v9 = vld [vmem:[#allocation2 + $0x3] ss:$8 sm:$0xf] }
 0x103   : > { %6916 = vmatprep.mubr.msk.bf16.mxu0 %vm7861_vm1, %v7860_v1 }
 0x104   : > { %1482 = vst [vmem:[#allocation2 + $0x38] sm:$0xff] %v1388_v12  ;;  %v7697_v12 = vld [vmem:[%s9374_s3 + $0x50] sm:$0xff]  }
 0x105   : > { %v1038_v13 = vpop.f32.mrb[16].mxu0  ;;  %6984 = vmatprep.subr.bf16.mxu0 %v7697_v12 }
 0x106   : > { %v1039_v14 = vadd.f32 %v8074_v32, %v1038_v13  ;;  %v6810_v15 = vpop.f32.mrb[17].mxu0  ;;  %v1797_v13 = vld [vmem:[#allocation2 + $0x4] ss:$8 sm:$0xf]  ;;  %6985 = vmatpush3.bf16.msra.mxu0 %v7697_v12 }
 0x107   : > { %v1041_v17 = vpop.f32.mrb[18].mxu0 }
 0x108   : > { %v1389_v18 = vmax.f32 %v1039_v14, 0.0  ;;  %v1042_v19 = vadd.f32 %v8074_v32, %v1041_v17  ;;  %v6811_v20 = vpop.f32.mrb[19].mxu0 }
 0x10a   : > { %1483 = vst [vmem:[#allocation2 + $0x40] sm:$0xff] %v1389_v18  ;;  %v1390_v21 = vmax.f32 %v1042_v19, 0.0  ;;  %6917 = vmatmul.mubr.msk.bf16.gmra.mrb[124].mxu0 %vm826_vm2, %v7671_v16  ;;  %v7676_v19 = vld [vmem:[%s7957_s20 + $0x120] sm:$0xff]  }
 0x10b   : > { %6920 = vmatprep.mubr.msk.bf16.mxu0 %vm7861_vm1, %v7860_v1  ;;  %v1570_v45 = vld [vmem:[#allocation2] ss:$8 sm:$0xf0]  ;;  %v1618_v46 = vld [vmem:[#allocation2 + $0x1] ss:$8 sm:$0xf0] }
 0x10c   : > { %1484 = vst [vmem:[#allocation2 + $0x48] sm:$0xff] %v1390_v21  ;;  %v1571_v50 = vor.u32 %v1570_v45, %v1569_v48  ;;  %v1619_v51 = vor.u32 %v1618_v46, %v1617_v49  ;;  %v1678_v56 = vld [vmem:[#allocation2 + $0x2] ss:$8 sm:$0xf0] }
 0x10d   : > { %v1046_v24 = vpop.f32.mrb[20].mxu0  ;;  %v1679_v5 = vor.u32 %v1678_v56, %v1677_v63  ;;  %v1738_v6 = vld [vmem:[#allocation2 + $0x3] ss:$8 sm:$0xf0] }
 0x10e   : > { %v1047_v25 = vadd.f32 %v8074_v32, %v1046_v24  ;;  %v6814_v26 = vpop.f32.mrb[21].mxu0  ;;  %v1664_v62 = vmax.f32 %v1571_v50, %v1619_v51  ;;  %v1798_v10 = vld [vmem:[#allocation2 + $0x4] ss:$8 sm:$0xf0]  ;;  %v1739_v11 = vor.u32 %v1738_v6, %v1737_v9 }
 0x10f   : > { %v1049_v27 = vpop.f32.mrb[22].mxu0  ;;  %v1858_v21 = vld [vmem:[#allocation2 + $0x5] ss:$8 sm:$0xf0] }
 0x110   : > { %v1391_v28 = vmax.f32 %v1047_v25, 0.0  ;;  %v1050_v29 = vadd.f32 %v8074_v32, %v1049_v27  ;;  %v6815_v30 = vpop.f32.mrb[23].mxu0  ;;  %v1724_v8 = vmax.f32 %v1664_v62, %v1679_v5  ;;  %v7698_v48 = vld [vmem:[%s9374_s3 + $0x58] sm:$0xff]   ;;  %v7699_v49 = vld [vmem:[%s9374_s3 + $0x60] sm:$0xff]  }
 0x111   : > { %6986 = vmatprep.subr.bf16.mxu0 %v7698_v48  ;;  %v1978_v62 = vld [vmem:[#allocation2 + $0x7] ss:$8 sm:$0xf0] }
 0x112   : > { %6921 = vmatmul.mubr.msk.bf16.gmra.mrb[128].mxu0 %vm826_vm2, %v7672_v23  ;;  %1485 = vst [vmem:[#allocation2 + $0x50] sm:$0xff] %v1391_v28  ;;  %v1392_v33 = vmax.f32 %v1050_v29, 0.0  ;;  %v1784_v20 = vmax.f32 %v1724_v8, %v1739_v11  ;;  %v1799_v28 = vor.u32 %v1798_v10, %v1797_v13  ;;  %v1857_v29 = vld [vmem:[#allocation2 + $0x5] ss:$8 sm:$0xf] }
 0x113   : > { %6924 = vmatprep.mubr.msk.bf16.mxu0 %vm7861_vm1, %v7860_v1  ;;  %6987 = vmatpush3.bf16.msra.mxu0 %v7698_v48  ;;  %v1977_v11 = vld [vmem:[#allocation2 + $0x7] ss:$8 sm:$0xf] }
 0x114   : > { %1486 = vst [vmem:[#allocation2 + $0x58] sm:$0xff] %v1392_v33  ;;  %6988 = vmatprep.subr.bf16.mxu0 %v7699_v49 }
 0x115   : > { %v1054_v31 = vpop.f32.mrb[24].mxu0 }
 0x116   : > { %v1055_v34 = vadd.f32 %v8074_v32, %v1054_v31  ;;  %v6818_v35 = vpop.f32.mrb[25].mxu0 }
 0x117   : > { %v1057_v37 = vpop.f32.mrb[26].mxu0  ;;  %6989 = vmatpush3.bf16.msra.mxu0 %v7699_v49 }
 0x118   : > { %v1393_v38 = vmax.f32 %v1055_v34, 0.0  ;;  %v1058_v39 = vadd.f32 %v8074_v32, %v1057_v37  ;;  %v6819_v40 = vpop.f32.mrb[27].mxu0  ;;  %v1918_v34 = vld [vmem:[#allocation2 + $0x6] ss:$8 sm:$0xf0] }
 0x11a   : > { %1487 = vst [vmem:[#allocation2 + $0x60] sm:$0xff] %v1393_v38  ;;  %v1394_v41 = vmax.f32 %v1058_v39, 0.0  ;;  %6925 = vmatmul.mubr.msk.bf16.gmra.mrb[132].mxu0 %vm826_vm2, %v7673_v36  ;;  %v1844_v39 = vmax.f32 %v1784_v20, %v1799_v28 }
 0x11b   : > { %6928 = vmatprep.mubr.msk.bf16.mxu0 %vm7861_vm1, %v7860_v1  ;;  %v1573_v14 = vld [vmem:[#allocation2 + $0x40] ss:$8 sm:$0xf]  ;;  %v1621_v16 = vld [vmem:[#allocation2 + $0x41] ss:$8 sm:$0xf] }
 0x11c   : > { %1488 = vst [vmem:[#allocation2 + $0x68] sm:$0xff] %v1394_v41  ;;  %v1681_v24 = vld [vmem:[#allocation2 + $0x42] ss:$8 sm:$0xf] }
 0x11d   : > { %v1062_v42 = vpop.f32.mrb[28].mxu0  ;;  %v1741_v40 = vld [vmem:[#allocation2 + $0x43] ss:$8 sm:$0xf] }
 0x11e   : > { %v6822_v43 = vpop.f32.mrb[29].mxu0  ;;  %v1063_v47 = vadd.f32 %v8074_v32, %v1062_v42  ;;  %v1917_v42 = vld [vmem:[#allocation2 + $0x6] ss:$8 sm:$0xf] }
 0x11f   : > { %v1065_v53 = vpop.f32.mrb[30].mxu0  ;;  %v1801_v43 = vld [vmem:[#allocation2 + $0x44] ss:$8 sm:$0xf] }
 0x120   : > { %v1395_v52 = vmax.f32 %v1063_v47, 0.0  ;;  %v1066_v54 = vadd.f32 %v8074_v32, %v1065_v53  ;;  %v6823_v55 = vpop.f32.mrb[31].mxu0  ;;  %v1859_v47 = vor.u32 %v1858_v21, %v1857_v29  ;;  %v1921_v5 = vld [vmem:[#allocation2 + $0x46] ss:$8 sm:$0xf] }
 0x121   : > { %v7677_v55 = vld [vmem:[%s7957_s20 + $0x128] sm:$0xff]   ;;  %v7678_v21 = vld [vmem:[%s7957_s20 + $0x130] sm:$0xff]  }
 0x122   : > { %6929 = vmatmul.mubr.msk.bf16.gmra.mrb[136].mxu0 %vm826_vm2, %v7674_v44  ;;  %1489 = vst [vmem:[#allocation2 + $0x70] sm:$0xff] %v1395_v52  ;;  %v1396_v58 = vmax.f32 %v1066_v54, 0.0  ;;  %v1861_v52 = vld [vmem:[#allocation2 + $0x45] ss:$8 sm:$0xf] }
 0x123   : > { %6932 = vmatprep.mubr.msk.bf16.mxu0 %vm7861_vm1, %v7860_v1  ;;  %v1981_v12 = vld [vmem:[#allocation2 + $0x47] ss:$8 sm:$0xf] }
 0x124   : > { %1490 = vst [vmem:[#allocation2 + $0x78] sm:$0xff] %v1396_v58  ;;  %v1904_v58 = vmax.f32 %v1844_v39, %v1859_v47 }
 0x125   : > { %v1070_v57 = vpop.f32.mrb[32].mxu0 }
 0x126   : > { %v1071_v59 = vadd.f32 %v8074_v32, %v1070_v57  ;;  %v6826_v60 = vpop.f32.mrb[33].mxu0 }
 0x127   : > { %v1073_v0 = vpop.f32.mrb[34].mxu0  ;;  %v1919_v60 = vor.u32 %v1918_v34, %v1917_v42 }
 0x128   : > { %v1397_v2 = vmax.f32 %v1071_v59, 0.0  ;;  %v1074_v3 = vadd.f32 %v8074_v32, %v1073_v0  ;;  %v6827_v4 = vpop.f32.mrb[35].mxu0 }
 0x129   : > { %v1964_v10 = vmax.f32 %v1904_v58, %v1919_v60 }
 0x12a   : > { %1491 = vst [vmem:[#allocation2 + $0x80] sm:$0xff] %v1397_v2  ;;  %v1398_v7 = vmax.f32 %v1074_v3, 0.0  ;;  %6933 = vmatmul.mubr.msk.bf16.gmra.mrb[140].mxu0 %vm826_vm2, %v7675_v61 }
 0x12b   : > { %6936 = vmatprep.mubr.msk.bf16.mxu0 %vm7861_vm1, %v7860_v1  ;;  %v1574_v22 = vld [vmem:[#allocation2 + $0x40] ss:$8 sm:$0xf0]  ;;  %v1622_v23 = vld [vmem:[#allocation2 + $0x41] ss:$8 sm:$0xf0] }
 0x12c   : > { %1492 = vst [vmem:[#allocation2 + $0x88] sm:$0xff] %v1398_v7  ;;  %v1682_v25 = vld [vmem:[#allocation2 + $0x42] ss:$8 sm:$0xf0]  ;;  %v1575_v26 = vor.u32 %v1574_v22, %v1573_v14  ;;  %v1623_v27 = vor.u32 %v1622_v23, %v1621_v16  ;;  %v1979_v14 = vor.u32 %v1978_v62, %v1977_v11 }
 0x12d   : > { %v1078_v15 = vpop.f32.mrb[36].mxu0  ;;  %v1742_v30 = vld [vmem:[#allocation2 + $0x43] ss:$8 sm:$0xf0]  ;;  %v1683_v38 = vor.u32 %v1682_v25, %v1681_v24 }
 0x12e   : > { %v1079_v17 = vadd.f32 %v8074_v32, %v1078_v15  ;;  %v6830_v18 = vpop.f32.mrb[37].mxu0  ;;  %v1665_v37 = vmax.f32 %v1575_v26, %v1623_v27  ;;  %v1802_v41 = vld [vmem:[#allocation2 + $0x44] ss:$8 sm:$0xf0]  ;;  %v1743_v46 = vor.u32 %v1742_v30, %v1741_v40 }
 0x12f   : > { %v1081_v33 = vpop.f32.mrb[38].mxu0  ;;  %v1862_v51 = vld [vmem:[#allocation2 + $0x45] ss:$8 sm:$0xf0]  ;;  %v1803_v57 = vor.u32 %v1802_v41, %v1801_v43 }
 0x130   : > { %v1399_v31 = vmax.f32 %v1079_v17, 0.0  ;;  %v1082_v35 = vadd.f32 %v8074_v32, %v1081_v33  ;;  %v6831_v36 = vpop.f32.mrb[39].mxu0  ;;  %v1725_v45 = vmax.f32 %v1665_v37, %v1683_v38  ;;  %v1922_v61 = vld [vmem:[#allocation2 + $0x46] ss:$8 sm:$0xf0]  ;;  %v1863_v4 = vor.u32 %v1862_v51, %v1861_v52 }
 0x131   : > { %v1982_v6 = vld [vmem:[#allocation2 + $0x47] ss:$8 sm:$0xf0]  ;;  %v1923_v9 = vor.u32 %v1922_v61, %v1921_v5 }
 0x132   : > { %6937 = vmatmul.mubr.msk.bf16.gmra.mrb[144].mxu0 %vm826_vm2, %v7676_v19  ;;  %1493 = vst [vmem:[#allocation2 + $0x90] sm:$0xff] %v1399_v31  ;;  %v1400_v44 = vmax.f32 %v1082_v35, 0.0  ;;  %v1785_v56 = vmax.f32 %v1725_v45, %v1743_v46  ;;  %v1983_v15 = vor.u32 %v1982_v6, %v1981_v12  ;;  %v7700_v16 = vld [vmem:[%s9374_s3 + $0x68] sm:$0xff]   ;;  %v7701_v17 = vld [vmem:[%s9374_s3 + $0x70] sm:$0xff]   ;;  %v2024_v19 = vmax.f32 %v1964_v10, %v1979_v14  ;;  %v7702_v33 = vld [vmem:[%s9374_s3 + $0x78] sm:$0xff]  }
 0x133   : > { %6940 = vmatprep.mubr.msk.bf16.mxu0 %vm7861_vm1, %v7860_v1  ;;  %6990 = vmatprep.subr.bf16.mxu0 %v7700_v16  ;;  %v7679_v40 = vld [vmem:[%s7957_s20 + $0x138] sm:$0xff]   ;;  %v7680_v52 = vld [vmem:[%s7957_s20 + $0x140] sm:$0xff]   ;;  %v7681_v61 = vld [vmem:[%s7957_s20 + $0x148] sm:$0xff]  }
 0x134   : > { %1494 = vst [vmem:[#allocation2 + $0x98] sm:$0xff] %v1400_v44  ;;  %v1845_v3 = vmax.f32 %v1785_v56, %v1803_v57  ;;  %6991 = vmatpush3.bf16.msra.mxu0 %v7700_v16  ;;  %v7684_v11 = vld [vmem:[%s7957_s20 + $0x150] sm:$0xff]  }
 0x135   : > { %v1086_v50 = vpop.f32.mrb[40].mxu0  ;;  %6992 = vmatprep.subr.bf16.mxu0 %v7701_v17 }
 0x136   : > { %v1087_v53 = vadd.f32 %v8074_v32, %v1086_v50  ;;  %v6834_v54 = vpop.f32.mrb[41].mxu0  ;;  %v1905_v8 = vmax.f32 %v1845_v3, %v1863_v4 }
 0x137   : > { %v1089_v59 = vpop.f32.mrb[42].mxu0 }
 0x138   : > { %v1401_v63 = vmax.f32 %v1087_v53, 0.0  ;;  %v1090_v0 = vadd.f32 %v8074_v32, %v1089_v59  ;;  %v6835_v2 = vpop.f32.mrb[43].mxu0  ;;  %v1965_v13 = vmax.f32 %v1905_v8, %v1923_v9  ;;  %6993 = vmatpush3.bf16.msra.mxu0 %v7701_v17 }
 0x139   : > { %6994 = vmatprep.subr.bf16.mxu0 %v7702_v33 }
 0x13a   : > { %1495 = vst [vmem:[#allocation2 + $0xa0] sm:$0xff] %v1401_v63  ;;  %v1402_v7 = vmax.f32 %v1090_v0, 0.0  ;;  %6941 = vmatmul.mubr.msk.bf16.gmra.mrb[148].mxu0 %vm826_vm2, %v7677_v55  ;;  %v2025_v20 = vmax.f32 %v1965_v13, %v1983_v15 }
 0x13b   : > { %6944 = vmatprep.mubr.msk.bf16.mxu0 %vm7861_vm1, %v7860_v1  ;;  %v1577_v6 = vld [vmem:[#allocation2 + $0x80] ss:$8 sm:$0xf] }
 0x13c   : > { %1496 = vst [vmem:[#allocation2 + $0xa8] sm:$0xff] %v1402_v7  ;;  %v8185_v24 = vpack.c.bf16 %v2025_v20, %v2024_v19  ;;  %6995 = vmatpush3.bf16.msra.mxu0 %v7702_v33  ;;  %v1625_v7 = vld [vmem:[#allocation2 + $0x81] ss:$8 sm:$0xf] }
 0x13d   : > { %v1094_v18 = vpop.f32.mrb[44].mxu0 }
 0x13e   : > { %v1095_v22 = vadd.f32 %v8074_v32, %v1094_v18  ;;  %v6838_v23 = vpop.f32.mrb[45].mxu0  ;;  %7024 = vmatprep.mubr.bf16.mxu1 %v8185_v24  ;;  %v8193_v30 = vshrl.u32 %v8185_v24, 16  ;;  %v8196_v31 = vshll.u32 %v8185_v24, 16 }
 0x13f   : > { %v1097_v25 = vpop.f32.mrb[46].mxu0 }
 0x140   : > { %v1403_v26 = vmax.f32 %v1095_v22, 0.0  ;;  %v1098_v27 = vadd.f32 %v8074_v32, %v1097_v25  ;;  %v6839_v28 = vpop.f32.mrb[47].mxu0  ;;  %v2583_v35 = vrot.slane %v8193_v30, 1  ;;  %v2584_v36 = vrot.slane %v8196_v31, 2 }
 0x141   : > { %v2943_v37 = vrot.slane %v8193_v30, 2  ;;  %v2944_v41 = vrot.slane %v8196_v31, 3  ;;  %v7687_v28 = vld [vmem:[%s7957_s20 + $0x158] sm:$0xff]  }
 0x142   : > { %6945 = vmatmul.mubr.msk.bf16.gmra.mrb[152].mxu0 %vm826_vm2, %v7678_v21  ;;  %1497 = vst [vmem:[#allocation2 + $0xb0] sm:$0xff] %v1403_v26  ;;  %v1404_v29 = vmax.f32 %v1098_v27, 0.0  ;;  %v8207_v43 = vor.u32 %v2584_v36, %v2583_v35  ;;  %v1685_v21 = vld [vmem:[#allocation2 + $0x82] ss:$8 sm:$0xf] }
 0x143   : > { %6948 = vmatprep.mubr.msk.bf16.mxu0 %vm7861_vm1, %v7860_v1  ;;  %v8210_v47 = vor.u32 %v2944_v41, %v2943_v37 }
 0x144   : > { %1498 = vst [vmem:[#allocation2 + $0xb8] sm:$0xff] %v1404_v29 }
 0x145   : > { %v1102_v34 = vpop.f32.mrb[48].mxu0 }
 0x146   : > { %v1103_v38 = vadd.f32 %v8074_v32, %v1102_v34  ;;  %v6842_v39 = vpop.f32.mrb[49].mxu0  ;;  %v1745_v34 = vld [vmem:[#allocation2 + $0x83] ss:$8 sm:$0xf] }
 0x147   : > { %v1105_v42 = vpop.f32.mrb[50].mxu0 }
 0x148   : > { %v1405_v44 = vmax.f32 %v1103_v38, 0.0  ;;  %v1106_v45 = vadd.f32 %v8074_v32, %v1105_v42  ;;  %v6843_v46 = vpop.f32.mrb[51].mxu0 }
 0x14a   : > { %1499 = vst [vmem:[#allocation2 + $0xc0] sm:$0xff] %v1405_v44  ;;  %v1406_v48 = vmax.f32 %v1106_v45, 0.0  ;;  %6949 = vmatmul.mubr.msk.bf16.gmra.mrb[156].mxu0 %vm826_vm2, %v7679_v40  ;;  %v1805_v40 = vld [vmem:[#allocation2 + $0x84] ss:$8 sm:$0xf] }
 0x14b   : > { %6952 = vmatprep.mubr.msk.bf16.mxu0 %vm7861_vm1, %v7860_v1  ;;  %v1578_v4 = vld [vmem:[#allocation2 + $0x80] ss:$8 sm:$0xf0]  ;;  %v1626_v5 = vld [vmem:[#allocation2 + $0x81] ss:$8 sm:$0xf0] }
 0x14c   : > { %1500 = vst [vmem:[#allocation2 + $0xc8] sm:$0xff] %v1406_v48  ;;  %v1579_v12 = vor.u32 %v1578_v4, %v1577_v6  ;;  %v1627_v13 = vor.u32 %v1626_v5, %v1625_v7  ;;  %v1686_v18 = vld [vmem:[#allocation2 + $0x82] ss:$8 sm:$0xf0] }
 0x14d   : > { %v1110_v49 = vpop.f32.mrb[52].mxu0  ;;  %v1687_v22 = vor.u32 %v1686_v18, %v1685_v21  ;;  %v1746_v25 = vld [vmem:[#allocation2 + $0x83] ss:$8 sm:$0xf0] }
 0x14e   : > { %v1111_v50 = vadd.f32 %v8074_v32, %v1110_v49  ;;  %v6846_v51 = vpop.f32.mrb[53].mxu0  ;;  %v1666_v20 = vmax.f32 %v1579_v12, %v1627_v13  ;;  %v1747_v38 = vor.u32 %v1746_v25, %v1745_v34  ;;  %v1806_v41 = vld [vmem:[#allocation2 + $0x84] ss:$8 sm:$0xf0] }
 0x14f   : > { %v1113_v53 = vpop.f32.mrb[54].mxu0  ;;  %v1866_v46 = vld [vmem:[#allocation2 + $0x85] ss:$8 sm:$0xf0] }
 0x150   : > { %v1407_v54 = vmax.f32 %v1111_v50, 0.0  ;;  %v1114_v55 = vadd.f32 %v8074_v32, %v1113_v53  ;;  %v6847_v56 = vpop.f32.mrb[55].mxu0  ;;  %v1726_v29 = vmax.f32 %v1666_v20, %v1687_v22  ;;  %v1986_v25 = vld [vmem:[#allocation2 + $0x87] ss:$8 sm:$0xf0] }
 0x152   : > { %1501 = vst [vmem:[#allocation2 + $0xd0] sm:$0xff] %v1407_v54  ;;  %v1408_v57 = vmax.f32 %v1114_v55, 0.0  ;;  %6953 = vmatmul.mubr.msk.bf16.gmra.mrb[160].mxu0 %vm826_vm2, %v7680_v52  ;;  %v1786_v45 = vmax.f32 %v1726_v29, %v1747_v38  ;;  %v1807_v54 = vor.u32 %v1806_v41, %v1805_v40  ;;  %v1865_v55 = vld [vmem:[#allocation2 + $0x85] ss:$8 sm:$0xf] }
 0x153   : > { %6956 = vmatprep.mubr.msk.bf16.mxu0 %vm7861_vm1, %v7860_v1  ;;  %v1867_v4 = vor.u32 %v1866_v46, %v1865_v55 }
 0x154   : > { %1502 = vst [vmem:[#allocation2 + $0xd8] sm:$0xff] %v1408_v57 }
 0x155   : > { %v1118_v58 = vpop.f32.mrb[56].mxu0 }
 0x156   : > { %v1119_v59 = vadd.f32 %v8074_v32, %v1118_v58  ;;  %v6850_v60 = vpop.f32.mrb[57].mxu0 }
 0x157   : > { %v1121_v62 = vpop.f32.mrb[58].mxu0  ;;  %v7690_v60 = vld [vmem:[%s7957_s20 + $0x160] sm:$0xff]  }
 0x158   : > { %v1409_v63 = vmax.f32 %v1119_v59, 0.0  ;;  %v1122_v0 = vadd.f32 %v8074_v32, %v1121_v62  ;;  %v6851_v2 = vpop.f32.mrb[59].mxu0 }
 0x15a   : > { %1503 = vst [vmem:[#allocation2 + $0xe0] sm:$0xff] %v1409_v63  ;;  %v1410_v3 = vmax.f32 %v1122_v0, 0.0  ;;  %6957 = vmatmul.mubr.msk.bf16.gmra.mrb[164].mxu0 %vm826_vm2, %v7681_v61  ;;  %v1846_v0 = vmax.f32 %v1786_v45, %v1807_v54 }
 0x15b   : > { %6960 = vmatprep.mubr.msk.bf16.mxu0 %vm7861_vm1, %v7860_v1  ;;  %v1581_v39 = vld [vmem:[#allocation2 + $0xc0] ss:$8 sm:$0xf]  ;;  %v1629_v42 = vld [vmem:[#allocation2 + $0xc1] ss:$8 sm:$0xf] }
 0x15c   : > { %1504 = vst [vmem:[#allocation2 + $0xe8] sm:$0xff] %v1410_v3  ;;  %v1689_v52 = vld [vmem:[#allocation2 + $0xc2] ss:$8 sm:$0xf] }
 0x15d   : > { %v1126_v8 = vpop.f32.mrb[60].mxu0  ;;  %v1749_v63 = vld [vmem:[#allocation2 + $0xc3] ss:$8 sm:$0xf] }
 0x15e   : > { %v1127_v9 = vadd.f32 %v8074_v32, %v1126_v8  ;;  %v6854_v10 = vpop.f32.mrb[61].mxu0  ;;  %v1869_v18 = vld [vmem:[#allocation2 + $0xc5] ss:$8 sm:$0xf] }
 0x15f   : > { %v1129_v14 = vpop.f32.mrb[62].mxu0  ;;  %v1926_v10 = vld [vmem:[#allocation2 + $0x86] ss:$8 sm:$0xf0] }
 0x160   : > { %v1411_v15 = vmax.f32 %v1127_v9, 0.0  ;;  %v1130_v16 = vadd.f32 %v8074_v32, %v1129_v14  ;;  %v6855_v17 = vpop.f32.mrb[63].mxu0  ;;  %v1989_v40 = vld [vmem:[#allocation2 + $0xc7] ss:$8 sm:$0xf] }
 0x161   : > { %v1925_v17 = vld [vmem:[#allocation2 + $0x86] ss:$8 sm:$0xf] }
 0x162   : > { %1505 = vst [vmem:[#allocation2 + $0xf0] sm:$0xff] %v1411_v15  ;;  %v1412_v19 = vmax.f32 %v1130_v16, 0.0  ;;  %6961 = vmatmul.mubr.msk.bf16.gmra.mrb[168].mxu0 %vm826_vm2, %v7684_v11  ;;  %v1809_v11 = vld [vmem:[#allocation2 + $0xc4] ss:$8 sm:$0xf]  ;;  %v1906_v16 = vmax.f32 %v1846_v0, %v1867_v4  ;;  %v1927_v22 = vor.u32 %v1926_v10, %v1925_v17 }
 0x163   : > { %6964 = vmatprep.mubr.msk.bf16.mxu0 %vm7861_vm1, %v7860_v1 }
 0x164   : > { %1506 = vst [vmem:[#allocation2 + $0xf8] sm:$0xff] %v1412_v19 }
 0x165   : > { %v1134_v23 = vpop.f32.mrb[64].mxu0 }
 0x166   : > { %v1135_v26 = vadd.f32 %v8074_v32, %v1134_v23  ;;  %v6858_v27 = vpop.f32.mrb[65].mxu0  ;;  %v1929_v23 = vld [vmem:[#allocation2 + $0xc6] ss:$8 sm:$0xf] }
 0x167   : > { %v1137_v33 = vpop.f32.mrb[66].mxu0 }
 0x168   : > { %v1413_v35 = vmax.f32 %v1135_v26, 0.0  ;;  %v1138_v36 = vadd.f32 %v8074_v32, %v1137_v33  ;;  %v6859_v37 = vpop.f32.mrb[67].mxu0  ;;  %v7693_v33 = vld [vmem:[%s7957_s20 + $0x168] sm:$0xff]  }
 0x169   : > { %v1985_v37 = vld [vmem:[#allocation2 + $0x87] ss:$8 sm:$0xf] }
 0x16a   : > { %1507 = vst [vmem:[#allocation2 + $0x100] sm:$0xff] %v1413_v35  ;;  %v1414_v44 = vmax.f32 %v1138_v36, 0.0  ;;  %6965 = vmatmul.mubr.msk.bf16.gmra.mrb[172].mxu0 %vm826_vm2, %v7687_v28  ;;  %v1966_v36 = vmax.f32 %v1906_v16, %v1927_v22 }
 0x16b   : > { %6968 = vmatprep.mubr.msk.bf16.mxu0 %vm7861_vm1, %v7860_v1  ;;  %v1582_v48 = vld [vmem:[#allocation2 + $0xc0] ss:$8 sm:$0xf0]  ;;  %v1630_v49 = vld [vmem:[#allocation2 + $0xc1] ss:$8 sm:$0xf0] }
 0x16c   : > { %1508 = vst [vmem:[#allocation2 + $0x108] sm:$0xff] %v1414_v44  ;;  %v1583_v50 = vor.u32 %v1582_v48, %v1581_v39  ;;  %v1631_v51 = vor.u32 %v1630_v49, %v1629_v42  ;;  %v1690_v53 = vld [vmem:[#allocation2 + $0xc2] ss:$8 sm:$0xf0]  ;;  %v1987_v39 = vor.u32 %v1986_v25, %v1985_v37 }
 0x16d   : > { %v1142_v56 = vpop.f32.mrb[68].mxu0  ;;  %v1750_v57 = vld [vmem:[#allocation2 + $0xc3] ss:$8 sm:$0xf0]  ;;  %v1691_v62 = vor.u32 %v1690_v53, %v1689_v52  ;;  %v2081_v52 = vrot.slane %v8196_v31, 1 }
 0x16e   : > { %v1143_v58 = vadd.f32 %v8074_v32, %v1142_v56  ;;  %v6862_v59 = vpop.f32.mrb[69].mxu0  ;;  %v1667_v61 = vmax.f32 %v1583_v50, %v1631_v51  ;;  %v1810_v3 = vld [vmem:[#allocation2 + $0xc4] ss:$8 sm:$0xf0]  ;;  %v1751_v9 = vor.u32 %v1750_v57, %v1749_v63  ;;  %v2026_v49 = vmax.f32 %v1966_v36, %v1987_v39 }
 0x16f   : > { %v1145_v2 = vpop.f32.mrb[70].mxu0  ;;  %v1870_v12 = vld [vmem:[#allocation2 + $0xc5] ss:$8 sm:$0xf0]  ;;  %v1811_v15 = vor.u32 %v1810_v3, %v1809_v11  ;;  %v2409_v59 = vrot.slane %v8185_v24, 1 }
 0x170   : > { %v1415_v5 = vmax.f32 %v1143_v58, 0.0  ;;  %v1146_v6 = vadd.f32 %v8074_v32, %v1145_v2  ;;  %v6863_v7 = vpop.f32.mrb[71].mxu0  ;;  %v1727_v8 = vmax.f32 %v1667_v61, %v1691_v62  ;;  %v1930_v19 = vld [vmem:[#allocation2 + $0xc6] ss:$8 sm:$0xf0]  ;;  %v1871_v21 = vor.u32 %v1870_v12, %v1869_v18 }
 0x171   : > { %v1990_v27 = vld [vmem:[#allocation2 + $0xc7] ss:$8 sm:$0xf0]  ;;  %v1931_v35 = vor.u32 %v1930_v19, %v1929_v23  ;;  %v7695_v56 = vld [vmem:[%s7957_s20 + $0x170] sm:$0x7f]   ;;  %v2082_v2 = vor.u32 %v2081_v52, %v8193_v30  ;;  %s7629_s20 = smul.u32 124, %s9387_s30 }
 0x172   : > { %1509 = vst [vmem:[#allocation2 + $0x110] sm:$0xff] %v1415_v5  ;;  %v1416_v13 = vmax.f32 %v1146_v6, 0.0  ;;  %6969 = vmatmul.mubr.msk.bf16.gmra.mrb[176].mxu0 %vm826_vm2, %v7690_v60  ;;  %v1787_v14 = vmax.f32 %v1727_v8, %v1751_v9  ;;  %v1991_v46 = vor.u32 %v1990_v27, %v1989_v40  ;;  %v2769_v60 = vrot.slane %v8185_v24, 2 }
 0x173   : > { %6972 = vmatprep.mubr.msk.bf16.mxu0 %vm7861_vm1, %v7860_v1  ;;  %s8711_s17 = scalar_lea.vmem %s9378_s7, %s7629_s20 }
 0x174   : > { %1510 = vst [vmem:[#allocation2 + $0x118] sm:$0xff] %v1416_v13  ;;  %v1847_v20 = vmax.f32 %v1787_v14, %v1811_v15 }
 0x175   : > { %v1150_v26 = vpop.f32.mrb[72].mxu0 }
 0x176   : > { %v1151_v28 = vadd.f32 %v8074_v32, %v1150_v26  ;;  %v6866_v29 = vpop.f32.mrb[73].mxu0  ;;  %v1907_v34 = vmax.f32 %v1847_v20, %v1871_v21 }
 0x177   : > { %v1153_v38 = vpop.f32.mrb[74].mxu0 }
 0x178   : > { %v1417_v41 = vmax.f32 %v1151_v28, 0.0  ;;  %v1154_v42 = vadd.f32 %v8074_v32, %v1153_v38  ;;  %v6867_v44 = vpop.f32.mrb[75].mxu0  ;;  %v1967_v45 = vmax.f32 %v1907_v34, %v1931_v35 }
 0x17a   : > { %1511 = vst [vmem:[#allocation2 + $0x120] sm:$0xff] %v1417_v41  ;;  %v1418_v48 = vmax.f32 %v1154_v42, 0.0  ;;  %6973 = vmatmul.mubr.msk.bf16.gmra.mrb[180].mxu0 %vm826_vm2, %v7693_v33  ;;  %v2027_v50 = vmax.f32 %v1967_v45, %v1991_v46 }
 0x17b   : > { %6976 = vmatprep.mubr.msk.bf16.mxu0 %vm7861_vm1, %v7860_v1  ;;  %v1585_v42 = vld [vmem:[#allocation2 + $0x100] ss:$8 sm:$0xf]  ;;  %v1633_v45 = vld [vmem:[#allocation2 + $0x101] ss:$8 sm:$0xf] }
 0x17c   : > { %1512 = vst [vmem:[#allocation2 + $0x128] sm:$0xff] %v1418_v48  ;;  %v8251_v51 = vpack.c.bf16 %v2027_v50, %v2026_v49 }
 0x17d   : > { %v1158_v53 = vpop.f32.mrb[76].mxu0 }
 0x17e   : > { %v1159_v54 = vadd.f32 %v8074_v32, %v1158_v53  ;;  %v6870_v55 = vpop.f32.mrb[77].mxu0  ;;  %7025 = vmatmul.mubr.bf16.vlgmr.msra.gmra.mrb[0].mxu1 %v8251_v51  ;;  %v8258_v57 = vshll.u32 %v8251_v51, 16  ;;  %v8261_v58 = vshrl.u32 %v8251_v51, 16  ;;  %v2410_v31 = vrot.slane %v8251_v51, 1 }
 0x17f   : > { %v1161_v1 = vpop.f32.mrb[78].mxu0  ;;  %v2770_v61 = vrot.slane %v8251_v51, 2 }
 0x180   : > { %v1419_v62 = vmax.f32 %v1159_v54, 0.0  ;;  %v1162_v63 = vadd.f32 %v8074_v32, %v1161_v1  ;;  %v6871_v0 = vpop.f32.mrb[79].mxu0  ;;  %v2086_v3 = vrot.slane %v8258_v57, 1  ;;  %v8273_v4 = vsel %vm2408_vm4, %v2409_v59, %v2410_v31 }
 0x181   : > { %v2586_v5 = vrot.slane %v8261_v58, 1  ;;  %v2587_v6 = vrot.slane %v8258_v57, 2  ;;  %v8280_v24 = vsel %vm2768_vm5, %v2769_v60, %v2770_v61  ;;  %v2946_v8 = vrot.slane %v8261_v58, 2  ;;  %v1693_v60 = vld [vmem:[#allocation2 + $0x102] ss:$8 sm:$0xf] }
 0x182   : > { %1513 = vst [vmem:[#allocation2 + $0x130] sm:$0xff] %v1419_v62  ;;  %v1420_v7 = vmax.f32 %v1162_v63, 0.0  ;;  %6977 = vmatmul.mubr.msk.bf16.gmra.mrb[184].mxu0 %vm826_vm2, %v7695_v56  ;;  %v2087_v30 = vsel %vm2075_vm3, %v2082_v2, %v2086_v3  ;;  %v2947_v10 = vrot.slane %v8258_v57, 3  ;;  %v8313_v2 = vld [vmem:[%s9373_s2] ss:$0 sm:$0xff] }
 0x183   : > { %6996 = vmatprep.mubr.bf16.mxu0 %v2087_v30  ;;  %v8287_v9 = vor.u32 %v2587_v6, %v2586_v5  ;;  %v1753_v30 = vld [vmem:[#allocation2 + $0x103] ss:$8 sm:$0xf] }
 0x184   : > { %1514 = vst [vmem:[#allocation2 + $0x138] sm:$0xff] %v1420_v7  ;;  %v8295_v13 = vor.u32 %v2947_v10, %v2946_v8 }
 0x185   : > { %v1166_v11 = vpop.f32.mrb[80].mxu0  ;;  %v8293_v12 = vsel %vm2582_vm6, %v8207_v43, %v8287_v9 }
 0x186   : > { %v1167_v14 = vadd.f32 %v8074_v32, %v1166_v11  ;;  %v6874_v15 = vpop.f32.mrb[81].mxu0  ;;  %v8301_v17 = vsel %vm2942_vm7, %v8210_v47, %v8295_v13 }
 0x187   : > { %v1169_v16 = vpop.f32.mrb[82].mxu0 }
 0x188   : > { %v1421_v18 = vmax.f32 %v1167_v14, 0.0  ;;  %v1170_v19 = vadd.f32 %v8074_v32, %v1169_v16  ;;  %v6875_v20 = vpop.f32.mrb[83].mxu0  ;;  %v1813_v16 = vld [vmem:[#allocation2 + $0x104] ss:$8 sm:$0xf] }
 0x18a   : > { %1515 = vst [vmem:[#allocation2 + $0x140] sm:$0xff] %v1421_v18  ;;  %v1422_v21 = vmax.f32 %v1170_v19, 0.0 }
 0x18b   : > { %v1586_v40 = vld [vmem:[#allocation2 + $0x100] ss:$8 sm:$0xf0]  ;;  %v1634_v41 = vld [vmem:[#allocation2 + $0x101] ss:$8 sm:$0xf0] }
 0x18c   : > { %1516 = vst [vmem:[#allocation2 + $0x148] sm:$0xff] %v1422_v21  ;;  %v1587_v49 = vor.u32 %v1586_v40, %v1585_v42  ;;  %v1635_v50 = vor.u32 %v1634_v41, %v1633_v45  ;;  %v1694_v56 = vld [vmem:[#allocation2 + $0x102] ss:$8 sm:$0xf0] }
 0x18d   : > { %v1174_v43 = vpop.f32.mrb[84].mxu0  ;;  %v1695_v62 = vor.u32 %v1694_v56, %v1693_v60  ;;  %v1754_v0 = vld [vmem:[#allocation2 + $0x103] ss:$8 sm:$0xf0] }
 0x18e   : > { %v1175_v22 = vadd.f32 %v8074_v32, %v1174_v43  ;;  %v6878_v23 = vpop.f32.mrb[85].mxu0  ;;  %v1668_v59 = vmax.f32 %v1587_v49, %v1635_v50  ;;  %v1755_v14 = vor.u32 %v1754_v0, %v1753_v30  ;;  %v1814_v18 = vld [vmem:[#allocation2 + $0x104] ss:$8 sm:$0xf0] }
 0x18f   : > { %v1177_v25 = vpop.f32.mrb[86].mxu0  ;;  %v1874_v43 = vld [vmem:[#allocation2 + $0x105] ss:$8 sm:$0xf0] }
 0x190   : > { %v1423_v26 = vmax.f32 %v1175_v22, 0.0  ;;  %v1178_v27 = vadd.f32 %v8074_v32, %v1177_v25  ;;  %v6879_v28 = vpop.f32.mrb[87].mxu0  ;;  %v1728_v7 = vmax.f32 %v1668_v59, %v1695_v62  ;;  %v1933_v60 = vld [vmem:[#allocation2 + $0x106] ss:$8 sm:$0xf] }
 0x192   : > { %1517 = vst [vmem:[#allocation2 + $0x150] sm:$0xff] %v1423_v26  ;;  %v1424_v29 = vmax.f32 %v1178_v27, 0.0  ;;  %v1788_v21 = vmax.f32 %v1728_v7, %v1755_v14 }
 0x194   : > { %1518 = vst [vmem:[#allocation2 + $0x158] sm:$0xff] %v1424_v29  ;;  %v1815_v29 = vor.u32 %v1814_v18, %v1813_v16  ;;  %v1993_v18 = vld [vmem:[#allocation2 + $0x107] ss:$8 sm:$0xf] }
 0x195   : > { %v1182_v47 = vpop.f32.mrb[88].mxu0 }
 0x196   : > { %v1183_v33 = vadd.f32 %v8074_v32, %v1182_v47  ;;  %v6882_v34 = vpop.f32.mrb[89].mxu0  ;;  %v1873_v47 = vld [vmem:[#allocation2 + $0x105] ss:$8 sm:$0xf]  ;;  %v1848_v40 = vmax.f32 %v1788_v21, %v1815_v29 }
 0x197   : > { %v1185_v35 = vpop.f32.mrb[90].mxu0 }
 0x198   : > { %v1425_v36 = vmax.f32 %v1183_v33, 0.0  ;;  %v1186_v37 = vadd.f32 %v8074_v32, %v1185_v35  ;;  %v6883_v38 = vpop.f32.mrb[91].mxu0 }
 0x19a   : > { %1519 = vst [vmem:[#allocation2 + $0x160] sm:$0xff] %v1425_v36  ;;  %v1426_v39 = vmax.f32 %v1186_v37, 0.0 }
 0x19b   : > { %v1589_v15 = vld [vmem:[#allocation2 + $0x140] ss:$8 sm:$0xf]  ;;  %v1637_v20 = vld [vmem:[#allocation2 + $0x141] ss:$8 sm:$0xf] }
 0x19c   : > { %1520 = vst [vmem:[#allocation2 + $0x168] sm:$0xff] %v1426_v39  ;;  %v1697_v27 = vld [vmem:[#allocation2 + $0x142] ss:$8 sm:$0xf] }
 0x19d   : > { %v1190_v44 = vpop.f32.mrb[92].mxu0  ;;  %v1757_v39 = vld [vmem:[#allocation2 + $0x143] ss:$8 sm:$0xf] }
 0x19e   : > { %v1191_v46 = vadd.f32 %v8074_v32, %v1190_v44  ;;  %v6886_v48 = vpop.f32.mrb[93].mxu0  ;;  %v1875_v44 = vor.u32 %v1874_v43, %v1873_v47  ;;  %v1877_v62 = vld [vmem:[#allocation2 + $0x145] ss:$8 sm:$0xf] }
 0x19f   : > { %v1193_v52 = vpop.f32.mrb[94].mxu0  ;;  %v1937_v7 = vld [vmem:[#allocation2 + $0x146] ss:$8 sm:$0xf] }
 0x1a0   : > { %v1427_v53 = vmax.f32 %v1191_v46, 0.0  ;;  %v1194_v54 = vadd.f32 %v8074_v32, %v1193_v52  ;;  %v6887_v55 = vpop.f32.mrb[95].mxu0  ;;  %v1934_v52 = vld [vmem:[#allocation2 + $0x106] ss:$8 sm:$0xf0]  ;;  %v1908_v59 = vmax.f32 %v1848_v40, %v1875_v44 }
 0x1a1   : > { %v1997_v21 = vld [vmem:[#allocation2 + $0x147] ss:$8 sm:$0xf] }
 0x1a2   : > { %1521 = vst [vmem:[#allocation2 + $0x170] sm:$0xff] %v1427_v53  ;;  %v1428_v1 = vmax.f32 %v1194_v54, 0.0  ;;  %v1817_v53 = vld [vmem:[#allocation2 + $0x144] ss:$8 sm:$0xf] }
 0x1a4   : > { %1522 = vst [vmem:[#allocation2 + $0x178] sm:$0xff] %v1428_v1 }
 0x1a5   : > { %v1198_v63 = vpop.f32.mrb[96].mxu0 }
 0x1a6   : > { %v1199_v5 = vadd.f32 %v8313_v2, %v1198_v63  ;;  %v6890_v6 = vpop.f32.mrb[97].mxu0 }
 0x1a7   : > { %v1201_v32 = vpop.f32.mrb[98].mxu0  ;;  %v1935_v6 = vor.u32 %v1934_v52, %v1933_v60 }
 0x1a8   : > { %v1429_v8 = vmax.f32 %v1199_v5, 0.0  ;;  %v1202_v10 = vadd.f32 %v8313_v2, %v1201_v32  ;;  %v6891_v11 = vpop.f32.mrb[99].mxu0  ;;  %v1994_v32 = vld [vmem:[#allocation2 + $0x107] ss:$8 sm:$0xf0] }
 0x1a9   : > { %v1968_v16 = vmax.f32 %v1908_v59, %v1935_v6 }
 0x1aa   : > { %1523 = vst [vmem:[#allocation2 + $0x180] sm:$0xff] %v1429_v8  ;;  %v1430_v19 = vmax.f32 %v1202_v10, 0.0 }
 0x1ab   : > { %v1590_v22 = vld [vmem:[#allocation2 + $0x140] ss:$8 sm:$0xf0]  ;;  %v1638_v23 = vld [vmem:[#allocation2 + $0x141] ss:$8 sm:$0xf0] }
 0x1ac   : > { %1524 = vst [vmem:[#allocation2 + $0x188] sm:$0xff] %v1430_v19  ;;  %v1591_v25 = vor.u32 %v1590_v22, %v1589_v15  ;;  %v1639_v26 = vor.u32 %v1638_v23, %v1637_v20  ;;  %v1698_v28 = vld [vmem:[#allocation2 + $0x142] ss:$8 sm:$0xf0]  ;;  %v1995_v20 = vor.u32 %v1994_v32, %v1993_v18 }
 0x1ad   : > { %v1206_v33 = vpop.f32.mrb[100].mxu0  ;;  %v1758_v34 = vld [vmem:[#allocation2 + $0x143] ss:$8 sm:$0xf0]  ;;  %v1699_v38 = vor.u32 %v1698_v28, %v1697_v27 }
 0x1ae   : > { %v1207_v35 = vadd.f32 %v8313_v2, %v1206_v33  ;;  %v6894_v36 = vpop.f32.mrb[101].mxu0  ;;  %v1669_v37 = vmax.f32 %v1591_v25, %v1639_v26  ;;  %v1818_v42 = vld [vmem:[#allocation2 + $0x144] ss:$8 sm:$0xf0]  ;;  %v1759_v50 = vor.u32 %v1758_v34, %v1757_v39  ;;  %v2028_v28 = vmax.f32 %v1968_v16, %v1995_v20 }
 0x1af   : > { %v1209_v41 = vpop.f32.mrb[102].mxu0  ;;  %v1878_v54 = vld [vmem:[#allocation2 + $0x145] ss:$8 sm:$0xf0]  ;;  %v1819_v1 = vor.u32 %v1818_v42, %v1817_v53 }
 0x1b0   : > { %v1431_v45 = vmax.f32 %v1207_v35, 0.0  ;;  %v1210_v46 = vadd.f32 %v8313_v2, %v1209_v41  ;;  %v6895_v48 = vpop.f32.mrb[103].mxu0  ;;  %v1729_v49 = vmax.f32 %v1669_v37, %v1699_v38  ;;  %v1938_v63 = vld [vmem:[#allocation2 + $0x146] ss:$8 sm:$0xf0]  ;;  %v1879_v5 = vor.u32 %v1878_v54, %v1877_v62 }
 0x1b1   : > { %v1998_v8 = vld [vmem:[#allocation2 + $0x147] ss:$8 sm:$0xf0]  ;;  %v1939_v15 = vor.u32 %v1938_v63, %v1937_v7  ;;  %v2090_v41 = vor.u32 %v8261_v58, %v2086_v3 }
 0x1b2   : > { %1525 = vst [vmem:[#allocation2 + $0x190] sm:$0xff] %v1431_v45  ;;  %v1432_v55 = vmax.f32 %v1210_v46, 0.0  ;;  %v1789_v56 = vmax.f32 %v1729_v49, %v1759_v50  ;;  %v1999_v26 = vor.u32 %v1998_v8, %v1997_v21 }
 0x1b4   : > { %1526 = vst [vmem:[#allocation2 + $0x198] sm:$0xff] %v1432_v55  ;;  %v1849_v0 = vmax.f32 %v1789_v56, %v1819_v1 }
 0x1b5   : > { %v1214_v30 = vpop.f32.mrb[104].mxu0 }
 0x1b6   : > { %v1215_v10 = vadd.f32 %v8313_v2, %v1214_v30  ;;  %v6898_v11 = vpop.f32.mrb[105].mxu0  ;;  %v1909_v14 = vmax.f32 %v1849_v0, %v1879_v5 }
 0x1b7   : > { %v1217_v19 = vpop.f32.mrb[106].mxu0 }
 0x1b8   : > { %v1433_v43 = vmax.f32 %v1215_v10, 0.0  ;;  %v1218_v22 = vadd.f32 %v8313_v2, %v1217_v19  ;;  %v6899_v23 = vpop.f32.mrb[107].mxu0  ;;  %v1969_v25 = vmax.f32 %v1909_v14, %v1939_v15 }
 0x1ba   : > { %1527 = vst [vmem:[#allocation2 + $0x1a0] sm:$0xff] %v1433_v43  ;;  %v1434_v27 = vmax.f32 %v1218_v22, 0.0  ;;  %v2029_v29 = vmax.f32 %v1969_v25, %v1999_v26  ;;  %v7703_v26 = vld [vmem:[%s9374_s3 + $0x80] sm:$0xff]  }
 0x1bb   : > { %v1593_v22 = vld [vmem:[#allocation2 + $0x180] ss:$8 sm:$0xf]  ;;  %v1641_v25 = vld [vmem:[#allocation2 + $0x181] ss:$8 sm:$0xf]  ;;  %7036 = vmatprep.subr.bf16.mxu1 %v7703_v26 }
 0x1bc   : > { %1528 = vst [vmem:[#allocation2 + $0x1a8] sm:$0xff] %v1434_v27  ;;  %v8321_v47 = vpack.c.bf16 %v2029_v29, %v2028_v28  ;;  %v7704_v27 = vld [vmem:[%s9374_s3 + $0x88] sm:$0xff]   ;;  %7037 = vmatpush3.bf16.msra.mxu1 %v7703_v26 }
 0x1bd   : > { %v1222_v33 = vpop.f32.mrb[108].mxu0  ;;  %7038 = vmatprep.subr.bf16.mxu1 %v7704_v27 }
 0x1be   : > { %v1223_v34 = vadd.f32 %v8313_v2, %v1222_v33  ;;  %v6902_v35 = vpop.f32.mrb[109].mxu0  ;;  %7028 = vmatprep.mubr.bf16.mxu1 %v8321_v47  ;;  %v8326_v36 = vshll.u32 %v8321_v47, 16  ;;  %v8329_v37 = vshrl.u32 %v8321_v47, 16  ;;  %v2412_v39 = vrot.slane %v8321_v47, 1 }
 0x1bf   : > { %v1225_v38 = vpop.f32.mrb[110].mxu0  ;;  %v2772_v40 = vrot.slane %v8321_v47, 2 }
 0x1c0   : > { %v1435_v42 = vmax.f32 %v1223_v34, 0.0  ;;  %v1226_v44 = vadd.f32 %v8313_v2, %v1225_v38  ;;  %v6903_v45 = vpop.f32.mrb[111].mxu0  ;;  %v2094_v46 = vrot.slane %v8326_v36, 1  ;;  %v8343_v48 = vsel %vm2408_vm4, %v2410_v31, %v2412_v39  ;;  %7039 = vmatpush3.bf16.msra.mxu1 %v7704_v27 }
 0x1c1   : > { %v2590_v49 = vrot.slane %v8329_v37, 1  ;;  %v2591_v50 = vrot.slane %v8326_v36, 2  ;;  %v8352_v57 = vsel %vm2768_vm5, %v2770_v61, %v2772_v40  ;;  %v2950_v31 = vrot.slane %v8329_v37, 2  ;;  %v7705_v45 = vld [vmem:[%s9374_s3 + $0x90] sm:$0xff]  }
 0x1c2   : > { %1529 = vst [vmem:[#allocation2 + $0x1b0] sm:$0xff] %v1435_v42  ;;  %v1436_v58 = vmax.f32 %v1226_v44, 0.0  ;;  %v2095_v3 = vsel %vm2075_vm3, %v2090_v41, %v2094_v46  ;;  %v2951_v53 = vrot.slane %v8326_v36, 3  ;;  %7040 = vmatprep.subr.bf16.mxu1 %v7705_v45 }
 0x1c3   : > { %6997 = vmatmul.mubr.bf16.vlgmr.msra.gmra.mrb[188].mxu0 %v2095_v3  ;;  %v8358_v52 = vor.u32 %v2591_v50, %v2590_v49 }
 0x1c4   : > { %1530 = vst [vmem:[#allocation2 + $0x1b8] sm:$0xff] %v1436_v58  ;;  %v8366_v61 = vor.u32 %v2951_v53, %v2950_v31  ;;  %v1701_v58 = vld [vmem:[#allocation2 + $0x182] ss:$8 sm:$0xf]  ;;  %7041 = vmatpush3.bf16.msra.mxu1 %v7705_v45 }
 0x1c5   : > { %v1230_v54 = vpop.f32.mrb[112].mxu0  ;;  %v8364_v51 = vsel %vm2582_vm6, %v8287_v9, %v8358_v52 }
 0x1c6   : > { %v1231_v55 = vadd.f32 %v8313_v2, %v1230_v54  ;;  %v6906_v56 = vpop.f32.mrb[113].mxu0  ;;  %v8372_v59 = vsel %vm2942_vm7, %v8295_v13, %v8366_v61  ;;  %v7706_v54 = vld [vmem:[%s9374_s3 + $0x98] sm:$0xff]  }
 0x1c7   : > { %v1233_v1 = vpop.f32.mrb[114].mxu0  ;;  %7042 = vmatprep.subr.bf16.mxu1 %v7706_v54 }
 0x1c8   : > { %v1437_v60 = vmax.f32 %v1231_v55, 0.0  ;;  %v1234_v62 = vadd.f32 %v8313_v2, %v1233_v1  ;;  %v6907_v63 = vpop.f32.mrb[115].mxu0  ;;  %7043 = vmatpush3.bf16.msra.mxu1 %v7706_v54 }
 0x1ca   : > { %1531 = vst [vmem:[#allocation2 + $0x1c0] sm:$0xff] %v1437_v60  ;;  %v1438_v0 = vmax.f32 %v1234_v62, 0.0  ;;  %v1761_v62 = vld [vmem:[#allocation2 + $0x183] ss:$8 sm:$0xf] }
 0x1cb   : > { %v1594_v21 = vld [vmem:[#allocation2 + $0x180] ss:$8 sm:$0xf0]  ;;  %v1642_v43 = vld [vmem:[#allocation2 + $0x181] ss:$8 sm:$0xf0] }
 0x1cc   : > { %1532 = vst [vmem:[#allocation2 + $0x1c8] sm:$0xff] %v1438_v0  ;;  %v1595_v33 = vor.u32 %v1594_v21, %v1593_v22  ;;  %v1643_v34 = vor.u32 %v1642_v43, %v1641_v25  ;;  %v1702_v44 = vld [vmem:[#allocation2 + $0x182] ss:$8 sm:$0xf0] }
 0x1cd   : > { %v1238_v9 = vpop.f32.mrb[116].mxu0  ;;  %v1703_v3 = vor.u32 %v1702_v44, %v1701_v58  ;;  %v1762_v53 = vld [vmem:[#allocation2 + $0x183] ss:$8 sm:$0xf0] }
 0x1ce   : > { %v1239_v5 = vadd.f32 %v8313_v2, %v1238_v9  ;;  %v6910_v6 = vpop.f32.mrb[117].mxu0  ;;  %v1670_v50 = vmax.f32 %v1595_v33, %v1643_v34  ;;  %v1881_v43 = vld [vmem:[#allocation2 + $0x185] ss:$8 sm:$0xf] }
 0x1cf   : > { %v1241_v7 = vpop.f32.mrb[118].mxu0  ;;  %v1822_v6 = vld [vmem:[#allocation2 + $0x184] ss:$8 sm:$0xf0] }
 0x1d0   : > { %v1439_v32 = vmax.f32 %v1239_v5, 0.0  ;;  %v1242_v30 = vadd.f32 %v8313_v2, %v1241_v7  ;;  %v6911_v8 = vpop.f32.mrb[119].mxu0  ;;  %v1730_v1 = vmax.f32 %v1670_v50, %v1703_v3  ;;  %v1763_v5 = vor.u32 %v1762_v53, %v1761_v62  ;;  %v7708_v25 = vld [vmem:[%s9374_s3 + $0xa8] sm:$0xff]   ;;  %v7709_v53 = vld [vmem:[%s9374_s3 + $0xb0] sm:$0xff]  }
 0x1d2   : > { %1533 = vst [vmem:[#allocation2 + $0x1d0] sm:$0xff] %v1439_v32  ;;  %v1440_v10 = vmax.f32 %v1242_v30, 0.0  ;;  %v1821_v32 = vld [vmem:[#allocation2 + $0x184] ss:$8 sm:$0xf] }
 0x1d3   : > { %v7707_v30 = vld [vmem:[%s9374_s3 + $0xa0] sm:$0xff]   ;;  %v1823_v21 = vor.u32 %v1822_v6, %v1821_v32 }
 0x1d4   : > { %1534 = vst [vmem:[#allocation2 + $0x1d8] sm:$0xff] %v1440_v10  ;;  %7044 = vmatprep.subr.bf16.mxu1 %v7707_v30 }
 0x1d5   : > { %v1246_v13 = vpop.f32.mrb[120].mxu0  ;;  %7045 = vmatpush3.bf16.msra.mxu1 %v7707_v30 }
 0x1d6   : > { %v1247_v11 = vadd.f32 %v8313_v2, %v1246_v13  ;;  %v6914_v14 = vpop.f32.mrb[121].mxu0  ;;  %v1790_v13 = vmax.f32 %v1730_v1, %v1763_v5  ;;  %7046 = vmatprep.subr.bf16.mxu1 %v7708_v25 }
 0x1d7   : > { %v1249_v15 = vpop.f32.mrb[122].mxu0 }
 0x1d8   : > { %v1441_v16 = vmax.f32 %v1247_v11, 0.0  ;;  %v1250_v18 = vadd.f32 %v8313_v2, %v1249_v15  ;;  %v6915_v19 = vpop.f32.mrb[123].mxu0  ;;  %v1882_v11 = vld [vmem:[#allocation2 + $0x185] ss:$8 sm:$0xf0]  ;;  %v1850_v34 = vmax.f32 %v1790_v13, %v1823_v21 }
 0x1d9   : > { %7047 = vmatpush3.bf16.msra.mxu1 %v7708_v25 }
 0x1da   : > { %1535 = vst [vmem:[#allocation2 + $0x1e0] sm:$0xff] %v1441_v16  ;;  %v1442_v20 = vmax.f32 %v1250_v18, 0.0  ;;  %7048 = vmatprep.subr.bf16.mxu1 %v7709_v53 }
 0x1db   : > { %v1597_v7 = vld [vmem:[#allocation2 + $0x1c0] ss:$8 sm:$0xf]  ;;  %v1645_v10 = vld [vmem:[#allocation2 + $0x1c1] ss:$8 sm:$0xf] }
 0x1dc   : > { %1536 = vst [vmem:[#allocation2 + $0x1e8] sm:$0xff] %v1442_v20  ;;  %v1705_v19 = vld [vmem:[#allocation2 + $0x1c2] ss:$8 sm:$0xf] }
 0x1dd   : > { %v1254_v23 = vpop.f32.mrb[124].mxu0  ;;  %v1765_v33 = vld [vmem:[#allocation2 + $0x1c3] ss:$8 sm:$0xf]  ;;  %7049 = vmatpush3.bf16.msra.mxu1 %v7709_v53 }
 0x1de   : > { %v1255_v28 = vadd.f32 %v8313_v2, %v1254_v23  ;;  %v6918_v29 = vpop.f32.mrb[125].mxu0  ;;  %v1825_v3 = vld [vmem:[#allocation2 + $0x1c4] ss:$8 sm:$0xf] }
 0x1df   : > { %v1257_v35 = vpop.f32.mrb[126].mxu0  ;;  %v1885_v62 = vld [vmem:[#allocation2 + $0x1c5] ss:$8 sm:$0xf] }
 0x1e0   : > { %v1443_v38 = vmax.f32 %v1255_v28, 0.0  ;;  %v1258_v41 = vadd.f32 %v8313_v2, %v1257_v35  ;;  %v6919_v42 = vpop.f32.mrb[127].mxu0  ;;  %v1945_v6 = vld [vmem:[#allocation2 + $0x1c6] ss:$8 sm:$0xf] }
 0x1e1   : > { %v1942_v42 = vld [vmem:[#allocation2 + $0x186] ss:$8 sm:$0xf0] }
 0x1e2   : > { %1537 = vst [vmem:[#allocation2 + $0x1f0] sm:$0xff] %v1443_v38  ;;  %v1444_v49 = vmax.f32 %v1258_v41, 0.0  ;;  %v1883_v41 = vor.u32 %v1882_v11, %v1881_v43 }
 0x1e4   : > { %1538 = vst [vmem:[#allocation2 + $0x1f8] sm:$0xff] %v1444_v49  ;;  %v1910_v1 = vmax.f32 %v1850_v34, %v1883_v41 }
 0x1e5   : > { %v1262_v31 = vpop.f32.mrb[128].mxu0 }
 0x1e6   : > { %v1263_v55 = vadd.f32 %v8313_v2, %v1262_v31  ;;  %v6922_v56 = vpop.f32.mrb[129].mxu0 }
 0x1e7   : > { %v1265_v60 = vpop.f32.mrb[130].mxu0 }
 0x1e8   : > { %v1445_v63 = vmax.f32 %v1263_v55, 0.0  ;;  %v1266_v0 = vadd.f32 %v8313_v2, %v1265_v60  ;;  %v6923_v9 = vpop.f32.mrb[131].mxu0  ;;  %v1941_v60 = vld [vmem:[#allocation2 + $0x186] ss:$8 sm:$0xf] }
 0x1e9   : > { %v1943_v5 = vor.u32 %v1942_v42, %v1941_v60 }
 0x1ea   : > { %1539 = vst [vmem:[#allocation2 + $0x200] sm:$0xff] %v1445_v63  ;;  %v1446_v8 = vmax.f32 %v1266_v0, 0.0 }
 0x1eb   : > { %v1598_v14 = vld [vmem:[#allocation2 + $0x1c0] ss:$8 sm:$0xf0]  ;;  %v1646_v15 = vld [vmem:[#allocation2 + $0x1c1] ss:$8 sm:$0xf0] }
 0x1ec   : > { %1540 = vst [vmem:[#allocation2 + $0x208] sm:$0xff] %v1446_v8  ;;  %v1599_v16 = vor.u32 %v1598_v14, %v1597_v7  ;;  %v1647_v18 = vor.u32 %v1646_v15, %v1645_v10  ;;  %v1706_v20 = vld [vmem:[#allocation2 + $0x1c2] ss:$8 sm:$0xf0]  ;;  %v1970_v15 = vmax.f32 %v1910_v1, %v1943_v5 }
 0x1ed   : > { %v1270_v22 = vpop.f32.mrb[132].mxu0  ;;  %v1766_v23 = vld [vmem:[#allocation2 + $0x1c3] ss:$8 sm:$0xf0]  ;;  %v1707_v29 = vor.u32 %v1706_v20, %v1705_v19 }
 0x1ee   : > { %v1271_v26 = vadd.f32 %v8313_v2, %v1270_v22  ;;  %v6926_v27 = vpop.f32.mrb[133].mxu0  ;;  %v1671_v28 = vmax.f32 %v1599_v16, %v1647_v18  ;;  %v1826_v38 = vld [vmem:[#allocation2 + $0x1c4] ss:$8 sm:$0xf0]  ;;  %v1767_v58 = vor.u32 %v1766_v23, %v1765_v33 }
 0x1ef   : > { %v1273_v35 = vpop.f32.mrb[134].mxu0  ;;  %v1886_v31 = vld [vmem:[#allocation2 + $0x1c5] ss:$8 sm:$0xf0]  ;;  %v1827_v56 = vor.u32 %v1826_v38, %v1825_v3 }
 0x1f0   : > { %v1447_v44 = vmax.f32 %v1271_v26, 0.0  ;;  %v1274_v45 = vadd.f32 %v8313_v2, %v1273_v35  ;;  %v6927_v49 = vpop.f32.mrb[135].mxu0  ;;  %v1731_v50 = vmax.f32 %v1671_v28, %v1707_v29  ;;  %v1946_v63 = vld [vmem:[#allocation2 + $0x1c6] ss:$8 sm:$0xf0]  ;;  %v1887_v9 = vor.u32 %v1886_v31, %v1885_v62 }
 0x1f1   : > { %v2002_v7 = vld [vmem:[#allocation2 + $0x187] ss:$8 sm:$0xf0]  ;;  %v1947_v14 = vor.u32 %v1946_v63, %v1945_v6  ;;  %v2098_v31 = vor.u32 %v8329_v37, %v2094_v46 }
 0x1f2   : > { %1541 = vst [vmem:[#allocation2 + $0x210] sm:$0xff] %v1447_v44  ;;  %v1448_v54 = vmax.f32 %v1274_v45, 0.0  ;;  %v1791_v55 = vmax.f32 %v1731_v50, %v1767_v58  ;;  %v2006_v30 = vld [vmem:[#allocation2 + $0x1c7] ss:$8 sm:$0xf0] }
 0x1f3   : > { %v7710_v8 = vld [vmem:[%s9374_s3 + $0xb8] sm:$0xff]   ;;  %v8414_v29 = vld [vmem:[%s9374_s3 + $0xc0] sm:$0xff]  }
 0x1f4   : > { %1542 = vst [vmem:[#allocation2 + $0x218] sm:$0xff] %v1448_v54  ;;  %v1851_v0 = vmax.f32 %v1791_v55, %v1827_v56  ;;  %v2001_v16 = vld [vmem:[#allocation2 + $0x187] ss:$8 sm:$0xf]  ;;  %7050 = vmatprep.subr.bf16.mxu1 %v7710_v8 }
 0x1f5   : > { %v1278_v32 = vpop.f32.mrb[136].mxu0  ;;  %v2003_v19 = vor.u32 %v2002_v7, %v2001_v16  ;;  %v2005_v20 = vld [vmem:[#allocation2 + $0x1c7] ss:$8 sm:$0xf]  ;;  %7051 = vmatpush3.bf16.msra.mxu1 %v7710_v8 }
 0x1f6   : > { %v1279_v10 = vadd.f32 %v8313_v2, %v1278_v32  ;;  %v6930_v13 = vpop.f32.mrb[137].mxu0  ;;  %v1911_v11 = vmax.f32 %v1851_v0, %v1887_v9  ;;  %v2007_v25 = vor.u32 %v2006_v30, %v2005_v20  ;;  %7064 = vmatprep.subr.bf16.mxu1 %v8414_v29 }
 0x1f7   : > { %v1281_v18 = vpop.f32.mrb[138].mxu0  ;;  %v2030_v27 = vmax.f32 %v1970_v15, %v2003_v19 }
 0x1f8   : > { %v1449_v21 = vmax.f32 %v1279_v10, 0.0  ;;  %v1282_v43 = vadd.f32 %v8313_v2, %v1281_v18  ;;  %v6931_v22 = vpop.f32.mrb[139].mxu0  ;;  %v1971_v23 = vmax.f32 %v1911_v11, %v1947_v14 }
 0x1fa   : > { %1543 = vst [vmem:[#allocation2 + $0x220] sm:$0xff] %v1449_v21  ;;  %v1450_v26 = vmax.f32 %v1282_v43, 0.0  ;;  %v2031_v28 = vmax.f32 %v1971_v23, %v2007_v25 }
 0x1fc   : > { %1544 = vst [vmem:[#allocation2 + $0x228] sm:$0xff] %v1450_v26  ;;  %v8416_v33 = vpack.c.bf16 %v2031_v28, %v2030_v27  ;;  %v1601_v27 = vld [vmem:[#allocation2 + $0x200] ss:$8 sm:$0xf] }
 0x1fd   : > { %v1286_v34 = vpop.f32.mrb[140].mxu0 }
 0x1fe   : > { %v1287_v35 = vadd.f32 %v8313_v2, %v1286_v34  ;;  %v6934_v38 = vpop.f32.mrb[141].mxu0  ;;  %7029 = vmatmul.mubr.bf16.gmra.mrb[4].mxu1 %v8416_v33  ;;  %v8422_v41 = vshll.u32 %v8416_v33, 16  ;;  %v8425_v42 = vshrl.u32 %v8416_v33, 16  ;;  %v2414_v45 = vrot.slane %v8416_v33, 1 }
 0x1ff   : > { %v1289_v44 = vpop.f32.mrb[142].mxu0  ;;  %v2774_v49 = vrot.slane %v8416_v33, 2  ;;  %v1649_v34 = vld [vmem:[#allocation2 + $0x201] ss:$8 sm:$0xf] }
 0x200   : > { %v1451_v50 = vmax.f32 %v1287_v35, 0.0  ;;  %v1290_v58 = vadd.f32 %v8313_v2, %v1289_v44  ;;  %v6935_v3 = vpop.f32.mrb[143].mxu0  ;;  %v2102_v53 = vrot.slane %v8422_v41, 1  ;;  %v8439_v54 = vsel %vm2408_vm4, %v2412_v39, %v2414_v45 }
 0x201   : > { %v2594_v55 = vrot.slane %v8425_v42, 1  ;;  %v2595_v56 = vrot.slane %v8422_v41, 2  ;;  %v8448_v36 = vsel %vm2768_vm5, %v2772_v40, %v2774_v49  ;;  %v2954_v39 = vrot.slane %v8425_v42, 2 }
 0x202   : > { %1545 = vst [vmem:[#allocation2 + $0x230] sm:$0xff] %v1451_v50  ;;  %v1452_v37 = vmax.f32 %v1290_v58, 0.0  ;;  %v2103_v46 = vsel %vm2075_vm3, %v2098_v31, %v2102_v53  ;;  %v2955_v60 = vrot.slane %v8422_v41, 3 }
 0x203   : > { %7000 = vmatprep.mubr.bf16.mxu0 %v2103_v46  ;;  %v8454_v1 = vor.u32 %v2595_v56, %v2594_v55 }
 0x204   : > { %1546 = vst [vmem:[#allocation2 + $0x238] sm:$0xff] %v1452_v37  ;;  %v8462_v40 = vor.u32 %v2955_v60, %v2954_v39  ;;  %v1709_v39 = vld [vmem:[#allocation2 + $0x202] ss:$8 sm:$0xf] }
 0x205   : > { %v1294_v62 = vpop.f32.mrb[144].mxu0  ;;  %v8460_v47 = vsel %vm2582_vm6, %v8358_v52, %v8454_v1 }
 0x206   : > { %v1295_v63 = vadd.f32 %v8313_v2, %v1294_v62  ;;  %v6938_v0 = vpop.f32.mrb[145].mxu0  ;;  %v8468_v5 = vsel %vm2942_vm7, %v8366_v61, %v8462_v40 }
 0x207   : > { %v1297_v9 = vpop.f32.mrb[146].mxu0 }
 0x208   : > { %v1453_v6 = vmax.f32 %v1295_v63, 0.0  ;;  %v1298_v7 = vadd.f32 %v8313_v2, %v1297_v9  ;;  %v6939_v32 = vpop.f32.mrb[147].mxu0 }
 0x209   : > { %v1769_v32 = vld [vmem:[#allocation2 + $0x203] ss:$8 sm:$0xf] }
 0x20a   : > { %1547 = vst [vmem:[#allocation2 + $0x240] sm:$0xff] %v1453_v6  ;;  %v1454_v30 = vmax.f32 %v1298_v7, 0.0 }
 0x20b   : > { %v1602_v25 = vld [vmem:[#allocation2 + $0x200] ss:$8 sm:$0xf0]  ;;  %v1650_v26 = vld [vmem:[#allocation2 + $0x201] ss:$8 sm:$0xf0] }
 0x20c   : > { %1548 = vst [vmem:[#allocation2 + $0x248] sm:$0xff] %v1454_v30  ;;  %v1603_v44 = vor.u32 %v1602_v25, %v1601_v27  ;;  %v1651_v50 = vor.u32 %v1650_v26, %v1649_v34  ;;  %v1710_v56 = vld [vmem:[#allocation2 + $0x202] ss:$8 sm:$0xf0] }
 0x20d   : > { %v1302_v52 = vpop.f32.mrb[148].mxu0  ;;  %v1711_v60 = vor.u32 %v1710_v56, %v1709_v39  ;;  %v1770_v63 = vld [vmem:[#allocation2 + $0x203] ss:$8 sm:$0xf0] }
 0x20e   : > { %v1303_v8 = vadd.f32 %v8313_v2, %v1302_v52  ;;  %v6942_v10 = vpop.f32.mrb[149].mxu0  ;;  %v1672_v46 = vmax.f32 %v1603_v44, %v1651_v50  ;;  %v1889_v26 = vld [vmem:[#allocation2 + $0x205] ss:$8 sm:$0xf] }
 0x20f   : > { %v1305_v13 = vpop.f32.mrb[150].mxu0  ;;  %v1771_v10 = vor.u32 %v1770_v63, %v1769_v32 }
 0x210   : > { %v1455_v11 = vmax.f32 %v1303_v8, 0.0  ;;  %v1306_v14 = vadd.f32 %v8313_v2, %v1305_v13  ;;  %v6943_v15 = vpop.f32.mrb[151].mxu0  ;;  %v1732_v6 = vmax.f32 %v1672_v46, %v1711_v60 }
 0x212   : > { %1549 = vst [vmem:[#allocation2 + $0x250] sm:$0xff] %v1455_v11  ;;  %v1456_v16 = vmax.f32 %v1306_v14, 0.0  ;;  %v1829_v11 = vld [vmem:[#allocation2 + $0x204] ss:$8 sm:$0xf] }
 0x213   : > { %v1830_v14 = vld [vmem:[#allocation2 + $0x204] ss:$8 sm:$0xf0] }
 0x214   : > { %1550 = vst [vmem:[#allocation2 + $0x258] sm:$0xff] %v1456_v16  ;;  %v1831_v25 = vor.u32 %v1830_v14, %v1829_v11 }
 0x215   : > { %v1310_v61 = vpop.f32.mrb[152].mxu0 }
 0x216   : > { %v1311_v18 = vadd.f32 %v8313_v2, %v1310_v61  ;;  %v6946_v19 = vpop.f32.mrb[153].mxu0  ;;  %v1792_v61 = vmax.f32 %v1732_v6, %v1771_v10 }
 0x217   : > { %v1313_v20 = vpop.f32.mrb[154].mxu0 }
 0x218   : > { %v1457_v21 = vmax.f32 %v1311_v18, 0.0  ;;  %v1314_v43 = vadd.f32 %v8313_v2, %v1313_v20  ;;  %v6947_v22 = vpop.f32.mrb[155].mxu0  ;;  %v1890_v18 = vld [vmem:[#allocation2 + $0x205] ss:$8 sm:$0xf0] }
 0x21a   : > { %1551 = vst [vmem:[#allocation2 + $0x260] sm:$0xff] %v1457_v21  ;;  %v1458_v23 = vmax.f32 %v1314_v43, 0.0 }
 0x21b   : > { %v1605_v13 = vld [vmem:[#allocation2 + $0x240] ss:$8 sm:$0xf]  ;;  %v1653_v16 = vld [vmem:[#allocation2 + $0x241] ss:$8 sm:$0xf] }
 0x21c   : > { %1552 = vst [vmem:[#allocation2 + $0x268] sm:$0xff] %v1458_v23  ;;  %v1713_v22 = vld [vmem:[#allocation2 + $0x242] ss:$8 sm:$0xf] }
 0x21d   : > { %v1318_v28 = vpop.f32.mrb[156].mxu0  ;;  %v1773_v50 = vld [vmem:[#allocation2 + $0x243] ss:$8 sm:$0xf] }
 0x21e   : > { %v1319_v35 = vadd.f32 %v8313_v2, %v1318_v28  ;;  %v6950_v38 = vpop.f32.mrb[157].mxu0  ;;  %v1833_v63 = vld [vmem:[#allocation2 + $0x244] ss:$8 sm:$0xf] }
 0x21f   : > { %v1321_v58 = vpop.f32.mrb[158].mxu0  ;;  %v1953_v14 = vld [vmem:[#allocation2 + $0x246] ss:$8 sm:$0xf] }
 0x220   : > { %v1459_v3 = vmax.f32 %v1319_v35, 0.0  ;;  %v1322_v31 = vadd.f32 %v8313_v2, %v1321_v58  ;;  %v6951_v55 = vpop.f32.mrb[159].mxu0  ;;  %v1852_v58 = vmax.f32 %v1792_v61, %v1831_v25 }
 0x221   : > { %v1891_v55 = vor.u32 %v1890_v18, %v1889_v26  ;;  %v2013_v26 = vld [vmem:[#allocation2 + $0x247] ss:$8 sm:$0xf] }
 0x222   : > { %1553 = vst [vmem:[#allocation2 + $0x270] sm:$0xff] %v1459_v3  ;;  %v1460_v37 = vmax.f32 %v1322_v31, 0.0 }
 0x223   : > { %v1912_v32 = vmax.f32 %v1852_v58, %v1891_v55 }
 0x224   : > { %1554 = vst [vmem:[#allocation2 + $0x278] sm:$0xff] %v1460_v37 }
 0x225   : > { %v1326_v62 = vpop.f32.mrb[160].mxu0 }
 0x226   : > { %v1327_v0 = vadd.f32 %v8313_v2, %v1326_v62  ;;  %v6954_v9 = vpop.f32.mrb[161].mxu0  ;;  %v1950_v62 = vld [vmem:[#allocation2 + $0x206] ss:$8 sm:$0xf0] }
 0x227   : > { %v1329_v7 = vpop.f32.mrb[162].mxu0 }
 0x228   : > { %v1461_v30 = vmax.f32 %v1327_v0, 0.0  ;;  %v1330_v52 = vadd.f32 %v8313_v2, %v1329_v7  ;;  %v6955_v8 = vpop.f32.mrb[163].mxu0 }
 0x22a   : > { %1555 = vst [vmem:[#allocation2 + $0x280] sm:$0xff] %v1461_v30  ;;  %v1462_v15 = vmax.f32 %v1330_v52, 0.0  ;;  %v1949_v30 = vld [vmem:[#allocation2 + $0x206] ss:$8 sm:$0xf] }
 0x22b   : > { %v1606_v19 = vld [vmem:[#allocation2 + $0x240] ss:$8 sm:$0xf0]  ;;  %v1654_v20 = vld [vmem:[#allocation2 + $0x241] ss:$8 sm:$0xf0]  ;;  %v1951_v11 = vor.u32 %v1950_v62, %v1949_v30 }
 0x22c   : > { %1556 = vst [vmem:[#allocation2 + $0x288] sm:$0xff] %v1462_v15  ;;  %v1607_v21 = vor.u32 %v1606_v19, %v1605_v13  ;;  %v1655_v43 = vor.u32 %v1654_v20, %v1653_v16  ;;  %v1714_v23 = vld [vmem:[#allocation2 + $0x242] ss:$8 sm:$0xf0] }
 0x22d   : > { %v1334_v27 = vpop.f32.mrb[164].mxu0  ;;  %v1774_v28 = vld [vmem:[#allocation2 + $0x243] ss:$8 sm:$0xf0]  ;;  %v1715_v44 = vor.u32 %v1714_v23, %v1713_v22 }
 0x22e   : > { %v1335_v34 = vadd.f32 %v8313_v2, %v1334_v27  ;;  %v6958_v35 = vpop.f32.mrb[165].mxu0  ;;  %v1673_v38 = vmax.f32 %v1607_v21, %v1655_v43  ;;  %v1834_v31 = vld [vmem:[#allocation2 + $0x244] ss:$8 sm:$0xf0]  ;;  %v1775_v60 = vor.u32 %v1774_v28, %v1773_v50  ;;  %v1972_v43 = vmax.f32 %v1912_v32, %v1951_v11 }
 0x22f   : > { %v1337_v3 = vpop.f32.mrb[166].mxu0  ;;  %v1894_v0 = vld [vmem:[#allocation2 + $0x245] ss:$8 sm:$0xf0]  ;;  %v1835_v7 = vor.u32 %v1834_v31, %v1833_v63 }
 0x230   : > { %v1463_v56 = vmax.f32 %v1335_v34, 0.0  ;;  %v1338_v37 = vadd.f32 %v8313_v2, %v1337_v3  ;;  %v6959_v46 = vpop.f32.mrb[167].mxu0  ;;  %v1733_v39 = vmax.f32 %v1673_v38, %v1715_v44  ;;  %v1893_v52 = vld [vmem:[#allocation2 + $0x245] ss:$8 sm:$0xf] }
 0x231   : > { %v1954_v8 = vld [vmem:[#allocation2 + $0x246] ss:$8 sm:$0xf0]  ;;  %v1895_v13 = vor.u32 %v1894_v0, %v1893_v52  ;;  %v2010_v15 = vld [vmem:[#allocation2 + $0x207] ss:$8 sm:$0xf0] }
 0x232   : > { %1557 = vst [vmem:[#allocation2 + $0x290] sm:$0xff] %v1463_v56  ;;  %v1464_v9 = vmax.f32 %v1338_v37, 0.0  ;;  %v1793_v6 = vmax.f32 %v1733_v39, %v1775_v60  ;;  %v2014_v61 = vld [vmem:[#allocation2 + $0x247] ss:$8 sm:$0xf0]  ;;  %v1955_v21 = vor.u32 %v1954_v8, %v1953_v14 }
 0x233   : > { %v2009_v22 = vld [vmem:[#allocation2 + $0x207] ss:$8 sm:$0xf]  ;;  %v2015_v38 = vor.u32 %v2014_v61, %v2013_v26 }
 0x234   : > { %1558 = vst [vmem:[#allocation2 + $0x298] sm:$0xff] %v1464_v9  ;;  %v1853_v10 = vmax.f32 %v1793_v6, %v1835_v7  ;;  %v2011_v25 = vor.u32 %v2010_v15, %v2009_v22  ;;  %v2106_v6 = vor.u32 %v8425_v42, %v2102_v53 }
 0x235   : > { %v1342_v16 = vpop.f32.mrb[168].mxu0 }
 0x236   : > { %v1343_v18 = vadd.f32 %v8313_v2, %v1342_v16  ;;  %v6962_v19 = vpop.f32.mrb[169].mxu0  ;;  %v1913_v20 = vmax.f32 %v1853_v10, %v1895_v13  ;;  %v2032_v50 = vmax.f32 %v1972_v43, %v2011_v25 }
 0x237   : > { %v1345_v23 = vpop.f32.mrb[170].mxu0 }
 0x238   : > { %v1465_v27 = vmax.f32 %v1343_v18, 0.0  ;;  %v1346_v28 = vadd.f32 %v8313_v2, %v1345_v23  ;;  %v6963_v34 = vpop.f32.mrb[171].mxu0  ;;  %v1973_v35 = vmax.f32 %v1913_v20, %v1955_v21 }
 0x23a   : > { %1559 = vst [vmem:[#allocation2 + $0x2a0] sm:$0xff] %v1465_v27  ;;  %v1466_v44 = vmax.f32 %v1346_v28, 0.0  ;;  %v2033_v58 = vmax.f32 %v1973_v35, %v2015_v38 }
 0x23b   : > { %v1609_v34 = vld [vmem:[#allocation2 + $0x280] ss:$8 sm:$0xf]  ;;  %v1657_v35 = vld [vmem:[#allocation2 + $0x281] ss:$8 sm:$0xf] }
 0x23c   : > { %1560 = vst [vmem:[#allocation2 + $0x2a8] sm:$0xff] %v1466_v44  ;;  %v8483_v3 = vpack.c.bf16 %v2033_v58, %v2032_v50 }
 0x23d   : > { %v1350_v31 = vpop.f32.mrb[172].mxu0 }
 0x23e   : > { %v1351_v55 = vadd.f32 %v8313_v2, %v1350_v31  ;;  %v6966_v56 = vpop.f32.mrb[173].mxu0  ;;  %7032 = vmatprep.mubr.bf16.mxu1 %v8483_v3  ;;  %v8488_v37 = vshll.u32 %v8483_v3, 16  ;;  %v8491_v46 = vshrl.u32 %v8483_v3, 16  ;;  %v2416_v60 = vrot.slane %v8483_v3, 1 }
 0x23f   : > { %v1353_v39 = vpop.f32.mrb[174].mxu0  ;;  %v2776_v62 = vrot.slane %v8483_v3, 2  ;;  %v7717_v3 = vld [vmem:[%s9374_s3 + $0xf0] sm:$0xff]  }
 0x240   : > { %v1467_v63 = vmax.f32 %v1351_v55, 0.0  ;;  %v1354_v0 = vadd.f32 %v8313_v2, %v1353_v39  ;;  %v6967_v9 = vpop.f32.mrb[175].mxu0  ;;  %v2110_v7 = vrot.slane %v8488_v37, 1  ;;  %v8505_v32 = vsel %vm2408_vm4, %v2414_v45, %v2416_v60 }
 0x241   : > { %v2598_v30 = vrot.slane %v8491_v46, 1  ;;  %v2599_v52 = vrot.slane %v8488_v37, 2  ;;  %v8514_v41 = vsel %vm2768_vm5, %v2774_v49, %v2776_v62  ;;  %v2958_v45 = vrot.slane %v8491_v46, 2  ;;  %v1717_v9 = vld [vmem:[#allocation2 + $0x282] ss:$8 sm:$0xf] }
 0x242   : > { %1561 = vst [vmem:[#allocation2 + $0x2b0] sm:$0xff] %v1467_v63  ;;  %v1468_v42 = vmax.f32 %v1354_v0, 0.0  ;;  %v2111_v53 = vsel %vm2075_vm3, %v2106_v6, %v2110_v7  ;;  %v2959_v10 = vrot.slane %v8488_v37, 3 }
 0x243   : > { %7001 = vmatmul.mubr.bf16.gmra.mrb[192].mxu0 %v2111_v53  ;;  %v8520_v8 = vor.u32 %v2599_v52, %v2598_v30 }
 0x244   : > { %1562 = vst [vmem:[#allocation2 + $0x2b8] sm:$0xff] %v1468_v42  ;;  %v8528_v49 = vor.u32 %v2959_v10, %v2958_v45  ;;  %v1777_v42 = vld [vmem:[#allocation2 + $0x283] ss:$8 sm:$0xf] }
 0x245   : > { %v1358_v13 = vpop.f32.mrb[176].mxu0  ;;  %v8526_v33 = vsel %vm2582_vm6, %v8454_v1, %v8520_v8  ;;  %v1837_v45 = vld [vmem:[#allocation2 + $0x284] ss:$8 sm:$0xf] }
 0x246   : > { %v1359_v11 = vadd.f32 %v8313_v2, %v1358_v13  ;;  %v6970_v14 = vpop.f32.mrb[177].mxu0  ;;  %v8534_v16 = vsel %vm2942_vm7, %v8462_v40, %v8528_v49 }
 0x247   : > { %v1361_v15 = vpop.f32.mrb[178].mxu0 }
 0x248   : > { %v1469_v61 = vmax.f32 %v1359_v11, 0.0  ;;  %v1362_v18 = vadd.f32 %v8313_v2, %v1361_v15  ;;  %v6971_v19 = vpop.f32.mrb[179].mxu0 }
 0x24a   : > { %1563 = vst [vmem:[#allocation2 + $0x2c0] sm:$0xff] %v1469_v61  ;;  %v1470_v20 = vmax.f32 %v1362_v18, 0.0 }
 0x24b   : > { %v1610_v27 = vld [vmem:[#allocation2 + $0x280] ss:$8 sm:$0xf0]  ;;  %v1658_v28 = vld [vmem:[#allocation2 + $0x281] ss:$8 sm:$0xf0] }
 0x24c   : > { %1564 = vst [vmem:[#allocation2 + $0x2c8] sm:$0xff] %v1470_v20  ;;  %v1611_v38 = vor.u32 %v1610_v27, %v1609_v34  ;;  %v1659_v44 = vor.u32 %v1658_v28, %v1657_v35  ;;  %v1718_v56 = vld [vmem:[#allocation2 + $0x282] ss:$8 sm:$0xf0] }
 0x24d   : > { %v1366_v1 = vpop.f32.mrb[180].mxu0  ;;  %v1719_v6 = vor.u32 %v1718_v56, %v1717_v9  ;;  %v1778_v30 = vld [vmem:[#allocation2 + $0x283] ss:$8 sm:$0xf0] }
 0x24e   : > { %v1367_v21 = vadd.f32 %v8313_v2, %v1366_v1  ;;  %v6974_v43 = vpop.f32.mrb[181].mxu0  ;;  %v1674_v0 = vmax.f32 %v1611_v38, %v1659_v44  ;;  %v1779_v53 = vor.u32 %v1778_v30, %v1777_v42  ;;  %v1838_v10 = vld [vmem:[#allocation2 + $0x284] ss:$8 sm:$0xf0] }
 0x24f   : > { %v1369_v22 = vpop.f32.mrb[182].mxu0  ;;  %v1839_v20 = vor.u32 %v1838_v10, %v1837_v45  ;;  %v1898_v1 = vld [vmem:[#allocation2 + $0x285] ss:$8 sm:$0xf0] }
 0x250   : > { %v1471_v23 = vmax.f32 %v1367_v21, 0.0  ;;  %v1370_v25 = vadd.f32 %v8313_v2, %v1369_v22  ;;  %v6975_v26 = vpop.f32.mrb[183].mxu0  ;;  %v1734_v52 = vmax.f32 %v1674_v0, %v1719_v6  ;;  %v1958_v38 = vld [vmem:[#allocation2 + $0x286] ss:$8 sm:$0xf0] }
 0x251   : > { %v1897_v26 = vld [vmem:[#allocation2 + $0x285] ss:$8 sm:$0xf]  ;;  %v1957_v56 = vld [vmem:[#allocation2 + $0x286] ss:$8 sm:$0xf] }
 0x252   : > { %1565 = vst [vmem:[#allocation2 + $0x2d0] sm:$0xff] %v1471_v23  ;;  %v1472_v40 = vmax.f32 %v1370_v25, 0.0  ;;  %v1794_v14 = vmax.f32 %v1734_v52, %v1779_v53  ;;  %v1899_v35 = vor.u32 %v1898_v1, %v1897_v26  ;;  %v1959_v6 = vor.u32 %v1958_v38, %v1957_v56  ;;  %v2018_v30 = vld [vmem:[#allocation2 + $0x287] ss:$8 sm:$0xf0] }
 0x253   : > { %v7720_v38 = vld [vmem:[%s9374_s3 + $0x108] sm:$0xff]  }
 0x254   : > { %1566 = vst [vmem:[#allocation2 + $0x2d8] sm:$0xff] %v1472_v40  ;;  %v1854_v25 = vmax.f32 %v1794_v14, %v1839_v20  ;;  %v7724_v56 = vld [vmem:[%s9374_s3 + $0x128] sm:$0xff]  }
 0x255   : > { %v1374_v50 = vpop.f32.mrb[184].mxu0 }
 0x256   : > { %v1375_v58 = vadd.f32 %v8313_v2, %v1374_v50  ;;  %v6978_v31 = vpop.f32.mrb[185].mxu0 }
 0x257   : > { %v1377_v55 = vpop.f32.mrb[186].mxu0 }
 0x258   : > { %v1473_v39 = vmax.f32 %v1375_v58, 0.0  ;;  %v6979_v63 = vpop.f32.mrb[187].mxu0  ;;  %v1914_v55 = vmax.f32 %v1854_v25, %v1899_v35 }
 0x25a   : > { %1567 = vst [vmem:[#allocation2 + $0x2e0] sm:$0xff] %v1473_v39  ;;  %v1974_v10 = vmax.f32 %v1914_v55, %v1959_v6  ;;  %v7722_v55 = vld [vmem:[%s9374_s3 + $0x118] sm:$0xff]  }
 0x25b   : > { %v1613_v13 = vld [vmem:[#allocation2 + $0x2c0] ss:$8 sm:$0xf]  ;;  %v1661_v11 = vld [vmem:[#allocation2 + $0x2c1] ss:$8 sm:$0xf] }
 0x25c   : > { %v1721_v21 = vld [vmem:[#allocation2 + $0x2c2] ss:$8 sm:$0xf]  ;;  %v1781_v27 = vld [vmem:[#allocation2 + $0x2c3] ss:$8 sm:$0xf] }
 0x25d   : > { %v1841_v44 = vld [vmem:[#allocation2 + $0x2c4] ss:$8 sm:$0xf]  ;;  %v1901_v39 = vld [vmem:[#allocation2 + $0x2c5] ss:$8 sm:$0xf] }
 0x25e   : > { %v1961_v52 = vld [vmem:[#allocation2 + $0x2c6] ss:$8 sm:$0xf] }
 0x261   : > { %v1614_v15 = vld [vmem:[#allocation2 + $0x2c0] ss:$8 sm:$0x10]  ;;  %v1662_v2 = vld [vmem:[#allocation2 + $0x2c1] ss:$8 sm:$0x10] }
 0x262   : > { %v1615_v61 = vor.u32 %v1614_v15, %v1613_v13  ;;  %v1663_v18 = vor.u32 %v1662_v2, %v1661_v11  ;;  %v1722_v19 = vld [vmem:[#allocation2 + $0x2c2] ss:$8 sm:$0x10]  ;;  %v1782_v43 = vld [vmem:[#allocation2 + $0x2c3] ss:$8 sm:$0x10] }
 0x263   : > { %v1723_v23 = vor.u32 %v1722_v19, %v1721_v21  ;;  %v1842_v28 = vld [vmem:[#allocation2 + $0x2c4] ss:$8 sm:$0x10]  ;;  %v1783_v34 = vor.u32 %v1782_v43, %v1781_v27  ;;  %v1902_v50 = vld [vmem:[#allocation2 + $0x2c5] ss:$8 sm:$0x10]  ;;  %v2114_v43 = vor.u32 %v8491_v46, %v2110_v7 }
 0x264   : > { %v1675_v22 = vmax.f32 %v1615_v61, %v1663_v18  ;;  %v1843_v31 = vor.u32 %v1842_v28, %v1841_v44  ;;  %v1962_v63 = vld [vmem:[#allocation2 + $0x2c6] ss:$8 sm:$0x10]  ;;  %v1903_v9 = vor.u32 %v1902_v50, %v1901_v39  ;;  %v2022_v42 = vld [vmem:[#allocation2 + $0x2c7] ss:$8 sm:$0x10] }
 0x265   : > { %v1963_v45 = vor.u32 %v1962_v63, %v1961_v52  ;;  %v2017_v13 = vld [vmem:[#allocation2 + $0x287] ss:$8 sm:$0xf] }
 0x266   : > { %v1735_v40 = vmax.f32 %v1675_v22, %v1723_v23  ;;  %v2021_v11 = vld [vmem:[#allocation2 + $0x2c7] ss:$8 sm:$0xf]  ;;  %v2019_v15 = vor.u32 %v2018_v30, %v2017_v13 }
 0x267   : > { %v2023_v2 = vor.u32 %v2022_v42, %v2021_v11  ;;  %v7713_v46 = vld [vmem:[%s9374_s3 + $0xd0] sm:$0xff]   ;;  %v7714_v7 = vld [vmem:[%s9374_s3 + $0xd8] sm:$0xff]   ;;  %v7727_v39 = vld [vmem:[%s9374_s3 + $0x140] sm:$0xff]  }
 0x268   : > { %v1795_v58 = vmax.f32 %v1735_v40, %v1783_v34  ;;  %v2034_v61 = vmax.f32 %v1974_v10, %v2019_v15  ;;  %v7729_v63 = vld [vmem:[%s9374_s3 + $0x150] sm:$0xff]   ;;  %v7738_v13 = vld [vmem:[%s9376_s5 + $0x58] sm:$0xff]  }
 0x26a   : > { %v1855_v0 = vmax.f32 %v1795_v58, %v1843_v31  ;;  %v7721_v58 = vld [vmem:[%s9374_s3 + $0x110] sm:$0xff]  }
 0x26c   : > { %v1915_v53 = vmax.f32 %v1855_v0, %v1903_v9  ;;  %v7730_v0 = vld [vmem:[%s9374_s3 + $0x158] sm:$0xff]  }
 0x26d   : > { %v7734_v9 = vld [vmem:[%s9374_s3 + $0x178] sm:$0xff]  }
 0x26e   : > { %v1975_v14 = vmax.f32 %v1915_v53, %v1963_v45  ;;  %v7737_v45 = vld [vmem:[%s9376_s5 + $0x50] sm:$0xff]  }
 0x270   : > { %v2035_v18 = vmax.f32 %v1975_v14, %v2023_v2 }
 0x272   : > { %v8540_v19 = vpack.c.bf16 %v2035_v18, %v2034_v61  ;;  %v7739_v18 = vld [vmem:[%s9376_s5 + $0x60] sm:$0xff]  }
 0x274   : > { %7033 = vmatmul.mubr.bf16.gmra.mrb[8].mxu1 %v8540_v19  ;;  %v2116_v20 = vshll.u32 %v8540_v19, 16  ;;  %v2120_v1 = vshrl.u32 %v8540_v19, 16  ;;  %v2778_v21 = vrot.slane %v8540_v19, 2 }
 0x275   : > { %7052 = vmatprep.mubr.bf16.mxu1 %v8273_v4  ;;  %v7712_v4 = vld [vmem:[%s9374_s3 + $0xc8] sm:$0xff]  }
 0x276   : > { %v2118_v22 = vrot.slane %v2116_v20, 1  ;;  %v8555_v23 = vsel %vm2768_vm5, %v2776_v62, %v2778_v21  ;;  %v2962_v25 = vrot.slane %v2120_v1, 2  ;;  %v2963_v26 = vrot.slane %v2116_v20, 3 }
 0x277   : > { %v2418_v62 = vrot.slane %v8540_v19, 1  ;;  %v2602_v44 = vrot.slane %v2120_v1, 1  ;;  %v2603_v50 = vrot.slane %v2116_v20, 2 }
 0x278   : > { %v2119_v27 = vsel %vm2075_vm3, %v2114_v43, %v2118_v22  ;;  %v2122_v28 = vor.u32 %v2120_v1, %v2118_v22  ;;  %v8558_v40 = vor.u32 %v2963_v26, %v2962_v25  ;;  %v7740_v1 = vld [vmem:[%s9376_s5 + $0x68] sm:$0xff]   ;;  %v7742_v43 = vld [vmem:[%s9376_s5 + $0x78] sm:$0xff]  }
 0x279   : > { %7004 = vmatprep.mubr.bf16.mxu0 %v2119_v27  ;;  %v2604_v31 = vor.u32 %v2603_v50, %v2602_v44 }
 0x27a   : > { %7005 = vmatmul.mubr.bf16.gmra.mrb[196].mxu0 %v2122_v28  ;;  %v8566_v37 = vsel %vm2942_vm7, %v8528_v49, %v8558_v40  ;;  %v7719_v49 = vld [vmem:[%s9374_s3 + $0x100] sm:$0xff]  }
 0x27c   : > { %7053 = vmatmul.mubr.bf16.vlgmr.msra.gmra.mrb[0].mxu1 %v8343_v48  ;;  %v2419_v48 = vsel %vm2408_vm4, %v2416_v60, %v2418_v62  ;;  %v7718_v60 = vld [vmem:[%s9374_s3 + $0xf8] sm:$0xff]  }
 0x27d   : > { %7065 = vmatpush3.bf16.msra.mxu1 %v8414_v29  ;;  %7056 = vmatprep.mubr.bf16.mxu1 %v8439_v54  ;;  %v7715_v29 = vld [vmem:[%s9374_s3 + $0xe0] sm:$0xff]   ;;  %v7716_v54 = vld [vmem:[%s9374_s3 + $0xe8] sm:$0xff]  }
 0x27e   : > { %7066 = vmatprep.subr.bf16.mxu1 %v7712_v4 }
 0x281   : > { %7067 = vmatpush3.bf16.msra.mxu1 %v7712_v4 }
 0x282   : > { %7068 = vmatprep.subr.bf16.mxu1 %v7713_v46 }
 0x284   : > { %7057 = vmatmul.mubr.bf16.gmra.mrb[4].mxu1 %v8505_v32 }
 0x285   : > { %7069 = vmatpush3.bf16.msra.mxu1 %v7713_v46  ;;  %7060 = vmatprep.mubr.bf16.mxu1 %v2419_v48 }
 0x286   : > { %7070 = vmatprep.subr.bf16.mxu1 %v7714_v7 }
 0x289   : > { %7071 = vmatpush3.bf16.msra.mxu1 %v7714_v7 }
 0x28a   : > { %7072 = vmatprep.subr.bf16.mxu1 %v7715_v29 }
 0x28c   : > { %7061 = vmatmul.mubr.bf16.gmra.mrb[12].mxu1 %v2418_v62 }
 0x28d   : > { %7073 = vmatpush3.bf16.msra.mxu1 %v7715_v29  ;;  %7080 = vmatprep.mubr.bf16.mxu1 %v8293_v12 }
 0x28e   : > { %7074 = vmatprep.subr.bf16.mxu1 %v7716_v54 }
 0x291   : > { %7075 = vmatpush3.bf16.msra.mxu1 %v7716_v54 }
 0x292   : > { %7076 = vmatprep.subr.bf16.mxu1 %v7717_v3 }
 0x295   : > { %7077 = vmatpush3.bf16.msra.mxu1 %v7717_v3 }
 0x296   : > { %v8595_v32 = vpop.f32.mrb[188].mxu0  ;;  %7078 = vmatprep.subr.bf16.mxu1 %v7718_v60 }
 0x297   : > { %v8600_v12 = vpop.f32.mrb[189].mxu0 }
 0x298   : > { %v8602_v34 = vpop.f32.mrb[190].mxu0 }
 0x299   : > { %7079 = vmatpush3.bf16.msra.mxu1 %v7718_v60  ;;  %v8604_v35 = vpop.f32.mrb[191].mxu0 }
 0x29a   : > { %7092 = vmatprep.subr.bf16.mxu1 %v7719_v49 }
 0x29c   : > { %7081 = vmatmul.mubr.bf16.vlgmr.msra.gmra.mrb[0].mxu1 %v8364_v51  ;;  %v2605_v51 = vsel %vm2582_vm6, %v8520_v8, %v2604_v31  ;;  %v7725_v8 = vld [vmem:[%s9374_s3 + $0x130] sm:$0xff]  }
 0x29d   : > { %7084 = vmatprep.mubr.bf16.mxu1 %v8460_v47  ;;  %7093 = vmatpush3.bf16.msra.mxu1 %v7719_v49  ;;  %v7723_v47 = vld [vmem:[%s9374_s3 + $0x120] sm:$0xff]  }
 0x29e   : > { %7094 = vmatprep.subr.bf16.mxu1 %v7720_v38 }
 0x2a1   : > { %7095 = vmatpush3.bf16.msra.mxu1 %v7720_v38 }
 0x2a2   : > { %7096 = vmatprep.subr.bf16.mxu1 %v7721_v58 }
 0x2a4   : > { %7085 = vmatmul.mubr.bf16.gmra.mrb[4].mxu1 %v8526_v33  ;;  %v7726_v33 = vld [vmem:[%s9374_s3 + $0x138] sm:$0xff]  }
 0x2a5   : > { %7088 = vmatprep.mubr.bf16.mxu1 %v2605_v51  ;;  %7097 = vmatpush3.bf16.msra.mxu1 %v7721_v58 }
 0x2a6   : > { %7098 = vmatprep.subr.bf16.mxu1 %v7722_v55 }
 0x2a9   : > { %7099 = vmatpush3.bf16.msra.mxu1 %v7722_v55  ;;  %v6190_v55 = vld [vmem:[%s9375_s4] ss:$0 sm:$0xff] }
 0x2aa   : > { %7100 = vmatprep.subr.bf16.mxu1 %v7723_v47 }
 0x2ac   : > { %7089 = vmatmul.mubr.bf16.gmra.mrb[16].mxu1 %v2604_v31 }
 0x2ad   : > { %7101 = vmatpush3.bf16.msra.mxu1 %v7723_v47  ;;  %7108 = vmatprep.mubr.bf16.mxu1 %v8280_v24  ;;  %v7728_v24 = vld [vmem:[%s9374_s3 + $0x148] sm:$0xff]  }
 0x2ae   : > { %7102 = vmatprep.subr.bf16.mxu1 %v7724_v56 }
 0x2b1   : > { %7103 = vmatpush3.bf16.msra.mxu1 %v7724_v56 }
 0x2b2   : > { %7104 = vmatprep.subr.bf16.mxu1 %v7725_v8 }
 0x2b5   : > { %7105 = vmatpush3.bf16.msra.mxu1 %v7725_v8 }
 0x2b6   : > { %7106 = vmatprep.subr.bf16.mxu1 %v7726_v33 }
 0x2b9   : > { %7107 = vmatpush3.bf16.msra.mxu1 %v7726_v33 }
 0x2ba   : > { %7120 = vmatprep.subr.bf16.mxu1 %v7727_v39 }
 0x2bc   : > { %7109 = vmatmul.mubr.bf16.vlgmr.msra.gmra.mrb[0].mxu1 %v8352_v57  ;;  %v7731_v57 = vld [vmem:[%s9374_s3 + $0x160] sm:$0xff]  }
 0x2bd   : > { %7112 = vmatprep.mubr.bf16.mxu1 %v8448_v36  ;;  %7121 = vmatpush3.bf16.msra.mxu1 %v7727_v39  ;;  %v7732_v36 = vld [vmem:[%s9374_s3 + $0x168] sm:$0xff]  }
 0x2be   : > { %7122 = vmatprep.subr.bf16.mxu1 %v7728_v24 }
 0x2c1   : > { %7123 = vmatpush3.bf16.msra.mxu1 %v7728_v24 }
 0x2c2   : > { %7124 = vmatprep.subr.bf16.mxu1 %v7729_v63 }
 0x2c4   : > { %7113 = vmatmul.mubr.bf16.gmra.mrb[4].mxu1 %v8514_v41  ;;  %v7733_v41 = vld [vmem:[%s9374_s3 + $0x170] sm:$0xff]  }
 0x2c5   : > { %7116 = vmatprep.mubr.bf16.mxu1 %v8555_v23  ;;  %7125 = vmatpush3.bf16.msra.mxu1 %v7729_v63  ;;  %v8704_v23 = vld [vmem:[%s9376_s5] sm:$0xff]  }
 0x2c6   : > { %7126 = vmatprep.subr.bf16.mxu1 %v7730_v0 }
 0x2c9   : > { %7127 = vmatpush3.bf16.msra.mxu1 %v7730_v0 }
 0x2ca   : > { %7128 = vmatprep.subr.bf16.mxu1 %v7731_v57 }
 0x2cc   : > { %7117 = vmatmul.mubr.bf16.gmra.mrb[20].mxu1 %v2778_v21  ;;  %v7741_v21 = vld [vmem:[%s9376_s5 + $0x70] sm:$0xff]  }
 0x2cd   : > { %7129 = vmatpush3.bf16.msra.mxu1 %v7731_v57  ;;  %7136 = vmatprep.mubr.bf16.mxu1 %v8301_v17 }
 0x2ce   : > { %7130 = vmatprep.subr.bf16.mxu1 %v7732_v36 }
 0x2d1   : > { %7131 = vmatpush3.bf16.msra.mxu1 %v7732_v36 }
 0x2d2   : > { %7132 = vmatprep.subr.bf16.mxu1 %v7733_v41 }
 0x2d5   : > { %7133 = vmatpush3.bf16.msra.mxu1 %v7733_v41 }
 0x2d6   : > { %7134 = vmatprep.subr.bf16.mxu1 %v7734_v9 }
 0x2d9   : > { %7135 = vmatpush3.bf16.msra.mxu1 %v7734_v9 }
 0x2dc   : > { %7137 = vmatmul.mubr.bf16.vlgmr.msra.gmra.mrb[0].mxu1 %v8372_v59  ;;  %v7735_v59 = vld [vmem:[%s9376_s5 + $0x40] sm:$0xff]  }
 0x2dd   : > { %7140 = vmatprep.mubr.bf16.mxu1 %v8468_v5  ;;  %7148 = vmatprep.subr.bf16.mxu1 %v7735_v59 }
 0x2de   : > { %7149 = vmatpush3.bf16.msra.mxu1 %v7735_v59 }
 0x2e4   : > { %7141 = vmatmul.mubr.bf16.gmra.mrb[4].mxu1 %v8534_v16  ;;  %v7736_v16 = vld [vmem:[%s9376_s5 + $0x48] sm:$0xff]  }
 0x2e5   : > { %7144 = vmatprep.mubr.bf16.mxu1 %v8566_v37  ;;  %7150 = vmatprep.subr.bf16.mxu1 %v7736_v16 }
 0x2e6   : > { %7151 = vmatpush3.bf16.msra.mxu1 %v7736_v16 }
 0x2e7   : > { %7152 = vmatprep.subr.bf16.mxu1 %v7737_v45 }
 0x2ea   : > { %7153 = vmatpush3.bf16.msra.mxu1 %v7737_v45 }
 0x2eb   : > { %7154 = vmatprep.subr.bf16.mxu1 %v7738_v13 }
 0x2ec   : > { %7145 = vmatmul.mubr.bf16.gmra.mrb[24].mxu1 %v8558_v40 }
 0x2ee   : > { %7155 = vmatpush3.bf16.msra.mxu1 %v7738_v13 }
 0x2ef   : > { %7156 = vmatprep.subr.bf16.mxu1 %v7739_v18 }
 0x2f2   : > { %7157 = vmatpush3.bf16.msra.mxu1 %v7739_v18 }
 0x2f3   : > { %7158 = vmatprep.subr.bf16.mxu1 %v7740_v1 }
 0x2f6   : > { %7159 = vmatpush3.bf16.msra.mxu1 %v7740_v1 }
 0x2f7   : > { %7160 = vmatprep.subr.bf16.mxu1 %v7741_v21 }
 0x2fa   : > { %7161 = vmatpush3.bf16.msra.mxu1 %v7741_v21 }
 0x2fb   : > { %7162 = vmatprep.subr.bf16.mxu1 %v7742_v43 }
 0x2fe   : > { %7163 = vmatpush3.bf16.msra.mxu1 %v7742_v43 }
 0x2ff   : > { %7168 = vmatprep.subr.bf16.mxu1 %v8704_v23 }
 0x316   : > { %v8669_v17 = vpop.f32.mrb[192].mxu0 }
 0x317   : > { %v8671_v6 = vpop.f32.mrb[193].mxu0 }
 0x318   : > { %v8673_v30 = vpop.f32.mrb[194].mxu0 }
 0x319   : > { %v8675_v52 = vpop.f32.mrb[195].mxu0 }
 0x347   : > { %v7034_v5 = vpop.f32.mrb[8].mxu1 }
 0x348   : > { %v2371_v42 = vpop.f32.mrb[9].mxu1 }
 0x349   : > { %v7035_v53 = vpop.f32.mrb[10].mxu1 }
 0x34a   : > { %v2374_v10 = vpop.f32.mrb[11].mxu1 }
 0x34d   : > { %v7006_v11 = vpop.f32.mrb[196].mxu0 }
 0x34e   : > { %v2380_v14 = vadd.f32 %v7034_v5, %v7006_v11  ;;  %v2243_v15 = vpop.f32.mrb[197].mxu0 }
 0x34f   : > { %v2372_v2 = vadd.f32 %v2371_v42, %v2243_v15  ;;  %v7007_v61 = vpop.f32.mrb[198].mxu0 }
 0x350   : > { %v2246_v19 = vpop.f32.mrb[199].mxu0 }
 0x351   : > { %v2375_v20 = vadd.f32 %v2374_v10, %v2246_v19 }
 0x35f   : > { %v7062_v22 = vpop.f32.mrb[12].mxu1 }
 0x360   : > { %v2564_v25 = vadd.f32 %v7062_v22, %v2380_v14  ;;  %v2540_v26 = vpop.f32.mrb[13].mxu1 }
 0x361   : > { %v2562_v27 = vadd.f32 %v2540_v26, %v2372_v2  ;;  %v7063_v28 = vpop.f32.mrb[14].mxu1 }
 0x362   : > { %v2543_v40 = vpop.f32.mrb[15].mxu1 }
 0x363   : > { %v2563_v4 = vadd.f32 %v2543_v40, %v2375_v20 }
 0x37f   : > { %v7090_v37 = vpop.f32.mrb[16].mxu1 }
 0x380   : > { %v2750_v46 = vadd.f32 %v7090_v37, %v2564_v25  ;;  %v2726_v62 = vpop.f32.mrb[17].mxu1 }
 0x381   : > { %v2748_v7 = vadd.f32 %v2726_v62, %v2562_v27  ;;  %v7091_v48 = vpop.f32.mrb[18].mxu1 }
 0x382   : > { %v2729_v29 = vpop.f32.mrb[19].mxu1 }
 0x383   : > { %v2749_v54 = vadd.f32 %v2729_v29, %v2563_v4 }
 0x39f   : > { %v7118_v3 = vpop.f32.mrb[20].mxu1 }
 0x3a0   : > { %v2924_v60 = vadd.f32 %v7118_v3, %v2750_v46  ;;  %v2900_v49 = vpop.f32.mrb[21].mxu1 }
 0x3a1   : > { %v2922_v38 = vadd.f32 %v2900_v49, %v2748_v7  ;;  %v7119_v44 = vpop.f32.mrb[22].mxu1 }
 0x3a2   : > { %v2903_v50 = vpop.f32.mrb[23].mxu1 }
 0x3a3   : > { %v2923_v58 = vadd.f32 %v2903_v50, %v2749_v54 }
 0x3af   : > { %v7138_v31 = vpop.f32.mrb[0].mxu1 }
 0x3b0   : > { %v7516_v51 = vadd.f32 %v7138_v31, %v8595_v32  ;;  %v3054_v47 = vpop.f32.mrb[1].mxu1 }
 0x3b1   : > { %v7517_v56 = vadd.f32 %v3054_v47, %v8600_v12  ;;  %v7139_v8 = vpop.f32.mrb[2].mxu1 }
 0x3b2   : > { %v3120_v33 = vadd.f32 %v7516_v51, %v6190_v55  ;;  %v7518_v39 = vadd.f32 %v7139_v8, %v8602_v34  ;;  %v3057_v24 = vpop.f32.mrb[3].mxu1 }
 0x3b3   : > { %v3118_v63 = vadd.f32 %v7517_v56, %v6190_v55  ;;  %v7519_v0 = vadd.f32 %v3057_v24, %v8604_v35 }
 0x3b4   : > { %v3131_v57 = vmax.f32 %v3120_v33, 0.0  ;;  %v3121_v36 = vadd.f32 %v7518_v39, %v6190_v55 }
 0x3b5   : > { %v3129_v41 = vmax.f32 %v3118_v63, 0.0  ;;  %v3119_v9 = vadd.f32 %v7519_v0, %v6190_v55 }
 0x3b6   : > { %3142 = vst [vmem:[#allocation2 + $0x10] sm:$0xff] %v3131_v57  ;;  %v3132_v59 = vmax.f32 %v3121_v36, 0.0 }
 0x3b7   : > { %3140 = vst [vmem:[#allocation2] sm:$0xff] %v3129_v41  ;;  %v3130_v5 = vmax.f32 %v3119_v9, 0.0  ;;  %v7142_v32 = vpop.f32.mrb[4].mxu1 }
 0x3b8   : > { %3143 = vst [vmem:[#allocation2 + $0x18] sm:$0xff] %v3132_v59  ;;  %v7520_v12 = vadd.f32 %v7142_v32, %v8669_v17  ;;  %v3070_v16 = vpop.f32.mrb[5].mxu1  ;;  %v7744_v59 = vld [vmem:[%s9376_s5 + $0x8] sm:$0xff]   ;;  %v7746_v32 = vld [vmem:[%s9376_s5 + $0x18] sm:$0xff]  }
 0x3b9   : > { %3141 = vst [vmem:[#allocation2 + $0x8] sm:$0xff] %v3130_v5  ;;  %v7521_v34 = vadd.f32 %v3070_v16, %v8671_v6  ;;  %v7143_v42 = vpop.f32.mrb[6].mxu1  ;;  %v7745_v5 = vld [vmem:[%s9376_s5 + $0x10] sm:$0xff]  }
 0x3ba   : > { %v3124_v53 = vadd.f32 %v7520_v12, %v6190_v55  ;;  %v7522_v35 = vadd.f32 %v7143_v42, %v8673_v30  ;;  %v3073_v45 = vpop.f32.mrb[7].mxu1  ;;  %v7747_v12 = vld [vmem:[%s9376_s5 + $0x20] sm:$0xff]   ;;  %v7749_v16 = vld [vmem:[%s9376_s5 + $0x30] sm:$0xff]  }
 0x3bb   : > { %v3122_v10 = vadd.f32 %v7521_v34, %v6190_v55  ;;  %v7523_v13 = vadd.f32 %v3073_v45, %v8675_v52  ;;  %v7750_v34 = vld [vmem:[%s9376_s5 + $0x38] sm:$0xff]   ;;  %v7751_v42 = vld [vmem:[%s9379_s8] sm:$0xff]   ;;  %v7753_v45 = vld [vmem:[%s9379_s8 + $0x10] sm:$0xff]  }
 0x3bc   : > { %v3135_v11 = vmax.f32 %v3124_v53, 0.0  ;;  %v3125_v14 = vadd.f32 %v7522_v35, %v6190_v55  ;;  %v7755_v53 = vld [vmem:[%s8711_s17] sm:$0xff]   ;;  %v7752_v35 = vld [vmem:[%s9379_s8 + $0x8] sm:$0xff]  }
 0x3bd   : > { %v3133_v15 = vmax.f32 %v3122_v10, 0.0  ;;  %v3123_v2 = vadd.f32 %v7523_v13, %v6190_v55  ;;  %v7754_v10 = vld [vmem:[%s9379_s8 + $0x18] sm:$0xff]   ;;  %v7756_v13 = vld [vmem:[%s8711_s17 + $0x8] sm:$0xff]  }
 0x3be   : > { %3146 = vst [vmem:[#allocation2 + $0x30] sm:$0xff] %v3135_v11  ;;  %v3136_v61 = vmax.f32 %v3125_v14, 0.0  ;;  %v7757_v11 = vld [vmem:[%s8711_s17 + $0x10] sm:$0xff]   ;;  %v7758_v14 = vld [vmem:[%s8711_s17 + $0x18] sm:$0xff]  }
 0x3bf   : > { %3144 = vst [vmem:[#allocation2 + $0x20] sm:$0xff] %v3133_v15  ;;  %v3134_v17 = vmax.f32 %v3123_v2, 0.0  ;;  %v7146_v18 = vpop.f32.mrb[24].mxu1  ;;  %v7759_v15 = vld [vmem:[%s8711_s17 + $0x20] sm:$0xff]   ;;  %v7760_v2 = vld [vmem:[%s8711_s17 + $0x28] sm:$0xff]  }
 0x3c0   : > { %3147 = vst [vmem:[#allocation2 + $0x38] sm:$0xff] %v3136_v61  ;;  %v3110_v19 = vadd.f32 %v7146_v18, %v2924_v60  ;;  %v3086_v6 = vpop.f32.mrb[25].mxu1  ;;  %v3151_v43 = vld [vmem:[#allocation2] ss:$4 sm:$0xff]  ;;  %v3155_v22 = vld [vmem:[#allocation2 + $0x1] ss:$4 sm:$0xff] }
 0x3c1   : > { %3145 = vst [vmem:[#allocation2 + $0x28] sm:$0xff] %v3134_v17  ;;  %v3108_v20 = vadd.f32 %v3086_v6, %v2922_v38  ;;  %v7147_v1 = vpop.f32.mrb[26].mxu1  ;;  %v3159_v40 = vmax.f32 %v3151_v43, %v3155_v22  ;;  %v3162_v62 = vld [vmem:[#allocation2 + $0x2] ss:$4 sm:$0xff]  ;;  %v3169_v3 = vld [vmem:[#allocation2 + $0x3] ss:$4 sm:$0xff] }
 0x3c2   : > { %v3128_v30 = vadd.f32 %v6190_v55, %v3110_v19  ;;  %v3089_v21 = vpop.f32.mrb[27].mxu1  ;;  %v7761_v61 = vld [vmem:[%s8711_s17 + $0x30] sm:$0xff]   ;;  %v7762_v17 = vld [vmem:[%s8711_s17 + $0x38] sm:$0xff]   ;;  %v7763_v18 = vld [vmem:[%s8711_s17 + $0x40] sm:$0xff]  }
 0x3c3   : > { %v3126_v52 = vadd.f32 %v6190_v55, %v3108_v20  ;;  %v3109_v25 = vadd.f32 %v3089_v21, %v2923_v58  ;;  %v3166_v48 = vmax.f32 %v3159_v40, %v3162_v62  ;;  %v7764_v19 = vld [vmem:[%s8711_s17 + $0x48] sm:$0xff]   ;;  %v7765_v6 = vld [vmem:[%s8711_s17 + $0x50] sm:$0xff]   ;;  %v7766_v20 = vld [vmem:[%s8711_s17 + $0x58] sm:$0xff]  }
 0x3c4   : > { %v3139_v26 = vmax.f32 %v3128_v30, 0.0  ;;  %v7767_v1 = vld [vmem:[%s8711_s17 + $0x60] sm:$0xff]   ;;  %v7768_v30 = vld [vmem:[%s8711_s17 + $0x68] sm:$0xff]   ;;  %v7769_v21 = vld [vmem:[%s8711_s17 + $0x70] sm:$0xff]  }
 0x3c5   : > { %v3137_v27 = vmax.f32 %v3126_v52, 0.0  ;;  %v3127_v28 = vadd.f32 %v6190_v55, %v3109_v25  ;;  %v3173_v49 = vmax.f32 %v3166_v48, %v3169_v3  ;;  %v7770_v43 = vld [vmem:[%s8711_s17 + $0x78] ss:$0 sps:$4 sm:$0x77]   ;;  %v7771_v22 = vld [vmem:[%s9381_s10 + $0x40] sm:$0xff]   ;;  %v7772_v52 = vld [vmem:[%s9381_s10 + $0x48] sm:$0xff]  }
 0x3c6   : > { %3150 = vst [vmem:[#allocation2 + $0x50] sm:$0xff] %v3139_v26  ;;  %v7773_v25 = vld [vmem:[%s9381_s10 + $0x50] sm:$0xff]   ;;  %v7774_v26 = vld [vmem:[%s9381_s10 + $0x58] sm:$0xff]  }
 0x3c7   : > { %3148 = vst [vmem:[#allocation2 + $0x40] sm:$0xff] %v3137_v27  ;;  %v3138_v4 = vmax.f32 %v3127_v28, 0.0  ;;  %v7775_v27 = vld [vmem:[%s9381_s10 + $0x60] sm:$0xff]   ;;  %v7776_v28 = vld [vmem:[%s9381_s10 + $0x68] sm:$0xff]   ;;  %v7777_v40 = vld [vmem:[%s9381_s10 + $0x70] sm:$0xff]  }
 0x3c8   : > { %v3153_v37 = vld [vmem:[#allocation2 + $0x20] ss:$4 sm:$0xff]  ;;  %v3157_v46 = vld [vmem:[#allocation2 + $0x21] ss:$4 sm:$0xff]  ;;  %v3164_v29 = vld [vmem:[#allocation2 + $0x22] ss:$4 sm:$0xff] }
 0x3c9   : > { %3149 = vst [vmem:[#allocation2 + $0x48] sm:$0xff] %v3138_v4  ;;  %v3160_v7 = vmax.f32 %v3153_v37, %v3157_v46  ;;  %v3171_v60 = vld [vmem:[#allocation2 + $0x23] ss:$4 sm:$0xff] }
 0x3ca   : > { %v7778_v4 = vld [vmem:[%s9381_s10 + $0x78] sm:$0xff]   ;;  %v8818_v37 = vld [vmem:[%s9381_s10] sm:$0xff]  }
 0x3cb   : > { %v3167_v54 = vmax.f32 %v3160_v7, %v3164_v29 }
 0x3cd   : > { %v3174_v38 = vmax.f32 %v3167_v54, %v3171_v60  ;;  %v6223_v54 = vld [vmem:[%s9377_s6] ss:$0 sm:$0xff] }
 0x3cf   : > { %v3176_v44 = vpack.c.bf16 %v3174_v38, %v3173_v49 }
 0x3d0   : > { %v3154_v50 = vld [vmem:[#allocation2 + $0x40] ss:$4 sm:$0x3f]  ;;  %v3158_v58 = vld [vmem:[#allocation2 + $0x41] ss:$4 sm:$0x3f] }
 0x3d1   : > { %v3161_v31 = vmax.f32 %v3154_v50, %v3158_v58  ;;  %v3165_v55 = vld [vmem:[#allocation2 + $0x42] ss:$4 sm:$0x3f]  ;;  %v3214_v47 = vshll.u32 %v3176_v44, 16  ;;  %v3212_v24 = vshrl.u32 %v3176_v44, 16 }
 0x3d2   : > { %v3172_v56 = vld [vmem:[#allocation2 + $0x43] ss:$4 sm:$0x3f] }
 0x3d3   : > { %v3168_v51 = vmax.f32 %v3161_v31, %v3165_v55  ;;  %v3216_v39 = vrot.slane %v3214_v47, 1 }
 0x3d5   : > { %v3175_v8 = vmax.f32 %v3168_v51, %v3172_v56  ;;  %v3217_v0 = vor.u32 %v3216_v39, %v3212_v24 }
 0x3d7   : > { %v3177_v33 = vpack.c.bf16 %v3175_v8, %v3175_v8  ;;  %v8827_v8 = vld [vmem:[%s9380_s9] ss:$0 sm:$0xff] }
 0x3d9   : > { %v3219_v63 = vshll.u32 %v3177_v33, 16  ;;  %v3223_v36 = vshrl.u32 %v3177_v33, 16 }
 0x3db   : > { %v3221_v57 = vrot.slane %v3219_v63, 1 }
 0x3dd   : > { %v3222_v41 = vsel %vm2075_vm3, %v3217_v0, %v3221_v57  ;;  %v3225_v9 = vor.u32 %v3223_v36, %v3221_v57 }
 0x3de   : > { %7164 = vmatprep.mubr.bf16.mxu1 %v3222_v41 }
 0x3df   : > { %7165 = vmatmul.mubr.bf16.vlgmr.msra.gmra.mrb[28].mxu1 %v3225_v9 }
 0x3e0   : > { %7169 = vmatpush3.bf16.msra.mxu1 %v8704_v23  ;;  %7184 = vmatprep.mubr.bf16.mxu1 %v3176_v44  ;;  %v7748_v23 = vld [vmem:[%s9376_s5 + $0x28] sm:$0xff]  }
 0x3e1   : > { %7170 = vmatprep.subr.bf16.mxu1 %v7744_v59 }
 0x3e4   : > { %7171 = vmatpush3.bf16.msra.mxu1 %v7744_v59 }
 0x3e5   : > { %7172 = vmatprep.subr.bf16.mxu1 %v7745_v5 }
 0x3e8   : > { %7173 = vmatpush3.bf16.msra.mxu1 %v7745_v5 }
 0x3e9   : > { %7174 = vmatprep.subr.bf16.mxu1 %v7746_v32 }
 0x3ec   : > { %7175 = vmatpush3.bf16.msra.mxu1 %v7746_v32 }
 0x3ed   : > { %7176 = vmatprep.subr.bf16.mxu1 %v7747_v12 }
 0x3f0   : > { %7177 = vmatpush3.bf16.msra.mxu1 %v7747_v12 }
 0x3f1   : > { %7178 = vmatprep.subr.bf16.mxu1 %v7748_v23 }
 0x3f4   : > { %7179 = vmatpush3.bf16.msra.mxu1 %v7748_v23 }
 0x3f5   : > { %7180 = vmatprep.subr.bf16.mxu1 %v7749_v16 }
 0x3f8   : > { %7181 = vmatpush3.bf16.msra.mxu1 %v7749_v16 }
 0x3f9   : > { %7182 = vmatprep.subr.bf16.mxu1 %v7750_v34 }
 0x3fc   : > { %7183 = vmatpush3.bf16.msra.mxu1 %v7750_v34 }
 0x3fd   : > { %7188 = vmatprep.subr.bf16.mxu1 %v7751_v42 }
 0x3ff   : > { %7185 = vmatmul.mubr.bf16.vlgmr.msra.gmra.mrb[32].mxu1 %v3177_v33 }
 0x400   : > { %7189 = vmatpush3.bf16.msra.mxu1 %v7751_v42  ;;  %7196 = vmatprep.mubr.msk.bf16.mxu1 %vm3591_vm8, %v7755_v53 }
 0x401   : > { %7190 = vmatprep.subr.bf16.mxu1 %v7752_v35 }
 0x404   : > { %7191 = vmatpush3.bf16.msra.mxu1 %v7752_v35 }
 0x405   : > { %7192 = vmatprep.subr.bf16.mxu1 %v7753_v45 }
 0x408   : > { %7193 = vmatpush3.bf16.msra.mxu1 %v7753_v45 }
 0x409   : > { %7194 = vmatprep.subr.bf16.mxu1 %v7754_v10 }
 0x40c   : > { %7195 = vmatpush3.bf16.msra.mxu1 %v7754_v10 }
 0x40d   : > { %7228 = vmatprep.subr.bf16.mxu1 %v7771_v22 }
 0x40f   : > { %7197 = vmatmul.mubr.msk.bf16.vlgmr.msra.gmra.mrb[36].mxu1 %vm3591_vm8, %v7756_v13 }
 0x410   : > { %7200 = vmatprep.mubr.msk.bf16.mxu1 %vm3591_vm8, %v7757_v11  ;;  %7229 = vmatpush3.bf16.msra.mxu1 %v7771_v22 }
 0x411   : > { %7230 = vmatprep.subr.bf16.mxu1 %v7772_v52 }
 0x414   : > { %7231 = vmatpush3.bf16.msra.mxu1 %v7772_v52 }
 0x415   : > { %7232 = vmatprep.subr.bf16.mxu1 %v7773_v25 }
 0x417   : > { %7201 = vmatmul.mubr.msk.bf16.gmra.mrb[40].mxu1 %vm3591_vm8, %v7758_v14 }
 0x418   : > { %7204 = vmatprep.mubr.msk.bf16.mxu1 %vm3591_vm8, %v7759_v15  ;;  %7233 = vmatpush3.bf16.msra.mxu1 %v7773_v25 }
 0x419   : > { %7234 = vmatprep.subr.bf16.mxu1 %v7774_v26 }
 0x41c   : > { %7235 = vmatpush3.bf16.msra.mxu1 %v7774_v26 }
 0x41d   : > { %7236 = vmatprep.subr.bf16.mxu1 %v7775_v27 }
 0x41f   : > { %7205 = vmatmul.mubr.msk.bf16.gmra.mrb[44].mxu1 %vm3591_vm8, %v7760_v2 }
 0x420   : > { %7208 = vmatprep.mubr.msk.bf16.mxu1 %vm3591_vm8, %v7761_v61  ;;  %7237 = vmatpush3.bf16.msra.mxu1 %v7775_v27 }
 0x421   : > { %7238 = vmatprep.subr.bf16.mxu1 %v7776_v28 }
 0x424   : > { %7239 = vmatpush3.bf16.msra.mxu1 %v7776_v28 }
 0x425   : > { %7240 = vmatprep.subr.bf16.mxu1 %v7777_v40 }
 0x427   : > { %7209 = vmatmul.mubr.msk.bf16.gmra.mrb[48].mxu1 %vm3591_vm8, %v7762_v17 }
 0x428   : > { %7212 = vmatprep.mubr.msk.bf16.mxu1 %vm3591_vm8, %v7763_v18  ;;  %7241 = vmatpush3.bf16.msra.mxu1 %v7777_v40 }
 0x429   : > { %7242 = vmatprep.subr.bf16.mxu1 %v7778_v4 }
 0x42c   : > { %7243 = vmatpush3.bf16.msra.mxu1 %v7778_v4 }
 0x42d   : > { %7260 = vmatprep.subr.bf16.mxu1 %v8818_v37 }
 0x42f   : > { %7213 = vmatmul.mubr.msk.bf16.gmra.mrb[52].mxu1 %vm3591_vm8, %v7764_v19 }
 0x430   : > { %7216 = vmatprep.mubr.msk.bf16.mxu1 %vm3591_vm8, %v7765_v6 }
 0x437   : > { %7217 = vmatmul.mubr.msk.bf16.gmra.mrb[56].mxu1 %vm3591_vm8, %v7766_v20 }
 0x438   : > { %7220 = vmatprep.mubr.msk.bf16.mxu1 %vm3591_vm8, %v7767_v1 }
 0x43f   : > { %7221 = vmatmul.mubr.msk.bf16.gmra.mrb[60].mxu1 %vm3591_vm8, %v7768_v30 }
 0x440   : > { %7224 = vmatprep.mubr.msk.bf16.mxu1 %vm3591_vm8, %v7769_v21 }
 0x447   : > { %7225 = vmatmul.mubr.msk.bf16.gmra.mrb[64].mxu1 %vm3591_vm8, %v7770_v43 }
 0x4b2   : > { %v7166_v46 = vpop.f32.mrb[28].mxu1 }
 0x4b3   : > { %v3310_v62 = vpop.f32.mrb[29].mxu1 }
 0x4b4   : > { %v7167_v7 = vpop.f32.mrb[30].mxu1 }
 0x4b5   : > { %v3313_v48 = vpop.f32.mrb[31].mxu1 }
 0x4d2   : > { %v7186_v29 = vpop.f32.mrb[32].mxu1 }
 0x4d3   : > { %v3415_v3 = vadd.f32 %v7186_v29, %v7166_v46  ;;  %v3406_v60 = vpop.f32.mrb[33].mxu1 }
 0x4d4   : > { %v3407_v49 = vadd.f32 %v3406_v60, %v3310_v62  ;;  %v7187_v38 = vpop.f32.mrb[34].mxu1 }
 0x4d5   : > { %v3429_v44 = vadd.f32 %v6223_v54, %v3415_v3  ;;  %v3409_v50 = vpop.f32.mrb[35].mxu1 }
 0x4d6   : > { %v3427_v58 = vadd.f32 %v6223_v54, %v3407_v49  ;;  %v3410_v31 = vadd.f32 %v3409_v50, %v3313_v48 }
 0x4d7   : > { %v3432_v55 = vmax.f32 %v3429_v44, 0.0 }
 0x4d8   : > { %v3430_v51 = vmax.f32 %v3427_v58, 0.0  ;;  %v3428_v47 = vadd.f32 %v6223_v54, %v3410_v31 }
 0x4d9   : > { %3435 = vst [vmem:[#allocation2 + $0x10] sm:$0x1f] %v3432_v55 }
 0x4da   : > { %3433 = vst [vmem:[#allocation2] sm:$0xff] %v3430_v51  ;;  %v3431_v56 = vmax.f32 %v3428_v47, 0.0 }
 0x4dc   : > { %3434 = vst [vmem:[#allocation2 + $0x8] sm:$0xff] %v3431_v56 }
 0x4e2   : > { %v7198_v33 = vpop.f32.mrb[36].mxu1 }
 0x4e3   : > { %v3436_v39 = vld [vmem:[#allocation2] ss:$4 sm:$0x1f]  ;;  %v3437_v24 = vld [vmem:[#allocation2 + $0x1] ss:$4 sm:$0x1f]  ;;  %v3683_v63 = vadd.f32 %v7198_v33, %v8827_v8 }
 0x4e4   : > { %v3438_v0 = vmax.f32 %v3436_v39, %v3437_v24  ;;  %v3439_v57 = vld [vmem:[#allocation2 + $0x2] ss:$4 sm:$0x1f]  ;;  %v3674_v41 = vpop.f32.mrb[37].mxu1 }
 0x4e5   : > { %v3802_v36 = vmax.f32 %v3683_v63, 0.0  ;;  %v3441_v59 = vld [vmem:[#allocation2 + $0x3] ss:$4 sm:$0x1f]  ;;  %v3675_v5 = vadd.f32 %v8827_v8, %v3674_v41  ;;  %v7199_v32 = vpop.f32.mrb[38].mxu1 }
 0x4e6   : > { %v3440_v9 = vmax.f32 %v3438_v0, %v3439_v57  ;;  %v3686_v12 = vadd.f32 %v7199_v32, %v8827_v8  ;;  %v3677_v23 = vpop.f32.mrb[39].mxu1 }
 0x4e7   : > { %3833 = vst [vmem:[#allocation2 + $0x10] sm:$0xff] %v3802_v36  ;;  %v3800_v34 = vmax.f32 %v3675_v5, 0.0  ;;  %v3678_v42 = vadd.f32 %v8827_v8, %v3677_v23 }
 0x4e8   : > { %v3442_v16 = vmax.f32 %v3440_v9, %v3441_v59  ;;  %v3803_v53 = vmax.f32 %v3686_v12, 0.0 }
 0x4e9   : > { %3831 = vst [vmem:[#allocation2] sm:$0xff] %v3800_v34  ;;  %v3801_v35 = vmax.f32 %v3678_v42, 0.0 }
 0x4ea   : > { %5886 = vst [vmem:[%s8835_s27] sm:$0x1f] %v3442_v16  ;;  %v7202_v45 = vpop.f32.mrb[40].mxu1  ;;  %3834 = vst [vmem:[#allocation2 + $0x18] sm:$0xff] %v3803_v53 }
 0x4eb   : > { %v3699_v10 = vadd.f32 %v7202_v45, %v8827_v8  ;;  %v3690_v13 = vpop.f32.mrb[41].mxu1  ;;  %3832 = vst [vmem:[#allocation2 + $0x8] sm:$0xff] %v3801_v35 }
 0x4ec   : > { %v3691_v11 = vadd.f32 %v8827_v8, %v3690_v13  ;;  %v7203_v14 = vpop.f32.mrb[42].mxu1 }
 0x4ed   : > { %v3806_v15 = vmax.f32 %v3699_v10, 0.0  ;;  %v3702_v2 = vadd.f32 %v7203_v14, %v8827_v8  ;;  %v3693_v61 = vpop.f32.mrb[43].mxu1 }
 0x4ee   : > { %v3804_v17 = vmax.f32 %v3691_v11, 0.0  ;;  %v3694_v18 = vadd.f32 %v8827_v8, %v3693_v61 }
 0x4ef   : > { %3837 = vst [vmem:[#allocation2 + $0x30] sm:$0xff] %v3806_v15  ;;  %v3807_v19 = vmax.f32 %v3702_v2, 0.0 }
 0x4f0   : > { %3835 = vst [vmem:[#allocation2 + $0x20] sm:$0xff] %v3804_v17  ;;  %v3805_v6 = vmax.f32 %v3694_v18, 0.0 }
 0x4f1   : > { %3838 = vst [vmem:[#allocation2 + $0x38] sm:$0xff] %v3807_v19  ;;  %v3864_v1 = vld [vmem:[#allocation2 + $0x10] ss:$2 sm:$0xff]  ;;  %v3891_v30 = vld [vmem:[#allocation2 + $0x11] ss:$2 sm:$0xff] }
 0x4f2   : > { %3836 = vst [vmem:[#allocation2 + $0x28] sm:$0xff] %v3805_v6  ;;  %v7206_v20 = vpop.f32.mrb[44].mxu1  ;;  %v3862_v22 = vld [vmem:[#allocation2] ss:$2 sm:$0xff]  ;;  %v3889_v52 = vld [vmem:[#allocation2 + $0x1] ss:$2 sm:$0xff]  ;;  %v3917_v25 = vmax.f32 %v3864_v1, %v3891_v30 }
 0x4f3   : > { %v3715_v21 = vadd.f32 %v7206_v20, %v8827_v8  ;;  %v3706_v43 = vpop.f32.mrb[45].mxu1  ;;  %v3916_v28 = vmax.f32 %v3862_v22, %v3889_v52 }
 0x4f4   : > { %v3707_v26 = vadd.f32 %v8827_v8, %v3706_v43  ;;  %v7207_v27 = vpop.f32.mrb[46].mxu1 }
 0x4f5   : > { %v3810_v40 = vmax.f32 %v3715_v21, 0.0  ;;  %v3718_v4 = vadd.f32 %v7207_v27, %v8827_v8  ;;  %v3709_v46 = vpop.f32.mrb[47].mxu1  ;;  %v8848_v48 = vpack.c.bf16 %v3917_v25, %v3916_v28 }
 0x4f6   : > { %v3808_v62 = vmax.f32 %v3707_v26, 0.0  ;;  %v3710_v7 = vadd.f32 %v8827_v8, %v3709_v46 }
 0x4f7   : > { %3841 = vst [vmem:[#allocation2 + $0x50] sm:$0xff] %v3810_v40  ;;  %v3811_v29 = vmax.f32 %v3718_v4, 0.0  ;;  %v3974_v49 = vshrl.u32 %v8848_v48, 16  ;;  %v3976_v58 = vshll.u32 %v8848_v48, 16  ;;  %v4357_v41 = vrot.slane %v8848_v48, 1 }
 0x4f8   : > { %3839 = vst [vmem:[#allocation2 + $0x40] sm:$0xff] %v3808_v62  ;;  %v3809_v54 = vmax.f32 %v3710_v7, 0.0  ;;  %v3867_v3 = vld [vmem:[#allocation2 + $0x30] ss:$2 sm:$0xff]  ;;  %v3894_v60 = vld [vmem:[#allocation2 + $0x31] ss:$2 sm:$0xff] }
 0x4f9   : > { %3842 = vst [vmem:[#allocation2 + $0x58] sm:$0xff] %v3811_v29  ;;  %v3865_v38 = vld [vmem:[#allocation2 + $0x20] ss:$2 sm:$0xff]  ;;  %v3892_v44 = vld [vmem:[#allocation2 + $0x21] ss:$2 sm:$0xff]  ;;  %v3919_v50 = vmax.f32 %v3867_v3, %v3894_v60  ;;  %v4556_v51 = vrot.slane %v3974_v49, 1 }
 0x4fa   : > { %3840 = vst [vmem:[#allocation2 + $0x48] sm:$0xff] %v3809_v54  ;;  %v7210_v31 = vpop.f32.mrb[48].mxu1  ;;  %v3918_v55 = vmax.f32 %v3865_v38, %v3892_v44  ;;  %v4557_v33 = vrot.slane %v3976_v58, 2  ;;  %v4970_v39 = vrot.slane %v3974_v49, 2  ;;  %v4971_v24 = vrot.slane %v3976_v58, 3 }
 0x4fb   : > { %v3731_v47 = vadd.f32 %v7210_v31, %v8827_v8  ;;  %v3722_v56 = vpop.f32.mrb[49].mxu1  ;;  %v3978_v36 = vrot.slane %v3976_v58, 1  ;;  %v4771_v12 = vrot.slane %v8848_v48, 2 }
 0x4fc   : > { %v3723_v63 = vadd.f32 %v8827_v8, %v3722_v56  ;;  %v7211_v0 = vpop.f32.mrb[50].mxu1  ;;  %v8854_v57 = vpack.c.bf16 %v3919_v50, %v3918_v55  ;;  %v4558_v32 = vor.u32 %v4557_v33, %v4556_v51  ;;  %v4972_v10 = vor.u32 %v4971_v24, %v4970_v39  ;;  %v7780_v50 = vld [vmem:[%s9381_s10 + $0x8] sm:$0xff]  }
 0x4fd   : > { %v3814_v9 = vmax.f32 %v3731_v47, 0.0  ;;  %v3734_v59 = vadd.f32 %v7211_v0, %v8827_v8  ;;  %v3725_v5 = vpop.f32.mrb[51].mxu1  ;;  %v3979_v11 = vor.u32 %v3978_v36, %v3974_v49 }
 0x4fe   : > { %v3812_v23 = vmax.f32 %v3723_v63, 0.0  ;;  %v3726_v16 = vadd.f32 %v8827_v8, %v3725_v5  ;;  %v3981_v34 = vshll.u32 %v8854_v57, 16  ;;  %v3985_v42 = vshrl.u32 %v8854_v57, 16 }
 0x4ff   : > { %3845 = vst [vmem:[#allocation2 + $0x70] sm:$0xff] %v3814_v9  ;;  %v3815_v53 = vmax.f32 %v3734_v59, 0.0  ;;  %v4358_v35 = vrot.slane %v8854_v57, 1  ;;  %v4772_v45 = vrot.slane %v8854_v57, 2 }
 0x500   : > { %3843 = vst [vmem:[#allocation2 + $0x60] sm:$0xff] %v3812_v23  ;;  %v3813_v13 = vmax.f32 %v3726_v16, 0.0  ;;  %v3983_v14 = vrot.slane %v3981_v34, 1  ;;  %v3870_v15 = vld [vmem:[#allocation2 + $0x50] ss:$2 sm:$0xff]  ;;  %v4559_v6 = vrot.slane %v3985_v42, 1 }
 0x501   : > { %v3897_v2 = vld [vmem:[#allocation2 + $0x51] ss:$2 sm:$0xff]  ;;  %3846 = vst [vmem:[#allocation2 + $0x78] sm:$0xff] %v3815_v53  ;;  %v3868_v61 = vld [vmem:[#allocation2 + $0x40] ss:$2 sm:$0xff]  ;;  %v8865_v19 = vsel %vm2408_vm4, %v4357_v41, %v4358_v35  ;;  %v4560_v20 = vrot.slane %v3981_v34, 2  ;;  %v8869_v43 = vsel %vm2768_vm5, %v4771_v12, %v4772_v45 }
 0x502   : > { %v3895_v17 = vld [vmem:[#allocation2 + $0x41] ss:$2 sm:$0xff]  ;;  %v3921_v18 = vmax.f32 %v3870_v15, %v3897_v2  ;;  %3844 = vst [vmem:[#allocation2 + $0x68] sm:$0xff] %v3813_v13  ;;  %v7214_v1 = vpop.f32.mrb[52].mxu1  ;;  %v3984_v30 = vsel %vm2075_vm3, %v3979_v11, %v3983_v14  ;;  %v4973_v26 = vrot.slane %v3985_v42, 2  ;;  %v4974_v27 = vrot.slane %v3981_v34, 3 }
 0x503   : > { %v3920_v21 = vmax.f32 %v3868_v61, %v3895_v17  ;;  %v3747_v22 = vadd.f32 %v7214_v1, %v8827_v8  ;;  %v3738_v52 = vpop.f32.mrb[53].mxu1  ;;  %7244 = vmatprep.mubr.bf16.mxu1 %v3984_v30  ;;  %v4561_v25 = vor.u32 %v4560_v20, %v4559_v6  ;;  %v3987_v51 = vor.u32 %v3985_v42, %v3983_v14  ;;  %v7782_v1 = vld [vmem:[%s9381_s10 + $0x18] sm:$0xff]  }
 0x504   : > { %v3739_v28 = vadd.f32 %v8827_v8, %v3738_v52  ;;  %v7215_v40 = vpop.f32.mrb[54].mxu1  ;;  %v4975_v54 = vor.u32 %v4974_v27, %v4973_v26 }
 0x505   : > { %v8873_v4 = vpack.c.bf16 %v3921_v18, %v3920_v21  ;;  %v3818_v46 = vmax.f32 %v3747_v22, 0.0  ;;  %v3750_v62 = vadd.f32 %v7215_v40, %v8827_v8  ;;  %v3741_v7 = vpop.f32.mrb[55].mxu1  ;;  %v8877_v29 = vsel %vm2582_vm6, %v4558_v32, %v4561_v25 }
 0x506   : > { %v3816_v3 = vmax.f32 %v3739_v28, 0.0  ;;  %v3742_v60 = vadd.f32 %v8827_v8, %v3741_v7  ;;  %v8888_v55 = vsel %vm2942_vm7, %v4972_v10, %v4975_v54 }
 0x507   : > { %v3989_v49 = vshll.u32 %v8873_v4, 16  ;;  %v3993_v38 = vshrl.u32 %v8873_v4, 16  ;;  %3849 = vst [vmem:[#allocation2 + $0x90] sm:$0xff] %v3818_v46  ;;  %v3819_v44 = vmax.f32 %v3750_v62, 0.0  ;;  %v4360_v58 = vrot.slane %v8873_v4, 1 }
 0x508   : > { %v4774_v31 = vrot.slane %v8873_v4, 2  ;;  %3847 = vst [vmem:[#allocation2 + $0x80] sm:$0xff] %v3816_v3  ;;  %v3817_v47 = vmax.f32 %v3742_v60, 0.0  ;;  %v3874_v33 = vld [vmem:[#allocation2 + $0x70] ss:$2 sm:$0xff] }
 0x509   : > { %v3991_v56 = vrot.slane %v3989_v49, 1  ;;  %v3901_v39 = vld [vmem:[#allocation2 + $0x71] ss:$2 sm:$0xff]  ;;  %3850 = vst [vmem:[#allocation2 + $0x98] sm:$0xff] %v3819_v44  ;;  %v3872_v24 = vld [vmem:[#allocation2 + $0x60] ss:$2 sm:$0xff]  ;;  %v8891_v36 = vsel %vm2408_vm4, %v4358_v35, %v4360_v58 }
 0x50a   : > { %v3899_v63 = vld [vmem:[#allocation2 + $0x61] ss:$2 sm:$0xff]  ;;  %v3923_v0 = vmax.f32 %v3874_v33, %v3901_v39  ;;  %v4563_v41 = vrot.slane %v3993_v38, 1  ;;  %v4564_v9 = vrot.slane %v3989_v49, 2  ;;  %3848 = vst [vmem:[#allocation2 + $0x88] sm:$0xff] %v3817_v47  ;;  %v7218_v59 = vpop.f32.mrb[56].mxu1  ;;  %v8897_v12 = vsel %vm2768_vm5, %v4772_v45, %v4774_v31 }
 0x50b   : > { %v3992_v5 = vsel %vm2075_vm3, %v3987_v51, %v3991_v56  ;;  %v3922_v32 = vmax.f32 %v3872_v24, %v3899_v63  ;;  %v3763_v23 = vadd.f32 %v7218_v59, %v8827_v8  ;;  %v3754_v16 = vpop.f32.mrb[57].mxu1  ;;  %v4977_v42 = vrot.slane %v3993_v38, 2  ;;  %v7781_v45 = vld [vmem:[%s9381_s10 + $0x10] sm:$0xff]  }
 0x50c   : > { %7245 = vmatmul.mubr.bf16.vlgmr.msra.gmra.mrb[68].mxu1 %v3992_v5  ;;  %v4565_v34 = vor.u32 %v4564_v9, %v4563_v41  ;;  %v4978_v53 = vrot.slane %v3989_v49, 3  ;;  %v3755_v35 = vadd.f32 %v8827_v8, %v3754_v16  ;;  %v7219_v10 = vpop.f32.mrb[58].mxu1 }
 0x50d   : > { %v8901_v13 = vpack.c.bf16 %v3923_v0, %v3922_v32  ;;  %7261 = vmatpush3.bf16.msra.mxu1 %v8818_v37  ;;  %v3822_v11 = vmax.f32 %v3763_v23, 0.0  ;;  %v3766_v14 = vadd.f32 %v7219_v10, %v8827_v8  ;;  %v3757_v15 = vpop.f32.mrb[59].mxu1 }
 0x50e   : > { %7262 = vmatprep.subr.bf16.mxu1 %v7780_v50  ;;  %v8909_v2 = vsel %vm2582_vm6, %v4561_v25, %v4565_v34  ;;  %v4979_v61 = vor.u32 %v4978_v53, %v4977_v42  ;;  %v3820_v17 = vmax.f32 %v3755_v35, 0.0  ;;  %v3758_v18 = vadd.f32 %v8827_v8, %v3757_v15  ;;  %v7784_v53 = vld [vmem:[%s9381_s10 + $0x28] sm:$0xff]  }
 0x50f   : > { %v3997_v6 = vshll.u32 %v8901_v13, 16  ;;  %v4001_v37 = vshrl.u32 %v8901_v13, 16  ;;  %3853 = vst [vmem:[#allocation2 + $0xb0] sm:$0xff] %v3822_v11  ;;  %v3823_v20 = vmax.f32 %v3766_v14, 0.0  ;;  %v4362_v30 = vrot.slane %v8901_v13, 1 }
 0x510   : > { %v4776_v21 = vrot.slane %v8901_v13, 2  ;;  %v8920_v22 = vsel %vm2942_vm7, %v4975_v54, %v4979_v61  ;;  %3851 = vst [vmem:[#allocation2 + $0xa0] sm:$0xff] %v3820_v17  ;;  %v3821_v52 = vmax.f32 %v3758_v18, 0.0  ;;  %v3995_v25 = vor.u32 %v3993_v38, %v3991_v56  ;;  %v3877_v27 = vld [vmem:[#allocation2 + $0x90] ss:$2 sm:$0xff] }
 0x511   : > { %v3999_v26 = vrot.slane %v3997_v6, 1  ;;  %v3904_v28 = vld [vmem:[#allocation2 + $0x91] ss:$2 sm:$0xff]  ;;  %7263 = vmatpush3.bf16.msra.mxu1 %v7780_v50  ;;  %3854 = vst [vmem:[#allocation2 + $0xb8] sm:$0xff] %v3823_v20  ;;  %v3875_v40 = vld [vmem:[#allocation2 + $0x80] ss:$2 sm:$0xff]  ;;  %v8925_v7 = vsel %vm2408_vm4, %v4360_v58, %v4362_v30 }
 0x512   : > { %v3902_v46 = vld [vmem:[#allocation2 + $0x81] ss:$2 sm:$0xff]  ;;  %v3925_v62 = vmax.f32 %v3877_v27, %v3904_v28  ;;  %7264 = vmatprep.subr.bf16.mxu1 %v7781_v45  ;;  %v4567_v3 = vrot.slane %v4001_v37, 1  ;;  %v4568_v54 = vrot.slane %v3997_v6, 2  ;;  %3852 = vst [vmem:[#allocation2 + $0xa8] sm:$0xff] %v3821_v52  ;;  %v7222_v60 = vpop.f32.mrb[60].mxu1  ;;  %v8933_v44 = vsel %vm2768_vm5, %v4774_v31, %v4776_v21 }
 0x513   : > { %v4000_v49 = vsel %vm2075_vm3, %v3995_v25, %v3999_v26  ;;  %v3924_v38 = vmax.f32 %v3875_v40, %v3902_v46  ;;  %v3779_v50 = vadd.f32 %v7222_v60, %v8827_v8  ;;  %v3770_v51 = vpop.f32.mrb[61].mxu1  ;;  %v4981_v47 = vrot.slane %v4001_v37, 2  ;;  %v7783_v31 = vld [vmem:[%s9381_s10 + $0x20] sm:$0xff]  }
 0x514   : > { %7248 = vmatprep.mubr.bf16.mxu1 %v4000_v49  ;;  %v4569_v58 = vor.u32 %v4568_v54, %v4567_v3  ;;  %v4982_v56 = vrot.slane %v3997_v6, 3  ;;  %v3771_v33 = vadd.f32 %v8827_v8, %v3770_v51  ;;  %v7223_v39 = vpop.f32.mrb[62].mxu1  ;;  %v4003_v14 = vor.u32 %v4001_v37, %v3999_v26 }
 0x515   : > { %v8937_v24 = vpack.c.bf16 %v3925_v62, %v3924_v38  ;;  %7265 = vmatpush3.bf16.msra.mxu1 %v7781_v45  ;;  %v3826_v63 = vmax.f32 %v3779_v50, 0.0  ;;  %v3782_v0 = vadd.f32 %v7223_v39, %v8827_v8  ;;  %v3773_v41 = vpop.f32.mrb[63].mxu1 }
 0x516   : > { %7266 = vmatprep.subr.bf16.mxu1 %v7782_v1  ;;  %v8944_v9 = vsel %vm2582_vm6, %v4565_v34, %v4569_v58  ;;  %v4983_v59 = vor.u32 %v4982_v56, %v4981_v47  ;;  %v3824_v5 = vmax.f32 %v3771_v33, 0.0  ;;  %v3774_v32 = vadd.f32 %v8827_v8, %v3773_v41 }
 0x517   : > { %v4005_v23 = vshll.u32 %v8937_v24, 16  ;;  %v4009_v16 = vshrl.u32 %v8937_v24, 16  ;;  %3857 = vst [vmem:[#allocation2 + $0xd0] sm:$0xff] %v3826_v63  ;;  %v3827_v42 = vmax.f32 %v3782_v0, 0.0  ;;  %v4364_v35 = vrot.slane %v8937_v24, 1  ;;  %v7786_v63 = vld [vmem:[%s9381_s10 + $0x38] sm:$0xff]  }
 0x518   : > { %v4778_v10 = vrot.slane %v8937_v24, 2  ;;  %v8955_v34 = vsel %vm2942_vm7, %v4979_v61, %v4983_v59  ;;  %3855 = vst [vmem:[#allocation2 + $0xc0] sm:$0xff] %v3824_v5  ;;  %v3825_v11 = vmax.f32 %v3774_v32, 0.0  ;;  %v3881_v45 = vld [vmem:[#allocation2 + $0xb0] ss:$2 sm:$0xff] }
 0x519   : > { %v4007_v15 = vrot.slane %v4005_v23, 1  ;;  %v3908_v17 = vld [vmem:[#allocation2 + $0xb1] ss:$2 sm:$0xff]  ;;  %7267 = vmatpush3.bf16.msra.mxu1 %v7782_v1  ;;  %3858 = vst [vmem:[#allocation2 + $0xd8] sm:$0xff] %v3827_v42  ;;  %v3879_v18 = vld [vmem:[#allocation2 + $0xa0] ss:$2 sm:$0xff]  ;;  %v8960_v52 = vsel %vm2408_vm4, %v4362_v30, %v4364_v35 }
 0x51a   : > { %v3906_v6 = vld [vmem:[#allocation2 + $0xa1] ss:$2 sm:$0xff]  ;;  %v3927_v20 = vmax.f32 %v3881_v45, %v3908_v17  ;;  %7268 = vmatprep.subr.bf16.mxu1 %v7783_v31  ;;  %v4571_v25 = vrot.slane %v4009_v16, 1  ;;  %v4572_v61 = vrot.slane %v4005_v23, 2  ;;  %3856 = vst [vmem:[#allocation2 + $0xc8] sm:$0xff] %v3825_v11  ;;  %v7226_v27 = vpop.f32.mrb[64].mxu1  ;;  %v8968_v1 = vsel %vm2768_vm5, %v4776_v21, %v4778_v10 }
 0x51b   : > { %v4008_v37 = vsel %vm2075_vm3, %v4003_v14, %v4007_v15  ;;  %v3926_v26 = vmax.f32 %v3879_v18, %v3906_v6  ;;  %v3795_v28 = vadd.f32 %v7226_v27, %v8827_v8  ;;  %v3786_v40 = vpop.f32.mrb[65].mxu1  ;;  %v4985_v46 = vrot.slane %v4009_v16, 2  ;;  %v7785_v21 = vld [vmem:[%s9381_s10 + $0x30] sm:$0xff]  }
 0x51c   : > { %7249 = vmatmul.mubr.bf16.gmra.mrb[72].mxu1 %v4008_v37  ;;  %v4573_v30 = vor.u32 %v4572_v61, %v4571_v25  ;;  %v4986_v62 = vrot.slane %v4005_v23, 3  ;;  %v3787_v3 = vadd.f32 %v8827_v8, %v3786_v40  ;;  %v7227_v54 = vpop.f32.mrb[66].mxu1  ;;  %v4011_v5 = vor.u32 %v4009_v16, %v4007_v15 }
 0x51d   : > { %v8972_v60 = vpack.c.bf16 %v3927_v20, %v3926_v26  ;;  %7269 = vmatpush3.bf16.msra.mxu1 %v7783_v31  ;;  %v3830_v49 = vmax.f32 %v3795_v28, 0.0  ;;  %v3789_v38 = vpop.f32.mrb[67].mxu1 }
 0x51e   : > { %7270 = vmatprep.subr.bf16.mxu1 %v7784_v53  ;;  %v8978_v50 = vsel %vm2582_vm6, %v4569_v58, %v4573_v30  ;;  %v4987_v51 = vor.u32 %v4986_v62, %v4985_v46  ;;  %v3828_v47 = vmax.f32 %v3787_v3, 0.0  ;;  %v3790_v56 = vadd.f32 %v8827_v8, %v3789_v38 }
 0x51f   : > { %v4013_v33 = vshll.u32 %v8972_v60, 16  ;;  %v4017_v39 = vshrl.u32 %v8972_v60, 16  ;;  %3861 = vst [vmem:[#allocation2 + $0xf0] sm:$0x1f] %v3830_v49  ;;  %v4366_v0 = vrot.slane %v8972_v60, 1  ;;  %v4780_v41 = vrot.slane %v8972_v60, 2 }
 0x520   : > { %v8989_v58 = vsel %vm2942_vm7, %v4983_v59, %v4987_v51  ;;  %3859 = vst [vmem:[#allocation2 + $0xe0] sm:$0xff] %v3828_v47  ;;  %v3829_v31 = vmax.f32 %v3790_v56, 0.0  ;;  %v3884_v32 = vld [vmem:[#allocation2 + $0xd0] ss:$2 sm:$0xff]  ;;  %v3911_v23 = vld [vmem:[#allocation2 + $0xd1] ss:$2 sm:$0xff] }
 0x521   : > { %v4015_v8 = vrot.slane %v4013_v33, 1  ;;  %7271 = vmatpush3.bf16.msra.mxu1 %v7784_v53  ;;  %v3882_v42 = vld [vmem:[#allocation2 + $0xc0] ss:$2 sm:$0xff]  ;;  %v3909_v11 = vld [vmem:[#allocation2 + $0xc1] ss:$2 sm:$0xff]  ;;  %v3929_v14 = vmax.f32 %v3884_v32, %v3911_v23  ;;  %v8992_v45 = vsel %vm2408_vm4, %v4364_v35, %v4366_v0  ;;  %v4575_v17 = vrot.slane %v4017_v39, 1 }
 0x522   : > { %7272 = vmatprep.subr.bf16.mxu1 %v7785_v21  ;;  %v4576_v18 = vrot.slane %v4013_v33, 2  ;;  %3860 = vst [vmem:[#allocation2 + $0xe8] sm:$0xff] %v3829_v31  ;;  %v3928_v6 = vmax.f32 %v3882_v42, %v3909_v11  ;;  %v8998_v16 = vsel %vm2768_vm5, %v4778_v10, %v4780_v41  ;;  %v4989_v15 = vrot.slane %v4017_v39, 2  ;;  %v7787_v35 = vld [vmem:[%s9381_s10 + $0x80] sm:$0xff]  }
 0x523   : > { %v4016_v59 = vsel %vm2075_vm3, %v4011_v5, %v4015_v8  ;;  %v4990_v20 = vrot.slane %v4013_v33, 3  ;;  %v4019_v3 = vor.u32 %v4017_v39, %v4015_v8 }
 0x524   : > { %7252 = vmatprep.mubr.bf16.mxu1 %v4016_v59  ;;  %v4577_v53 = vor.u32 %v4576_v18, %v4575_v17  ;;  %v9000_v25 = vpack.c.bf16 %v3929_v14, %v3928_v6 }
 0x525   : > { %7273 = vmatpush3.bf16.msra.mxu1 %v7785_v21  ;;  %v4991_v27 = vor.u32 %v4990_v20, %v4989_v15 }
 0x526   : > { %7274 = vmatprep.subr.bf16.mxu1 %v7786_v63  ;;  %v9006_v61 = vsel %vm2582_vm6, %v4573_v30, %v4577_v53  ;;  %v4021_v37 = vshll.u32 %v9000_v25, 16  ;;  %v3888_v10 = vld [vmem:[#allocation2 + $0xf0] ss:$2 sm:$0x3]  ;;  %v4025_v26 = vshrl.u32 %v9000_v25, 16  ;;  %v4368_v28 = vrot.slane %v9000_v25, 1 }
 0x527   : > { %v3915_v40 = vld [vmem:[#allocation2 + $0xf1] ss:$2 sm:$0x3]  ;;  %v4782_v46 = vrot.slane %v9000_v25, 2  ;;  %v9013_v62 = vsel %vm2942_vm7, %v4987_v51, %v4991_v27 }
 0x528   : > { %v4023_v54 = vrot.slane %v4021_v37, 1  ;;  %v9018_v30 = vsel %vm2408_vm4, %v4366_v0, %v4368_v28  ;;  %v4579_v49 = vrot.slane %v4025_v26, 1  ;;  %v4580_v47 = vrot.slane %v4021_v37, 2 }
 0x529   : > { %7275 = vmatpush3.bf16.msra.mxu1 %v7786_v63  ;;  %v3886_v38 = vld [vmem:[#allocation2 + $0xe0] ss:$2 sm:$0xff]  ;;  %v3913_v21 = vld [vmem:[#allocation2 + $0xe1] ss:$2 sm:$0xff]  ;;  %v9021_v56 = vsel %vm2768_vm5, %v4780_v41, %v4782_v46  ;;  %v3931_v31 = vmax.f32 %v3888_v10, %v3915_v40  ;;  %v4993_v39 = vrot.slane %v4025_v26, 2  ;;  %v4994_v5 = vrot.slane %v4021_v37, 3 }
 0x52a   : > { %7292 = vmatprep.subr.bf16.mxu1 %v7787_v35  ;;  %v4024_v33 = vsel %vm2075_vm3, %v4019_v3, %v4023_v54  ;;  %v3930_v51 = vmax.f32 %v3886_v38, %v3913_v21  ;;  %v4581_v63 = vor.u32 %v4580_v47, %v4579_v49  ;;  %v4027_v14 = vor.u32 %v4025_v26, %v4023_v54  ;;  %v7789_v3 = vld [vmem:[%s9381_s10 + $0x90] sm:$0xff]   ;;  %v7798_v54 = vld [vmem:[%s9381_s10 + $0xd8] sm:$0xff]   ;;  %v7800_v49 = vld [vmem:[%s9381_s10 + $0xe8] sm:$0xff]  }
 0x52b   : > { %7253 = vmatmul.mubr.bf16.gmra.mrb[76].mxu1 %v4024_v33  ;;  %v4995_v32 = vor.u32 %v4994_v5, %v4993_v39  ;;  %v7802_v38 = vld [vmem:[%s9381_s10 + $0xf8] sm:$0xff]   ;;  %v7811_v21 = vld [vmem:[%s9381_s10 + $0x140] sm:$0xff]   ;;  %v7812_v47 = vld [vmem:[%s9381_s10 + $0x148] sm:$0xff]  }
 0x52c   : > { %v9024_v8 = vpack.c.bf16 %v3931_v31, %v3930_v51  ;;  %v9027_v0 = vsel %vm2582_vm6, %v4577_v53, %v4581_v63  ;;  %v7814_v33 = vld [vmem:[%s9381_s10 + $0x158] sm:$0xff]   ;;  %v7823_v39 = vld [vmem:[%s9383_s12 + $0x40] sm:$0xff]   ;;  %v7825_v5 = vld [vmem:[%s9383_s12 + $0x48] sm:$0xff]  }
 0x52d   : > { %v9033_v11 = vsel %vm2942_vm7, %v4991_v27, %v4995_v32 }
 0x52e   : > { %v4029_v23 = vshll.u32 %v9024_v8, 16  ;;  %v4033_v42 = vshrl.u32 %v9024_v8, 16  ;;  %v4784_v41 = vrot.slane %v9024_v8, 2 }
 0x530   : > { %v4031_v17 = vrot.slane %v4029_v23, 1  ;;  %v4583_v18 = vrot.slane %v4033_v42, 1  ;;  %v4584_v59 = vrot.slane %v4029_v23, 2  ;;  %v9038_v6 = vsel %vm2768_vm5, %v4782_v46, %v4784_v41  ;;  %v7788_v46 = vld [vmem:[%s9381_s10 + $0x88] sm:$0xff]  }
 0x531   : > { %v4997_v53 = vrot.slane %v4033_v42, 2  ;;  %v4998_v15 = vrot.slane %v4029_v23, 3 }
 0x532   : > { %v4032_v20 = vsel %vm2075_vm3, %v4027_v14, %v4031_v17  ;;  %v4035_v37 = vor.u32 %v4033_v42, %v4031_v17  ;;  %v9041_v10 = vor.u32 %v4584_v59, %v4583_v18  ;;  %v7829_v42 = vld [vmem:[%s9383_s12 + $0x58] sm:$0xff]  }
 0x533   : > { %7256 = vmatprep.mubr.bf16.mxu1 %v4032_v20  ;;  %v9043_v40 = vor.u32 %v4998_v15, %v4997_v53  ;;  %v7831_v53 = vld [vmem:[%s9383_s12 + $0x60] sm:$0xff]   ;;  %v7833_v20 = vld [vmem:[%s9383_s12 + $0x68] sm:$0xff]  }
 0x534   : > { %7257 = vmatmul.mubr.bf16.gmra.mrb[80].mxu1 %v4035_v37  ;;  %v9047_v27 = vsel %vm2582_vm6, %v4581_v63, %v9041_v10  ;;  %v7824_v63 = vld [vmem:[%s9383_s12 + $0x20] sm:$0xff]   ;;  %v7835_v37 = vld [vmem:[%s9383_s12 + $0x70] sm:$0xff]  }
 0x535   : > { %7276 = vmatprep.mubr.bf16.mxu1 %v8848_v48  ;;  %v9052_v26 = vsel %vm2942_vm7, %v4995_v32, %v9043_v40  ;;  %v7790_v48 = vld [vmem:[%s9381_s10 + $0x98] sm:$0xff]   ;;  %v7828_v32 = vld [vmem:[%s9383_s12 + $0x30] sm:$0xff]   ;;  %v9231_v15 = vld [vmem:[%s9383_s12 + $0x80] sm:$0xff]  }
 0x53c   : > { %7277 = vmatmul.mubr.bf16.vlgmr.msra.gmra.mrb[68].mxu1 %v8854_v57  ;;  %v7791_v57 = vld [vmem:[%s9381_s10 + $0xa0] sm:$0xff]  }
 0x53d   : > { %7293 = vmatpush3.bf16.msra.mxu1 %v7787_v35  ;;  %7280 = vmatprep.mubr.bf16.mxu1 %v8873_v4  ;;  %v7792_v4 = vld [vmem:[%s9381_s10 + $0xa8] sm:$0xff]  }
 0x53e   : > { %7294 = vmatprep.subr.bf16.mxu1 %v7788_v46  ;;  %v7796_v35 = vld [vmem:[%s9381_s10 + $0xc8] sm:$0xff]  }
 0x541   : > { %7295 = vmatpush3.bf16.msra.mxu1 %v7788_v46 }
 0x542   : > { %7296 = vmatprep.subr.bf16.mxu1 %v7789_v3 }
 0x544   : > { %7281 = vmatmul.mubr.bf16.gmra.mrb[72].mxu1 %v8901_v13  ;;  %v7793_v13 = vld [vmem:[%s9381_s10 + $0xb0] sm:$0xff]  }
 0x545   : > { %7297 = vmatpush3.bf16.msra.mxu1 %v7789_v3  ;;  %7284 = vmatprep.mubr.bf16.mxu1 %v8937_v24  ;;  %v7794_v24 = vld [vmem:[%s9381_s10 + $0xb8] sm:$0xff]  }
 0x546   : > { %7298 = vmatprep.subr.bf16.mxu1 %v7790_v48 }
 0x549   : > { %7299 = vmatpush3.bf16.msra.mxu1 %v7790_v48 }
 0x54a   : > { %7300 = vmatprep.subr.bf16.mxu1 %v7791_v57 }
 0x54c   : > { %7285 = vmatmul.mubr.bf16.gmra.mrb[76].mxu1 %v8972_v60  ;;  %v7795_v60 = vld [vmem:[%s9381_s10 + $0xc0] sm:$0xff]  }
 0x54d   : > { %7301 = vmatpush3.bf16.msra.mxu1 %v7791_v57  ;;  %7288 = vmatprep.mubr.bf16.mxu1 %v9000_v25  ;;  %v7803_v25 = vld [vmem:[%s9381_s10 + $0x100] sm:$0xff]  }
 0x54e   : > { %7302 = vmatprep.subr.bf16.mxu1 %v7792_v4 }
 0x551   : > { %7303 = vmatpush3.bf16.msra.mxu1 %v7792_v4 }
 0x552   : > { %7304 = vmatprep.subr.bf16.mxu1 %v7793_v13 }
 0x554   : > { %7289 = vmatmul.mubr.bf16.gmra.mrb[84].mxu1 %v9024_v8 }
 0x555   : > { %7305 = vmatpush3.bf16.msra.mxu1 %v7793_v13  ;;  %7308 = vmatprep.mubr.bf16.mxu1 %v8865_v19  ;;  %v7797_v19 = vld [vmem:[%s9381_s10 + $0xd0] sm:$0xff]  }
 0x556   : > { %7306 = vmatprep.subr.bf16.mxu1 %v7794_v24 }
 0x559   : > { %7307 = vmatpush3.bf16.msra.mxu1 %v7794_v24 }
 0x55a   : > { %7324 = vmatprep.subr.bf16.mxu1 %v7795_v60 }
 0x55c   : > { %7309 = vmatmul.mubr.bf16.vlgmr.msra.gmra.mrb[68].mxu1 %v8891_v36  ;;  %v7799_v36 = vld [vmem:[%s9381_s10 + $0xe0] sm:$0xff]  }
 0x55d   : > { %7325 = vmatpush3.bf16.msra.mxu1 %v7795_v60  ;;  %7312 = vmatprep.mubr.bf16.mxu1 %v8925_v7  ;;  %v4370_v7 = vrot.slane %v9024_v8, 1  ;;  %v7826_v8 = vld [vmem:[%s9383_s12 + $0x28] sm:$0xff]  }
 0x55e   : > { %7326 = vmatprep.subr.bf16.mxu1 %v7796_v35 }
 0x561   : > { %7327 = vmatpush3.bf16.msra.mxu1 %v7796_v35 }
 0x562   : > { %7328 = vmatprep.subr.bf16.mxu1 %v7797_v19 }
 0x564   : > { %7313 = vmatmul.mubr.bf16.gmra.mrb[72].mxu1 %v8960_v52  ;;  %v4371_v52 = vsel %vm2408_vm4, %v4368_v28, %v4370_v7  ;;  %v7804_v28 = vld [vmem:[%s9381_s10 + $0x108] sm:$0xff]  }
 0x565   : > { %7329 = vmatpush3.bf16.msra.mxu1 %v7797_v19  ;;  %7316 = vmatprep.mubr.bf16.mxu1 %v8992_v45  ;;  %v7801_v45 = vld [vmem:[%s9381_s10 + $0xf0] sm:$0xff]  }
 0x566   : > { %7330 = vmatprep.subr.bf16.mxu1 %v7798_v54 }
 0x569   : > { %7331 = vmatpush3.bf16.msra.mxu1 %v7798_v54 }
 0x56a   : > { %7332 = vmatprep.subr.bf16.mxu1 %v7799_v36 }
 0x56c   : > { %7317 = vmatmul.mubr.bf16.gmra.mrb[76].mxu1 %v9018_v30  ;;  %v7806_v30 = vld [vmem:[%s9381_s10 + $0x118] sm:$0xff]  }
 0x56d   : > { %7333 = vmatpush3.bf16.msra.mxu1 %v7799_v36  ;;  %7320 = vmatprep.mubr.bf16.mxu1 %v4371_v52 }
 0x56e   : > { %7334 = vmatprep.subr.bf16.mxu1 %v7800_v49 }
 0x571   : > { %7335 = vmatpush3.bf16.msra.mxu1 %v7800_v49 }
 0x572   : > { %7336 = vmatprep.subr.bf16.mxu1 %v7801_v45 }
 0x574   : > { %7321 = vmatmul.mubr.bf16.gmra.mrb[88].mxu1 %v4370_v7 }
 0x575   : > { %7337 = vmatpush3.bf16.msra.mxu1 %v7801_v45  ;;  %7340 = vmatprep.mubr.bf16.mxu1 %v8877_v29  ;;  %v7805_v29 = vld [vmem:[%s9381_s10 + $0x110] sm:$0xff]  }
 0x576   : > { %7338 = vmatprep.subr.bf16.mxu1 %v7802_v38 }
 0x579   : > { %7339 = vmatpush3.bf16.msra.mxu1 %v7802_v38 }
 0x57a   : > { %7356 = vmatprep.subr.bf16.mxu1 %v7803_v25 }
 0x57c   : > { %7341 = vmatmul.mubr.bf16.vlgmr.msra.gmra.mrb[68].mxu1 %v8909_v2  ;;  %v7807_v2 = vld [vmem:[%s9381_s10 + $0x120] sm:$0xff]  }
 0x57d   : > { %7357 = vmatpush3.bf16.msra.mxu1 %v7803_v25  ;;  %7344 = vmatprep.mubr.bf16.mxu1 %v8944_v9  ;;  %v7808_v9 = vld [vmem:[%s9381_s10 + $0x128] sm:$0xff]  }
 0x57e   : > { %7358 = vmatprep.subr.bf16.mxu1 %v7804_v28 }
 0x581   : > { %7359 = vmatpush3.bf16.msra.mxu1 %v7804_v28  ;;  %v9252_v28 = vld [vmem:[%s9382_s11] ss:$0 sm:$0xff] }
 0x582   : > { %7360 = vmatprep.subr.bf16.mxu1 %v7805_v29 }
 0x584   : > { %7345 = vmatmul.mubr.bf16.gmra.mrb[72].mxu1 %v8978_v50  ;;  %v7809_v50 = vld [vmem:[%s9381_s10 + $0x130] sm:$0xff]  }
 0x585   : > { %7361 = vmatpush3.bf16.msra.mxu1 %v7805_v29  ;;  %7348 = vmatprep.mubr.bf16.mxu1 %v9006_v61  ;;  %v7810_v61 = vld [vmem:[%s9381_s10 + $0x138] sm:$0xff]  }
 0x586   : > { %7362 = vmatprep.subr.bf16.mxu1 %v7806_v30 }
 0x589   : > { %7363 = vmatpush3.bf16.msra.mxu1 %v7806_v30 }
 0x58a   : > { %7364 = vmatprep.subr.bf16.mxu1 %v7807_v2 }
 0x58c   : > { %7349 = vmatmul.mubr.bf16.gmra.mrb[76].mxu1 %v9027_v0  ;;  %v7827_v0 = vld [vmem:[%s9383_s12 + $0x50] sm:$0xff]  }
 0x58d   : > { %7365 = vmatpush3.bf16.msra.mxu1 %v7807_v2  ;;  %7352 = vmatprep.mubr.bf16.mxu1 %v9047_v27 }
 0x58e   : > { %7366 = vmatprep.subr.bf16.mxu1 %v7808_v9 }
 0x591   : > { %7367 = vmatpush3.bf16.msra.mxu1 %v7808_v9 }
 0x592   : > { %7368 = vmatprep.subr.bf16.mxu1 %v7809_v50 }
 0x594   : > { %7353 = vmatmul.mubr.bf16.gmra.mrb[92].mxu1 %v9041_v10  ;;  %v7837_v10 = vld [vmem:[%s9383_s12 + $0x78] sm:$0xff]  }
 0x595   : > { %7369 = vmatpush3.bf16.msra.mxu1 %v7809_v50  ;;  %7372 = vmatprep.mubr.bf16.mxu1 %v8869_v43  ;;  %v7813_v43 = vld [vmem:[%s9381_s10 + $0x150] sm:$0xff]  }
 0x596   : > { %7370 = vmatprep.subr.bf16.mxu1 %v7810_v61 }
 0x599   : > { %7371 = vmatpush3.bf16.msra.mxu1 %v7810_v61 }
 0x59a   : > { %7388 = vmatprep.subr.bf16.mxu1 %v7811_v21 }
 0x59c   : > { %7373 = vmatmul.mubr.bf16.vlgmr.msra.gmra.mrb[68].mxu1 %v8897_v12  ;;  %v7815_v12 = vld [vmem:[%s9381_s10 + $0x160] sm:$0xff]  }
 0x59d   : > { %7389 = vmatpush3.bf16.msra.mxu1 %v7811_v21  ;;  %7376 = vmatprep.mubr.bf16.mxu1 %v8933_v44  ;;  %v7816_v44 = vld [vmem:[%s9381_s10 + $0x168] sm:$0xff]  }
 0x59e   : > { %7390 = vmatprep.subr.bf16.mxu1 %v7812_v47 }
 0x5a1   : > { %7391 = vmatpush3.bf16.msra.mxu1 %v7812_v47 }
 0x5a2   : > { %7392 = vmatprep.subr.bf16.mxu1 %v7813_v43 }
 0x5a4   : > { %7377 = vmatmul.mubr.bf16.gmra.mrb[72].mxu1 %v8968_v1  ;;  %v7817_v1 = vld [vmem:[%s9381_s10 + $0x170] sm:$0xff]  }
 0x5a5   : > { %7393 = vmatpush3.bf16.msra.mxu1 %v7813_v43  ;;  %7380 = vmatprep.mubr.bf16.mxu1 %v8998_v16  ;;  %v7818_v16 = vld [vmem:[%s9381_s10 + $0x178] sm:$0xff]  }
 0x5a6   : > { %7394 = vmatprep.subr.bf16.mxu1 %v7814_v33 }
 0x5a9   : > { %7395 = vmatpush3.bf16.msra.mxu1 %v7814_v33 }
 0x5aa   : > { %7396 = vmatprep.subr.bf16.mxu1 %v7815_v12 }
 0x5ac   : > { %7381 = vmatmul.mubr.bf16.gmra.mrb[76].mxu1 %v9021_v56 }
 0x5ad   : > { %7397 = vmatpush3.bf16.msra.mxu1 %v7815_v12  ;;  %7384 = vmatprep.mubr.bf16.mxu1 %v9038_v6 }
 0x5ae   : > { %7398 = vmatprep.subr.bf16.mxu1 %v7816_v44 }
 0x5b1   : > { %7399 = vmatpush3.bf16.msra.mxu1 %v7816_v44 }
 0x5b2   : > { %7400 = vmatprep.subr.bf16.mxu1 %v7817_v1 }
 0x5b4   : > { %7385 = vmatmul.mubr.bf16.gmra.mrb[96].mxu1 %v4784_v41  ;;  %v7830_v41 = vld [vmem:[%s9383_s12 + $0x38] sm:$0xff]  }
 0x5b5   : > { %7401 = vmatpush3.bf16.msra.mxu1 %v7817_v1  ;;  %7404 = vmatprep.mubr.bf16.mxu1 %v8888_v55 }
 0x5b6   : > { %7402 = vmatprep.subr.bf16.mxu1 %v7818_v16 }
 0x5b9   : > { %7403 = vmatpush3.bf16.msra.mxu1 %v7818_v16 }
 0x5ba   : > { %7420 = vmatprep.subr.bf16.mxu1 %v7823_v39 }
 0x5bc   : > { %7405 = vmatmul.mubr.bf16.vlgmr.msra.gmra.mrb[68].mxu1 %v8920_v22  ;;  %v7819_v22 = vld [vmem:[%s9383_s12] sm:$0xff]  }
 0x5bd   : > { %7408 = vmatprep.mubr.bf16.mxu1 %v8955_v34  ;;  %v7820_v34 = vld [vmem:[%s9383_s12 + $0x8] sm:$0xff]   ;;  %7444 = vmatprep.subr.bf16.mxu0 %v7819_v22 }
 0x5be   : > { %7445 = vmatpush3.bf16.msra.mxu0 %v7819_v22  ;;  %7421 = vmatpush3.bf16.msra.mxu1 %v7823_v39 }
 0x5bf   : > { %7446 = vmatprep.subr.bf16.mxu0 %v7820_v34  ;;  %7422 = vmatprep.subr.bf16.mxu1 %v7825_v5 }
 0x5c2   : > { %7447 = vmatpush3.bf16.msra.mxu0 %v7820_v34  ;;  %7423 = vmatpush3.bf16.msra.mxu1 %v7825_v5 }
 0x5c3   : > { %7424 = vmatprep.subr.bf16.mxu1 %v7827_v0 }
 0x5c4   : > { %7409 = vmatmul.mubr.bf16.gmra.mrb[72].mxu1 %v8989_v58  ;;  %v7821_v58 = vld [vmem:[%s9383_s12 + $0x10] sm:$0xff]  }
 0x5c5   : > { %7412 = vmatprep.mubr.bf16.mxu1 %v9013_v62  ;;  %v7822_v62 = vld [vmem:[%s9383_s12 + $0x18] sm:$0xff]   ;;  %7448 = vmatprep.subr.bf16.mxu0 %v7821_v58 }
 0x5c6   : > { %7449 = vmatpush3.bf16.msra.mxu0 %v7821_v58  ;;  %7425 = vmatpush3.bf16.msra.mxu1 %v7827_v0 }
 0x5c7   : > { %7450 = vmatprep.subr.bf16.mxu0 %v7822_v62  ;;  %7426 = vmatprep.subr.bf16.mxu1 %v7829_v42 }
 0x5ca   : > { %7451 = vmatpush3.bf16.msra.mxu0 %v7822_v62  ;;  %7427 = vmatpush3.bf16.msra.mxu1 %v7829_v42 }
 0x5cb   : > { %7452 = vmatprep.subr.bf16.mxu0 %v7824_v63  ;;  %7428 = vmatprep.subr.bf16.mxu1 %v7831_v53 }
 0x5cc   : > { %7413 = vmatmul.mubr.bf16.gmra.mrb[76].mxu1 %v9033_v11 }
 0x5cd   : > { %7416 = vmatprep.mubr.bf16.mxu1 %v9052_v26 }
 0x5ce   : > { %7453 = vmatpush3.bf16.msra.mxu0 %v7824_v63  ;;  %7429 = vmatpush3.bf16.msra.mxu1 %v7831_v53 }
 0x5cf   : > { %7454 = vmatprep.subr.bf16.mxu0 %v7826_v8  ;;  %7430 = vmatprep.subr.bf16.mxu1 %v7833_v20 }
 0x5d2   : > { %7455 = vmatpush3.bf16.msra.mxu0 %v7826_v8  ;;  %7431 = vmatpush3.bf16.msra.mxu1 %v7833_v20 }
 0x5d3   : > { %7456 = vmatprep.subr.bf16.mxu0 %v7828_v32  ;;  %7432 = vmatprep.subr.bf16.mxu1 %v7835_v37 }
 0x5d4   : > { %7417 = vmatmul.mubr.bf16.gmra.mrb[100].mxu1 %v9043_v40 }
 0x5d6   : > { %7457 = vmatpush3.bf16.msra.mxu0 %v7828_v32  ;;  %7433 = vmatpush3.bf16.msra.mxu1 %v7835_v37 }
 0x5d7   : > { %7458 = vmatprep.subr.bf16.mxu0 %v7830_v41  ;;  %7434 = vmatprep.subr.bf16.mxu1 %v7837_v10 }
 0x5da   : > { %7459 = vmatpush3.bf16.msra.mxu0 %v7830_v41  ;;  %7435 = vmatpush3.bf16.msra.mxu1 %v7837_v10 }
 0x5db   : > { %7468 = vmatprep.subr.bf16.mxu0 %v9231_v15 }
 0x607   : > { %v7258_v56 = vpop.f32.mrb[80].mxu1 }
 0x608   : > { %v4174_v51 = vpop.f32.mrb[81].mxu1 }
 0x609   : > { %v7259_v31 = vpop.f32.mrb[82].mxu1 }
 0x60a   : > { %v4177_v55 = vpop.f32.mrb[83].mxu1 }
 0x627   : > { %v7290_v23 = vpop.f32.mrb[84].mxu1 }
 0x628   : > { %v4327_v11 = vadd.f32 %v7290_v23, %v7258_v56  ;;  %v4318_v14 = vpop.f32.mrb[85].mxu1 }
 0x629   : > { %v4319_v17 = vadd.f32 %v4318_v14, %v4174_v51  ;;  %v7291_v18 = vpop.f32.mrb[86].mxu1 }
 0x62a   : > { %v4321_v59 = vpop.f32.mrb[87].mxu1 }
 0x62b   : > { %v4322_v6 = vadd.f32 %v4321_v59, %v4177_v55 }
 0x647   : > { %v7322_v40 = vpop.f32.mrb[88].mxu1 }
 0x648   : > { %v4538_v27 = vadd.f32 %v7322_v40, %v4327_v11  ;;  %v4510_v26 = vpop.f32.mrb[89].mxu1 }
 0x649   : > { %v4536_v46 = vadd.f32 %v4510_v26, %v4319_v17  ;;  %v7323_v3 = vpop.f32.mrb[90].mxu1 }
 0x64a   : > { %v4513_v48 = vpop.f32.mrb[91].mxu1 }
 0x64b   : > { %v4537_v57 = vadd.f32 %v4513_v48, %v4322_v6 }
 0x667   : > { %v7354_v4 = vpop.f32.mrb[92].mxu1 }
 0x668   : > { %v4753_v13 = vadd.f32 %v7354_v4, %v4538_v27  ;;  %v4725_v24 = vpop.f32.mrb[93].mxu1 }
 0x669   : > { %v4751_v60 = vadd.f32 %v4725_v24, %v4536_v46  ;;  %v7355_v35 = vpop.f32.mrb[94].mxu1 }
 0x66a   : > { %v4728_v19 = vpop.f32.mrb[95].mxu1 }
 0x66b   : > { %v4752_v54 = vadd.f32 %v4728_v19, %v4537_v57 }
 0x687   : > { %v7386_v36 = vpop.f32.mrb[96].mxu1 }
 0x688   : > { %v9243_v7 = vadd.f32 %v7386_v36, %v4753_v13  ;;  %v4924_v49 = vpop.f32.mrb[97].mxu1 }
 0x689   : > { %v9245_v52 = vadd.f32 %v4924_v49, %v4751_v60  ;;  %v7387_v45 = vpop.f32.mrb[98].mxu1  ;;  %v7834_v49 = vld [vmem:[%s9383_s12 + $0x88] sm:$0xff]  }
 0x68a   : > { %v4927_v38 = vpop.f32.mrb[99].mxu1 }
 0x68b   : > { %v9247_v25 = vadd.f32 %v4927_v38, %v4752_v54 }
 0x68f   : > { %v7406_v29 = vpop.f32.mrb[68].mxu1 }
 0x690   : > { %v5177_v30 = vadd.f32 %v7406_v29, %v9252_v28  ;;  %v5091_v2 = vpop.f32.mrb[69].mxu1 }
 0x691   : > { %v5175_v9 = vadd.f32 %v9252_v28, %v5091_v2  ;;  %v7407_v50 = vpop.f32.mrb[70].mxu1 }
 0x692   : > { %v5192_v61 = vmax.f32 %v5177_v30, 0.0  ;;  %v5178_v21 = vadd.f32 %v7407_v50, %v9252_v28  ;;  %v5094_v47 = vpop.f32.mrb[71].mxu1  ;;  %v7836_v50 = vld [vmem:[%s9383_s12 + $0x90] sm:$0xff]  }
 0x693   : > { %v5190_v43 = vmax.f32 %v5175_v9, 0.0  ;;  %v5176_v33 = vadd.f32 %v9252_v28, %v5094_v47 }
 0x694   : > { %5207 = vst [vmem:[#allocation2 + $0x10] sm:$0xff] %v5192_v61  ;;  %v5193_v12 = vmax.f32 %v5178_v21, 0.0 }
 0x695   : > { %5205 = vst [vmem:[#allocation2] sm:$0xff] %v5190_v43  ;;  %v5191_v44 = vmax.f32 %v5176_v33, 0.0 }
 0x696   : > { %5208 = vst [vmem:[#allocation2 + $0x18] sm:$0xff] %v5193_v12 }
 0x697   : > { %5206 = vst [vmem:[#allocation2 + $0x8] sm:$0xff] %v5191_v44  ;;  %v7410_v1 = vpop.f32.mrb[72].mxu1 }
 0x698   : > { %v5181_v16 = vadd.f32 %v7410_v1, %v9252_v28  ;;  %v5107_v56 = vpop.f32.mrb[73].mxu1 }
 0x699   : > { %v5179_v51 = vadd.f32 %v9252_v28, %v5107_v56  ;;  %v7411_v31 = vpop.f32.mrb[74].mxu1 }
 0x69a   : > { %v5196_v55 = vmax.f32 %v5181_v16, 0.0  ;;  %v5182_v22 = vadd.f32 %v7411_v31, %v9252_v28  ;;  %v5110_v34 = vpop.f32.mrb[75].mxu1 }
 0x69b   : > { %v5194_v58 = vmax.f32 %v5179_v51, 0.0  ;;  %v5180_v62 = vadd.f32 %v9252_v28, %v5110_v34  ;;  %v7838_v51 = vld [vmem:[%s9383_s12 + $0x98] sm:$0xff]  }
 0x69c   : > { %5211 = vst [vmem:[#allocation2 + $0x30] sm:$0xff] %v5196_v55  ;;  %v5197_v39 = vmax.f32 %v5182_v22, 0.0 }
 0x69d   : > { %5209 = vst [vmem:[#allocation2 + $0x20] sm:$0xff] %v5194_v58  ;;  %v5195_v63 = vmax.f32 %v5180_v62, 0.0  ;;  %v5221_v5 = vld [vmem:[#allocation2 + $0x10] ss:$2 sm:$0xff]  ;;  %v5229_v8 = vld [vmem:[#allocation2 + $0x11] ss:$2 sm:$0xff] }
 0x69e   : > { %5212 = vst [vmem:[#allocation2 + $0x38] sm:$0xff] %v5197_v39  ;;  %v5220_v0 = vld [vmem:[#allocation2] ss:$2 sm:$0xff]  ;;  %v5228_v32 = vld [vmem:[#allocation2 + $0x1] ss:$2 sm:$0xff]  ;;  %v5237_v23 = vmax.f32 %v5221_v5, %v5229_v8 }
 0x69f   : > { %5210 = vst [vmem:[#allocation2 + $0x28] sm:$0xff] %v5195_v63  ;;  %v7414_v42 = vpop.f32.mrb[76].mxu1  ;;  %v5236_v41 = vmax.f32 %v5220_v0, %v5228_v32  ;;  %v7839_v58 = vld [vmem:[%s9383_s12 + $0xa0] sm:$0xff]  }
 0x6a0   : > { %v5185_v11 = vadd.f32 %v7414_v42, %v9252_v28  ;;  %v5123_v14 = vpop.f32.mrb[77].mxu1 }
 0x6a1   : > { %v5183_v17 = vadd.f32 %v9252_v28, %v5123_v14  ;;  %v7415_v18 = vpop.f32.mrb[78].mxu1  ;;  %v9264_v59 = vpack.c.bf16 %v5237_v23, %v5236_v41  ;;  %v7840_v23 = vld [vmem:[%s9383_s12 + $0xa8] sm:$0xff]  }
 0x6a2   : > { %v5200_v6 = vmax.f32 %v5185_v11, 0.0  ;;  %v5186_v53 = vadd.f32 %v7415_v18, %v9252_v28  ;;  %v5126_v20 = vpop.f32.mrb[79].mxu1 }
 0x6a3   : > { %v5198_v37 = vmax.f32 %v5183_v17, 0.0  ;;  %v5184_v10 = vadd.f32 %v9252_v28, %v5126_v20  ;;  %7460 = vmatprep.mubr.bf16.mxu0 %v9264_v59  ;;  %v5284_v3 = vshll.u32 %v9264_v59, 16  ;;  %v5561_v11 = vrot.slane %v9264_v59, 1 }
 0x6a4   : > { %5215 = vst [vmem:[#allocation2 + $0x50] sm:$0xff] %v5200_v6  ;;  %v5201_v40 = vmax.f32 %v5186_v53, 0.0  ;;  %v7841_v6 = vld [vmem:[%s9383_s12 + $0xb0] sm:$0xff]  }
 0x6a5   : > { %5213 = vst [vmem:[#allocation2 + $0x40] sm:$0xff] %v5198_v37  ;;  %v5199_v27 = vmax.f32 %v5184_v10, 0.0  ;;  %v5223_v26 = vld [vmem:[#allocation2 + $0x30] ss:$2 sm:$0xff]  ;;  %v5231_v46 = vld [vmem:[#allocation2 + $0x31] ss:$2 sm:$0xff] }
 0x6a6   : > { %5216 = vst [vmem:[#allocation2 + $0x58] sm:$0xff] %v5201_v40  ;;  %v5222_v48 = vld [vmem:[#allocation2 + $0x20] ss:$2 sm:$0xff]  ;;  %v5230_v57 = vld [vmem:[#allocation2 + $0x21] ss:$2 sm:$0xff]  ;;  %v5239_v4 = vmax.f32 %v5223_v26, %v5231_v46  ;;  %v5286_v45 = vrot.slane %v5284_v3, 1 }
 0x6a7   : > { %5214 = vst [vmem:[#allocation2 + $0x48] sm:$0xff] %v5199_v27  ;;  %v7418_v13 = vpop.f32.mrb[100].mxu1  ;;  %v5238_v24 = vmax.f32 %v5222_v48, %v5230_v57  ;;  %v7842_v27 = vld [vmem:[%s9383_s12 + $0xb8] sm:$0xff]   ;;  %v7843_v26 = vld [vmem:[%s9383_s12 + $0xc0] sm:$0xff]   ;;  %v7844_v57 = vld [vmem:[%s9383_s12 + $0xc8] sm:$0xff]  }
 0x6a8   : > { %v5167_v60 = vadd.f32 %v7418_v13, %v9243_v7  ;;  %v5139_v35 = vpop.f32.mrb[101].mxu1 }
 0x6a9   : > { %v5165_v19 = vadd.f32 %v5139_v35, %v9245_v52  ;;  %v7419_v54 = vpop.f32.mrb[102].mxu1  ;;  %v9272_v36 = vpack.c.bf16 %v5239_v4, %v5238_v24  ;;  %v5282_v52 = vshrl.u32 %v9264_v59, 16  ;;  %v7845_v35 = vld [vmem:[%s9383_s12 + $0xd0] sm:$0xff]   ;;  %v7848_v59 = vld [vmem:[%s9383_s12 + $0xe8] sm:$0xff]  }
 0x6aa   : > { %v5189_v38 = vadd.f32 %v9252_v28, %v5167_v60  ;;  %v5142_v29 = vpop.f32.mrb[103].mxu1  ;;  %v5709_v54 = vrot.slane %v5284_v3, 2  ;;  %v7849_v3 = vld [vmem:[%s9383_s12 + $0xf0] sm:$0xff]  }
 0x6ab   : > { %v5187_v30 = vadd.f32 %v9252_v28, %v5165_v19  ;;  %v5166_v7 = vadd.f32 %v5142_v29, %v9247_v25  ;;  %7461 = vmatmul.mubr.bf16.vlgmr.msra.gmra.mrb[200].mxu0 %v9272_v36  ;;  %v5289_v2 = vshll.u32 %v9272_v36, 16  ;;  %v5287_v25 = vor.u32 %v5286_v45, %v5282_v52  ;;  %v7847_v29 = vld [vmem:[%s9383_s12 + $0xe0] sm:$0xff]  }
 0x6ac   : > { %v5204_v9 = vmax.f32 %v5189_v38, 0.0  ;;  %7469 = vmatpush3.bf16.msra.mxu0 %v9231_v15  ;;  %v5293_v31 = vshrl.u32 %v9272_v36, 16  ;;  %v5562_v42 = vrot.slane %v9272_v36, 1  ;;  %v5708_v19 = vrot.slane %v5282_v52, 1  ;;  %v7846_v36 = vld [vmem:[%s9383_s12 + $0xd8] sm:$0xff]  }
 0x6ad   : > { %v5202_v61 = vmax.f32 %v5187_v30, 0.0  ;;  %v5188_v21 = vadd.f32 %v9252_v28, %v5166_v7  ;;  %7470 = vmatprep.subr.bf16.mxu0 %v7834_v49  ;;  %v5291_v47 = vrot.slane %v5289_v2, 1  ;;  %v5225_v43 = vld [vmem:[#allocation2 + $0x50] ss:$2 sm:$0xff]  ;;  %v5233_v33 = vld [vmem:[#allocation2 + $0x51] ss:$2 sm:$0xff] }
 0x6ae   : > { %5219 = vst [vmem:[#allocation2 + $0x70] sm:$0x1f] %v5204_v9  ;;  %v5224_v12 = vld [vmem:[#allocation2 + $0x40] ss:$2 sm:$0xff]  ;;  %v5232_v44 = vld [vmem:[#allocation2 + $0x41] ss:$2 sm:$0xff]  ;;  %v5241_v15 = vmax.f32 %v5225_v43, %v5233_v33  ;;  %v5563_v14 = vsel %vm2408_vm4, %v5561_v11, %v5562_v42  ;;  %v5710_v45 = vor.u32 %v5709_v54, %v5708_v19 }
 0x6af   : > { %5217 = vst [vmem:[#allocation2 + $0x60] sm:$0xff] %v5202_v61  ;;  %v5203_v1 = vmax.f32 %v5188_v21, 0.0  ;;  %v5292_v16 = vsel %vm2075_vm3, %v5287_v25, %v5291_v47  ;;  %v5240_v56 = vmax.f32 %v5224_v12, %v5232_v44  ;;  %v5295_v22 = vor.u32 %v5293_v31, %v5291_v47  ;;  %v7850_v30 = vld [vmem:[%s9383_s12 + $0xf8] sm:$0xff]  }
 0x6b0   : > { %7471 = vmatpush3.bf16.msra.mxu0 %v7834_v49  ;;  %7436 = vmatprep.mubr.bf16.mxu1 %v5292_v16  ;;  %v5711_v24 = vrot.slane %v5293_v31, 1  ;;  %v5712_v60 = vrot.slane %v5289_v2, 2 }
 0x6b1   : > { %5218 = vst [vmem:[#allocation2 + $0x68] sm:$0xff] %v5203_v1  ;;  %7472 = vmatprep.subr.bf16.mxu0 %v7836_v50  ;;  %v9295_v28 = vpack.c.bf16 %v5241_v15, %v5240_v56 }
 0x6b2   : > { %v5713_v49 = vor.u32 %v5712_v60, %v5711_v24 }
 0x6b3   : > { %7464 = vmatprep.mubr.bf16.mxu0 %v9295_v28  ;;  %v5297_v55 = vshll.u32 %v9295_v28, 16  ;;  %v5301_v17 = vshrl.u32 %v9295_v28, 16  ;;  %v5564_v46 = vrot.slane %v9295_v28, 1 }
 0x6b4   : > { %7473 = vmatpush3.bf16.msra.mxu0 %v7836_v50  ;;  %v5714_v38 = vsel %vm2582_vm6, %v5710_v45, %v5713_v49 }
 0x6b5   : > { %7474 = vmatprep.subr.bf16.mxu0 %v7838_v51  ;;  %v5299_v34 = vrot.slane %v5297_v55, 1  ;;  %v5227_v62 = vld [vmem:[#allocation2 + $0x70] ss:$2 sm:$0x3]  ;;  %v5565_v4 = vsel %vm2408_vm4, %v5562_v42, %v5564_v46  ;;  %v5715_v7 = vrot.slane %v5301_v17, 1  ;;  %v5716_v52 = vrot.slane %v5297_v55, 2 }
 0x6b6   : > { %v5235_v39 = vld [vmem:[#allocation2 + $0x71] ss:$2 sm:$0x3] }
 0x6b7   : > { %v5300_v63 = vsel %vm2075_vm3, %v5295_v22, %v5299_v34  ;;  %v5243_v32 = vmax.f32 %v5227_v62, %v5235_v39  ;;  %v5303_v53 = vor.u32 %v5301_v17, %v5299_v34  ;;  %v5717_v50 = vor.u32 %v5716_v52, %v5715_v7 }
 0x6b8   : > { %7475 = vmatpush3.bf16.msra.mxu0 %v7838_v51  ;;  %7437 = vmatmul.mubr.bf16.vlgmr.msra.gmra.mrb[104].mxu1 %v5300_v63  ;;  %v5226_v5 = vld [vmem:[#allocation2 + $0x60] ss:$2 sm:$0xff]  ;;  %v5234_v8 = vld [vmem:[#allocation2 + $0x61] ss:$2 sm:$0xff] }
 0x6b9   : > { %7476 = vmatprep.subr.bf16.mxu0 %v7839_v58  ;;  %v5242_v0 = vmax.f32 %v5226_v5, %v5234_v8  ;;  %v5718_v21 = vsel %vm2582_vm6, %v5713_v49, %v5717_v50 }
 0x6bb   : > { %v5247_v41 = vpack.c.bf16 %v5243_v32, %v5242_v0 }
 0x6bc   : > { %7477 = vmatpush3.bf16.msra.mxu0 %v7839_v58 }
 0x6bd   : > { %7465 = vmatmul.mubr.bf16.gmra.mrb[204].mxu0 %v5247_v41  ;;  %7478 = vmatprep.subr.bf16.mxu0 %v7840_v23  ;;  %v5305_v18 = vshll.u32 %v5247_v41, 16  ;;  %v5309_v37 = vshrl.u32 %v5247_v41, 16  ;;  %v5566_v48 = vrot.slane %v5247_v41, 1 }
 0x6be   : > { %7484 = vmatprep.mubr.bf16.mxu0 %v5563_v14 }
 0x6bf   : > { %v5307_v20 = vrot.slane %v5305_v18, 1  ;;  %v5567_v13 = vsel %vm2408_vm4, %v5564_v46, %v5566_v48  ;;  %v5719_v2 = vrot.slane %v5309_v37, 1  ;;  %v5720_v9 = vrot.slane %v5305_v18, 2 }
 0x6c0   : > { %7479 = vmatpush3.bf16.msra.mxu0 %v7840_v23  ;;  %v6470_v23 = vld [vmem:[%s9384_s13] ss:$0 sm:$0xff] }
 0x6c1   : > { %v5308_v10 = vsel %vm2075_vm3, %v5303_v53, %v5307_v20  ;;  %7480 = vmatprep.subr.bf16.mxu0 %v7841_v6  ;;  %v5311_v40 = vor.u32 %v5309_v37, %v5307_v20  ;;  %v5721_v61 = vor.u32 %v5720_v9, %v5719_v2 }
 0x6c2   : > { %7440 = vmatprep.mubr.bf16.mxu1 %v5308_v10 }
 0x6c3   : > { %7441 = vmatmul.mubr.bf16.gmra.mrb[108].mxu1 %v5311_v40  ;;  %v5722_v25 = vsel %vm2582_vm6, %v5717_v50, %v5721_v61 }
 0x6c4   : > { %7481 = vmatpush3.bf16.msra.mxu0 %v7841_v6 }
 0x6c5   : > { %7482 = vmatprep.subr.bf16.mxu0 %v7842_v27 }
 0x6c8   : > { %7483 = vmatpush3.bf16.msra.mxu0 %v7842_v27 }
 0x6c9   : > { %7492 = vmatprep.subr.bf16.mxu0 %v7843_v26 }
 0x6cb   : > { %7485 = vmatmul.mubr.bf16.vlgmr.msra.gmra.mrb[200].mxu0 %v5565_v4 }
 0x6cc   : > { %7488 = vmatprep.mubr.bf16.mxu0 %v5567_v13  ;;  %7493 = vmatpush3.bf16.msra.mxu0 %v7843_v26 }
 0x6cd   : > { %7494 = vmatprep.subr.bf16.mxu0 %v7844_v57 }
 0x6d0   : > { %7495 = vmatpush3.bf16.msra.mxu0 %v7844_v57 }
 0x6d1   : > { %7496 = vmatprep.subr.bf16.mxu0 %v7845_v35 }
 0x6d3   : > { %7489 = vmatmul.mubr.bf16.gmra.mrb[208].mxu0 %v5566_v48 }
 0x6d4   : > { %7497 = vmatpush3.bf16.msra.mxu0 %v7845_v35  ;;  %7508 = vmatprep.mubr.bf16.mxu0 %v5714_v38 }
 0x6d5   : > { %7498 = vmatprep.subr.bf16.mxu0 %v7846_v36 }
 0x6d8   : > { %7499 = vmatpush3.bf16.msra.mxu0 %v7846_v36 }
 0x6d9   : > { %7500 = vmatprep.subr.bf16.mxu0 %v7847_v29 }
 0x6dc   : > { %7501 = vmatpush3.bf16.msra.mxu0 %v7847_v29 }
 0x6dd   : > { %7502 = vmatprep.subr.bf16.mxu0 %v7848_v59 }
 0x6e0   : > { %7503 = vmatpush3.bf16.msra.mxu0 %v7848_v59 }
 0x6e1   : > { %7504 = vmatprep.subr.bf16.mxu0 %v7849_v3 }
 0x6e4   : > { %7505 = vmatpush3.bf16.msra.mxu0 %v7849_v3 }
 0x6e5   : > { %7506 = vmatprep.subr.bf16.mxu0 %v7850_v30 }
 0x6e8   : > { %7507 = vmatpush3.bf16.msra.mxu0 %v7850_v30 }
 0x6eb   : > { %7509 = vmatmul.mubr.bf16.vlgmr.msra.gmra.mrb[200].mxu0 %v5718_v21 }
 0x6ec   : > { %7512 = vmatprep.mubr.bf16.mxu0 %v5722_v25 }
 0x6f3   : > { %7513 = vmatmul.mubr.bf16.gmra.mrb[212].mxu0 %v5721_v61 }
 0x78b   : > { %v7438_v47 = vpop.f32.mrb[104].mxu1 }
 0x78c   : > { %v5398_v43 = vpop.f32.mrb[105].mxu1 }
 0x78d   : > { %v7439_v33 = vpop.f32.mrb[106].mxu1 }
 0x78e   : > { %v5401_v12 = vpop.f32.mrb[107].mxu1 }
 0x790   : > { %v7466_v44 = vpop.f32.mrb[204].mxu0 }
 0x791   : > { %v5526_v15 = vpop.f32.mrb[205].mxu0 }
 0x792   : > { %v7467_v1 = vpop.f32.mrb[206].mxu0 }
 0x793   : > { %v5529_v16 = vpop.f32.mrb[207].mxu0 }
 0x796   : > { %v7442_v56 = vpop.f32.mrb[108].mxu1 }
 0x797   : > { %v5535_v28 = vadd.f32 %v7466_v44, %v7442_v56  ;;  %v5414_v51 = vpop.f32.mrb[109].mxu1 }
 0x798   : > { %v5527_v31 = vadd.f32 %v5526_v15, %v5414_v51  ;;  %v7443_v55 = vpop.f32.mrb[110].mxu1 }
 0x799   : > { %v5417_v22 = vpop.f32.mrb[111].mxu1 }
 0x79a   : > { %v5530_v34 = vadd.f32 %v5529_v16, %v5417_v22 }
 0x7a6   : > { %v7490_v58 = vpop.f32.mrb[208].mxu0 }
 0x7a7   : > { %v5690_v62 = vadd.f32 %v7490_v58, %v5535_v28  ;;  %v5670_v39 = vpop.f32.mrb[209].mxu0 }
 0x7a8   : > { %v5688_v63 = vadd.f32 %v5670_v39, %v5527_v31  ;;  %v7491_v5 = vpop.f32.mrb[210].mxu0 }
 0x7a9   : > { %v5673_v8 = vpop.f32.mrb[211].mxu0 }
 0x7aa   : > { %v5689_v0 = vadd.f32 %v5673_v8, %v5530_v34 }
 0x7be   : > { %v7510_v32 = vpop.f32.mrb[200].mxu0 }
 0x7bf   : > { %v7524_v42 = vadd.f32 %v7510_v32, %v7438_v47  ;;  %v5809_v41 = vpop.f32.mrb[201].mxu0 }
 0x7c0   : > { %v7525_v11 = vadd.f32 %v5809_v41, %v5398_v43  ;;  %v7511_v14 = vpop.f32.mrb[202].mxu0 }
 0x7c1   : > { %v5855_v17 = vadd.f32 %v7524_v42, %v6470_v23  ;;  %v7526_v18 = vadd.f32 %v7511_v14, %v7439_v33  ;;  %v5812_v6 = vpop.f32.mrb[203].mxu0 }
 0x7c2   : > { %v5853_v53 = vadd.f32 %v7525_v11, %v6470_v23  ;;  %v7527_v20 = vadd.f32 %v5812_v6, %v5401_v12 }
 0x7c3   : > { %v5862_v37 = vmax.f32 %v5855_v17, 0.0  ;;  %v5856_v10 = vadd.f32 %v7526_v18, %v6470_v23 }
 0x7c4   : > { %v5860_v40 = vmax.f32 %v5853_v53, 0.0  ;;  %v5854_v27 = vadd.f32 %v7527_v20, %v6470_v23 }
 0x7c5   : > { %5869 = vst [vmem:[#allocation2 + $0x10] sm:$0xff] %v5862_v37  ;;  %v5863_v26 = vmax.f32 %v5856_v10, 0.0 }
 0x7c6   : > { %5867 = vst [vmem:[#allocation2] sm:$0xff] %v5860_v40  ;;  %v5861_v46 = vmax.f32 %v5854_v27, 0.0  ;;  %v7514_v48 = vpop.f32.mrb[212].mxu0 }
 0x7c7   : > { %5870 = vst [vmem:[#allocation2 + $0x18] sm:$0xff] %v5863_v26  ;;  %v5845_v57 = vadd.f32 %v7514_v48, %v5690_v62  ;;  %v5825_v4 = vpop.f32.mrb[213].mxu0 }
 0x7c8   : > { %5868 = vst [vmem:[#allocation2 + $0x8] sm:$0xff] %v5861_v46  ;;  %v5843_v13 = vadd.f32 %v5825_v4, %v5688_v63  ;;  %v7515_v24 = vpop.f32.mrb[214].mxu0 }
 0x7c9   : > { %v5859_v60 = vadd.f32 %v6470_v23, %v5845_v57  ;;  %v5828_v35 = vpop.f32.mrb[215].mxu0 }
 0x7ca   : > { %v5857_v19 = vadd.f32 %v6470_v23, %v5843_v13  ;;  %v5844_v54 = vadd.f32 %v5828_v35, %v5689_v0 }
 0x7cb   : > { %v5866_v49 = vmax.f32 %v5859_v60, 0.0 }
 0x7cc   : > { %v5864_v45 = vmax.f32 %v5857_v19, 0.0  ;;  %v5858_v36 = vadd.f32 %v6470_v23, %v5844_v54 }
 0x7cd   : > { %5873 = vst [vmem:[#allocation2 + $0x30] sm:$0x7f] %v5866_v49 }
 0x7ce   : > { %v5875_v38 = vld [vmem:[#allocation2 + $0x10] ss:$2 sm:$0xff]  ;;  %v5879_v29 = vld [vmem:[#allocation2 + $0x11] ss:$2 sm:$0xff]  ;;  %5871 = vst [vmem:[#allocation2 + $0x20] sm:$0xff] %v5864_v45  ;;  %v5865_v59 = vmax.f32 %v5858_v36, 0.0 }
 0x7cf   : > { %v5883_v3 = vmax.f32 %v5875_v38, %v5879_v29  ;;  %v5874_v30 = vld [vmem:[#allocation2] ss:$2 sm:$0xff]  ;;  %v5878_v7 = vld [vmem:[#allocation2 + $0x1] ss:$2 sm:$0xff] }
 0x7d0   : > { %v5882_v52 = vmax.f32 %v5874_v30, %v5878_v7  ;;  %5872 = vst [vmem:[#allocation2 + $0x28] sm:$0xff] %v5865_v59 }
 0x7d1   : > { %5888 = vst [vmem:[%s8835_s27 + $0xd] sm:$0xff] %v5883_v3 }
 0x7d2   : > { %5887 = vst [vmem:[%s8835_s27 + $0x5] sm:$0xff] %v5882_v52 }
 0x7d4   : > { %v5877_v2 = vld [vmem:[#allocation2 + $0x30] ss:$2 sm:$0x7]  ;;  %v5881_v9 = vld [vmem:[#allocation2 + $0x31] ss:$2 sm:$0x7] }
 0x7d5   : > { %v5885_v50 = vmax.f32 %v5877_v2, %v5881_v9 }
 0x7d7   : > { %5890 = vst [vmem:[%s8835_s27 + $0x1d] sm:$0x7] %v5885_v50  ;;  %v5876_v61 = vld [vmem:[#allocation2 + $0x20] ss:$2 sm:$0xff]  ;;  %v5880_v21 = vld [vmem:[#allocation2 + $0x21] ss:$2 sm:$0xff] }
 0x7d8   : > { %v5884_v25 = vmax.f32 %v5876_v61, %v5880_v21 }
 0x7da   : > { %5889 = vst [vmem:[%s8835_s27 + $0x15] sm:$0xff] %v5884_v25 }
 0x7db PF: > { %s24_s29 = sadd.s32 1, %s7858_s29  }
 0x7dc   : > { %p21_p4 = scmp.ge.s32.totalorder %s24_s29, 4  }
 0x7de   :  { %23 = sbr.rel (!%p21_p4) target bundleno = 1 (0x1), region = 244 }

</bundles_post_ra>
